<compile_context>
chip_gen: v7x
topology: tpu7x:2x2x1
jax: 0.10.0
libtpu: 0.0.40
codegen_flags: <defaults>
</compile_context>

<pallas_src>
import functools

import jax
import jax.numpy as jnp
import numpy as np
from jax.experimental import pallas as pl
from jax.experimental.pallas import tpu as pltpu


# --------------------------------------------------------------------------
# Small helpers / per-generation configuration
# --------------------------------------------------------------------------
def _round_up(x, m):
    return (x + m - 1) // m * m


def _chip_config():
    """Tile / VMEM budget per TPU generation (conservative default)."""
    try:
        kind = jax.devices()[0].device_kind.lower()
    except Exception:
        kind = ""
    if ("v2" in kind) or ("v3" in kind):
        # tiny VMEM parts: don't force a scoped limit, keep tiles small
        return dict(vmem_limit_bytes=None, max_rows=512, sa_max_points=64)
    if ("v5" in kind) or ("v6" in kind):
        # v5e / v5p / v6e: 128 MiB VMEM per core -> big tiles, 64 MiB limit
        return dict(vmem_limit_bytes=64 * 1024 * 1024,
                    max_rows=2048, sa_max_points=256)
    # v7x (64 MiB VMEM / TC, 2 TCs per chip) and unknown chips: conservative
    return dict(vmem_limit_bytes=32 * 1024 * 1024,
                max_rows=1024, sa_max_points=128)


def _cparams(cfg):
    kw = dict(dimension_semantics=("parallel",))
    if cfg["vmem_limit_bytes"] is not None:
        kw["vmem_limit_bytes"] = cfg["vmem_limit_bytes"]
    return pltpu.CompilerParams(**kw)


def _pick_tile(m, max_tile, min_steps=2, align=8):
    """Largest aligned tile <= max_tile that still gives >= min_steps grid
    steps when m is big enough to split (keeps both v7x TCs busy)."""
    tile = _round_up(-(-m // min_steps), align)     # ceil(m / min_steps), aligned
    return max(align, min(tile, max_tile))


def _pad_rows(x, rows):
    m = x.shape[0]
    if rows == m:
        return x
    return jnp.pad(x, ((0, rows - m),) + ((0, 0),) * (x.ndim - 1))


def _const_spec(shape):
    # Grid-invariant weights / biases: whole array every grid step.
    return pl.BlockSpec(shape, lambda i: (0, 0))


# --------------------------------------------------------------------------
# Kernel 1: SA shared-MLP (3 fused conv+BN+ReLU) + max-pool over nsample
# --------------------------------------------------------------------------
def _sa_chain_kernel(x_ref, w0_ref, b0_ref, w1_ref, b1_ref, w2_ref, b2_ref,
                     o_ref, *, nsample):
    h = jnp.dot(x_ref[...], w0_ref[...], preferred_element_type=jnp.float32)
    h = jnp.maximum(h + b0_ref[...], 0.0)
    h = jnp.dot(h.astype(jnp.bfloat16), w1_ref[...],
                preferred_element_type=jnp.float32)
    h = jnp.maximum(h + b1_ref[...], 0.0)
    h = jnp.dot(h.astype(jnp.bfloat16), w2_ref[...],
                preferred_element_type=jnp.float32)
    h = jnp.maximum(h + b2_ref[...], 0.0)               # (tile_p * nsample, C)
    rows, c = h.shape
    # max-pool over the nsample axis as a single sublane-group reduce (XLU)
    pooled = jnp.max(h.reshape(rows // nsample, nsample, c), axis=1)
    o_ref[...] = pooled.astype(o_ref.dtype)


def sa_mlp_maxpool(x_flat, layers, nsample, cfg):
    """x_flat: (P * nsample, cin) bf16 -> (P, cout) bf16, max over nsample."""
    ps, cin = x_flat.shape
    p = ps // nsample
    cout = layers[2]["w"].shape[1]
    tile_p = _pick_tile(p, cfg["sa_max_points"])
    pp = _round_up(p, tile_p)
    x_flat = _pad_rows(x_flat, pp * nsample)

    args, w_specs = [], []
    for lyr in layers:
        args += [lyr["w"], lyr["bias"]]
        w_specs += [_const_spec(lyr["w"].shape), _const_spec(lyr["bias"].shape)]

    out = pl.pallas_call(
        functools.partial(_sa_chain_kernel, nsample=nsample),
        out_shape=jax.ShapeDtypeStruct((pp, cout), jnp.bfloat16),
        grid_spec=pltpu.PrefetchScalarGridSpec(
            num_scalar_prefetch=0,
            grid=(pp // tile_p,),
            in_specs=[pl.BlockSpec((tile_p * nsample, cin), lambda i: (i, 0))]
                     + w_specs,
            out_specs=pl.BlockSpec((tile_p, cout), lambda i: (i, 0)),
        ),
        compiler_params=_cparams(cfg),
    )(x_flat, *args)
    return out[:p]


# --------------------------------------------------------------------------
# Kernel 2: FP shared-MLP + all three vote heads, fully fused.
# Output is one lane-dense packed block: [offset(3) | score(1) | feat | pad].
# --------------------------------------------------------------------------
def _fp_heads_kernel(x_ref,
                     fw0_ref, fb0_ref, fw1_ref, fb1_ref,
                     wh_ref, bh_ref,
                     wo_ref, bo_ref, wt_ref, bt_ref,
                     wz_ref, bz_ref,
                     o_ref, *, c, out_dim):
    # ---- FP MLP: two conv+BN+ReLU layers; activation stays in VMEM ----
    h = jnp.dot(x_ref[...], fw0_ref[...], preferred_element_type=jnp.float32)
    h = jnp.maximum(h + fb0_ref[...], 0.0)
    h = jnp.dot(h.astype(jnp.bfloat16), fw1_ref[...],
                preferred_element_type=jnp.float32)
    fp = jnp.maximum(h + fb1_ref[...], 0.0).astype(jnp.bfloat16)      # (tile, c)

    # ---- all three heads' first conv+BN+ReLU fused into one (c, 3c) matmul
    h1 = jnp.dot(fp, wh_ref[...], preferred_element_type=jnp.float32)
    h1 = jnp.maximum(h1 + bh_ref[...], 0.0)                           # (tile, 3c)
    h_off = h1[:, 0:c].astype(jnp.bfloat16)
    h_sc = h1[:, c:2 * c].astype(jnp.bfloat16)
    h_ft = h1[:, 2 * c:3 * c].astype(jnp.bfloat16)

    # ---- offset / feature second conv+BN+ReLU layers ----
    ho = jnp.dot(h_off, wo_ref[...], preferred_element_type=jnp.float32)
    ho = jnp.maximum(ho + bo_ref[...], 0.0).astype(jnp.bfloat16)
    hf = jnp.dot(h_ft, wt_ref[...], preferred_element_type=jnp.float32)
    hf = jnp.maximum(hf + bt_ref[...], 0.0).astype(jnp.bfloat16)

    # ---- fused block-diagonal tail: one matmul -> packed 128-lane block ----
    z = jnp.dot(jnp.concatenate([ho, h_sc, hf], axis=-1), wz_ref[...],
                preferred_element_type=jnp.float32) + bz_ref[...]     # (tile, Wpad)

    lane = jax.lax.broadcasted_iota(jnp.int32, z.shape, 1)
    feat_mask = (lane >= 4) & (lane < 4 + out_dim)
    # F.normalize(p=2): x * rsqrt(max(sum(x^2), eps^2))   (EUP rsqrt)
    sumsq = jnp.sum(jnp.where(feat_mask, z * z, 0.0), axis=-1, keepdims=True)
    inv = jax.lax.rsqrt(jnp.maximum(sumsq, 1e-24))
    out = jnp.where(lane == 3, jax.nn.sigmoid(z),
                    jnp.where(feat_mask, z * inv, z))
    o_ref[...] = out.astype(o_ref.dtype)                 # single lane-dense store


def fp_and_heads(fp_in, fp_layers, heads, out_dim, cfg):
    """fp_in: (M, in_dim + 256) bf16 -> (offset (M,3), score (M,1), feat (M,out_dim))."""
    m, cin = fp_in.shape
    c = heads["w1"].shape[0]
    wpad = heads["wz"].shape[1]
    tile = _pick_tile(m, cfg["max_rows"])
    mp = _round_up(m, tile)
    x = _pad_rows(fp_in, mp)

    args = [fp_layers[0]["w"], fp_layers[0]["bias"],
            fp_layers[1]["w"], fp_layers[1]["bias"],
            heads["w1"], heads["b1"],
            heads["off_w"], heads["off_b"],
            heads["ft_w"], heads["ft_b"],
            heads["wz"], heads["bz"]]
    w_specs = [_const_spec(a.shape) for a in args]

    packed = pl.pallas_call(
        functools.partial(_fp_heads_kernel, c=c, out_dim=out_dim),
        out_shape=jax.ShapeDtypeStruct((mp, wpad), jnp.float32),
        grid_spec=pltpu.PrefetchScalarGridSpec(
            num_scalar_prefetch=0,
            grid=(mp // tile,),
            in_specs=[pl.BlockSpec((tile, cin), lambda i: (i, 0))] + w_specs,
            out_specs=pl.BlockSpec((tile, wpad), lambda i: (i, 0)),
        ),
        compiler_params=_cparams(cfg),
    )(x, *args)
    packed = packed[:m]
    return packed[:, 0:3], packed[:, 3:4], packed[:, 4:4 + out_dim]


# --------------------------------------------------------------------------
# JAX glue: sampling / grouping / interpolation
# TODO(synk): FPS, ball-query and three-NN are sequential / data-dependent
#             gathers; they stay in plain JAX glue rather than Pallas.
# --------------------------------------------------------------------------
def furthest_point_sample(xyz, npoint):
    B, N, _ = xyz.shape

    def body(i, carry):
        inds, mind, last = carry
        inds = inds.at[:, i].set(last)
        lx = jnp.take_along_axis(xyz, last[:, None, None], axis=1)   # (B,1,3)
        d = jnp.sum((xyz - lx) ** 2, axis=-1)
        mind = jnp.minimum(mind, d)
        nxt = jnp.argmax(mind, axis=-1).astype(jnp.int32)
        return inds, mind, nxt

    inds0 = jnp.zeros((B, npoint), jnp.int32)
    mind0 = jnp.full((B, N), 1e10, jnp.float32)
    last0 = jnp.zeros((B,), jnp.int32)
    inds, _, _ = jax.lax.fori_loop(0, npoint, body, (inds0, mind0, last0))
    return inds


def ball_query(xyz, new_xyz, radius, nsample):
    B, N, _ = xyz.shape
    d2 = jnp.sum((new_xyz[:, :, None, :] - xyz[:, None, :, :]) ** 2, axis=-1)
    within = d2 < radius * radius
    ar = jnp.arange(N, dtype=jnp.int32)
    key = jnp.where(within, ar, ar + N)      # in-radius points first, index order
    order = jnp.argsort(key, axis=-1).astype(jnp.int32)
    idx = order[..., :nsample]
    cnt = jnp.sum(within, axis=-1, keepdims=True)
    pos = jnp.arange(nsample, dtype=jnp.int32)
    # Replicate the first in-radius point into unused slots (CUDA ball_query).
    idx = jnp.where(pos[None, None, :] < jnp.maximum(cnt, 1), idx, idx[..., :1])
    return idx


# --------------------------------------------------------------------------
# Parameters (deterministic synthetic init; BN folded into weight + bias)
# --------------------------------------------------------------------------
def _layer(key, cin, cout, bn):
    k1, k2 = jax.random.split(key)
    w = jax.random.normal(k1, (cin, cout), jnp.float32) / np.sqrt(cin)
    b = 0.01 * jax.random.normal(k2, (cout,), jnp.float32)
    if bn:
        # eval-mode BN, default running stats (mean=0, var=1, gamma=1, beta=0)
        gamma = jnp.ones((cout,), jnp.float32)
        beta = jnp.zeros((cout,), jnp.float32)
        mean = jnp.zeros((cout,), jnp.float32)
        var = jnp.ones((cout,), jnp.float32)
        s = gamma / jnp.sqrt(var + 1e-5)
        w = w * s[None, :]                   # fold BN scale into the weight
        bias = s * (b - mean) + beta
    else:
        bias = b
    return dict(w=w.astype(jnp.bfloat16),
                bias=bias.reshape(1, cout).astype(jnp.float32))


def init_params(key, in_dim, out_dim, vote_c=256):
    ks = iter(jax.random.split(key, 16))
    P = {}
    # sa1: SharedMLP([in_dim+3, 256, 256, 256]) (use_xyz=True), BN+ReLU on all
    P["sa"] = [_layer(next(ks), in_dim + 3, vote_c, True),
               _layer(next(ks), vote_c, vote_c, True),
               _layer(next(ks), vote_c, vote_c, True)]
    # fp1: SharedMLP([in_dim+256, 256, 256]), BN+ReLU on all
    P["fp"] = [_layer(next(ks), in_dim + vote_c, vote_c, True),
               _layer(next(ks), vote_c, vote_c, True)]

    off = [_layer(next(ks), vote_c, vote_c, True),
           _layer(next(ks), vote_c, vote_c, True),
           _layer(next(ks), vote_c, 3, False)]
    sc = [_layer(next(ks), vote_c, vote_c, True),
          _layer(next(ks), vote_c, 1, False)]
    ft = [_layer(next(ks), vote_c, vote_c, True),
          _layer(next(ks), vote_c, vote_c, True),
          _layer(next(ks), vote_c, out_dim, False)]

    # ---- precomputed fused-head parameters (review: pack once at init) ----
    # (a) all three heads' first 256->256 layers as one (c, 3c) matmul
    w1 = jnp.concatenate([off[0]["w"], sc[0]["w"], ft[0]["w"]], axis=1)
    b1 = jnp.concatenate([off[0]["bias"], sc[0]["bias"], ft[0]["bias"]], axis=1)
    # (b) block-diagonal tail (768, Wpad) producing the packed
    #     [offset(3) | score(1) | feature(out_dim) | zero pad] output block
    wpad = _round_up(4 + out_dim, 128)
    wz = jnp.zeros((3 * vote_c, wpad), jnp.float32)
    wz = wz.at[0:vote_c, 0:3].set(off[2]["w"].astype(jnp.float32))
    wz = wz.at[vote_c:2 * vote_c, 3:4].set(sc[1]["w"].astype(jnp.float32))
    wz = wz.at[2 * vote_c:3 * vote_c, 4:4 + out_dim].set(
        ft[2]["w"].astype(jnp.float32))
    bz = jnp.zeros((1, wpad), jnp.float32)
    bz = bz.at[:, 0:3].set(off[2]["bias"])
    bz = bz.at[:, 3:4].set(sc[1]["bias"])
    bz = bz.at[:, 4:4 + out_dim].set(ft[2]["bias"])

    P["heads"] = dict(w1=w1, b1=b1,
                      off_w=off[1]["w"], off_b=off[1]["bias"],
                      ft_w=ft[1]["w"], ft_b=ft[1]["bias"],
                      wz=wz.astype(jnp.bfloat16), bz=bz)
    return P


# --------------------------------------------------------------------------
# Forward pass
# --------------------------------------------------------------------------
def candidate_vote_forward(params, xyz, features, *, npoint, radius, nsample,
                           out_dim):
    B, N, _ = xyz.shape
    in_dim = features.shape[1]
    vote_c = params["sa"][2]["w"].shape[1]
    cfg = _chip_config()
    feats_nl = jnp.transpose(features, (0, 2, 1))                    # (B, N, in_dim)

    # ---- PointnetSAModuleVotes (use_xyz=True, normalize_xyz=True) ----
    fps_inds = furthest_point_sample(xyz, npoint)                               # (B, S)
    new_xyz = jnp.take_along_axis(xyz, fps_inds[..., None], axis=1)             # (B, S, 3)
    idx = ball_query(xyz, new_xyz, radius, nsample)                             # (B, S, K)
    flat = idx.reshape(B, -1)[..., None]
    g_xyz = jnp.take_along_axis(xyz, flat, axis=1).reshape(B, npoint, nsample, 3)
    g_xyz = (g_xyz - new_xyz[:, :, None, :]) / radius                           # normalize_xyz
    g_feat = jnp.take_along_axis(feats_nl, flat, axis=1
                                 ).reshape(B, npoint, nsample, in_dim)
    grouped = jnp.concatenate([g_xyz, g_feat], axis=-1)                         # xyz first (use_xyz)
    grouped = grouped.reshape(B * npoint * nsample, in_dim + 3).astype(jnp.bfloat16)
    feats_sa1 = sa_mlp_maxpool(grouped, params["sa"], nsample, cfg
                               ).reshape(B, npoint, vote_c)                     # bf16

    # ---- PointnetFPModule: three-NN inverse-distance interpolation ----
    d2 = jnp.sum((xyz[:, :, None, :] - new_xyz[:, None, :, :]) ** 2, axis=-1)
    neg_d2, nn_idx = jax.lax.top_k(-d2, 3)
    # pointnet2 ThreeNN returns sqrt'ed distances -> weights = 1 / (d + 1e-8)
    dist = jnp.sqrt(jnp.maximum(-neg_d2, 0.0))
    w = 1.0 / (dist + 1e-8)
    w = w / jnp.sum(w, axis=-1, keepdims=True)
    nn_feats = jnp.take_along_axis(feats_sa1, nn_idx.reshape(B, -1)[..., None],
                                   axis=1).reshape(B, N, 3, vote_c)
    interp = jnp.sum(nn_feats * w[..., None], axis=2)                           # (B, N, 256)
    fp_in = jnp.concatenate([interp, feats_nl], axis=-1
                            ).reshape(B * N, vote_c + in_dim).astype(jnp.bfloat16)

    # ---- fused FP MLP + vote heads (single kernel, lane-dense output) ----
    off, sc, ft = fp_and_heads(fp_in, params["fp"], params["heads"], out_dim, cfg)
    offset = off.reshape(B, N, 3)
    vote_xyz = xyz + offset
    vote_scores = sc.reshape(B, N)
    vote_features = ft.reshape(B, N, out_dim)

    return {
        "vote_xyz": vote_xyz,                # (B, N, 3)
        "vote_xyz_offset": offset,           # (B, N, 3)
        "vote_scores": vote_scores,          # (B, N)
        "vote_features": vote_features,      # (B, N, out_dim)
    }


# --------------------------------------------------------------------------
if __name__ == "__main__":
    B, N, in_dim, out_dim = 2, 64, 6, 32
    npoint, radius, nsample = 16, 0.3, 8

    key = jax.random.PRNGKey(0)
    kx, kf, kp = jax.random.split(key, 3)
    xyz = jax.random.uniform(kx, (B, N, 3), jnp.float32)             # input['xyz']
    features = jax.random.normal(kf, (B, in_dim, N), jnp.float32)    # input['features'] (B,C,N)
    params = init_params(kp, in_dim, out_dim)

    fwd = jax.jit(functools.partial(candidate_vote_forward,
                                    npoint=npoint, radius=radius,
                                    nsample=nsample, out_dim=out_dim))
    out = fwd(params, xyz, features)
    jax.block_until_ready(out)

    assert out["vote_xyz"].shape == (B, N, 3)
    assert out["vote_xyz_offset"].shape == (B, N, 3)
    assert out["vote_scores"].shape == (B, N)
    assert out["vote_features"].shape == (B, N, out_dim)
    assert bool(jnp.all(jnp.isfinite(out["vote_features"])))
    print("KERNEL_OK")
</pallas_src>

<mosaic_0001>
module attributes {stable_mosaic.version = 11 : i64} {
  func.func @_sa_chain_kernel(%arg0: i32, %arg1: memref<128x9xbf16, #tpu.memory_space<vmem>>, %arg2: memref<9x256xbf16, #tpu.memory_space<vmem>>, %arg3: memref<1x256xf32, #tpu.memory_space<vmem>>, %arg4: memref<256x256xbf16, #tpu.memory_space<vmem>>, %arg5: memref<1x256xf32, #tpu.memory_space<vmem>>, %arg6: memref<256x256xbf16, #tpu.memory_space<vmem>>, %arg7: memref<1x256xf32, #tpu.memory_space<vmem>>, %arg8: memref<16x256xbf16, #tpu.memory_space<vmem>>) attributes {dimension_semantics = [#tpu.dimension_semantics<parallel>], iteration_bounds = array<i64: 2>, scalar_prefetch = 0 : i64, scratch_operands = 0 : i64, tpu.core_type = #tpu.core_type<tc>, window_params = [{transform_indices = @transform_0, window_bounds = array<i64: 128, 9>}, {pipeline_mode = #tpu.pipeline_mode<synchronous>, transform_indices = @transform_1, window_bounds = array<i64: 9, 256>}, {pipeline_mode = #tpu.pipeline_mode<synchronous>, transform_indices = @transform_2, window_bounds = array<i64: 1, 256>}, {pipeline_mode = #tpu.pipeline_mode<synchronous>, transform_indices = @transform_3, window_bounds = array<i64: 256, 256>}, {pipeline_mode = #tpu.pipeline_mode<synchronous>, transform_indices = @transform_4, window_bounds = array<i64: 1, 256>}, {pipeline_mode = #tpu.pipeline_mode<synchronous>, transform_indices = @transform_5, window_bounds = array<i64: 256, 256>}, {pipeline_mode = #tpu.pipeline_mode<synchronous>, transform_indices = @transform_6, window_bounds = array<i64: 1, 256>}, {transform_indices = @transform_7, window_bounds = array<i64: 16, 256>}]} {
    %c0 = arith.constant 0 : index
    %c0_0 = arith.constant 0 : index
    %0 = vector.load %arg1[%c0, %c0_0] : memref<128x9xbf16, #tpu.memory_space<vmem>>, vector<128x9xbf16>
    %c0_1 = arith.constant 0 : index
    %c0_2 = arith.constant 0 : index
    %1 = vector.load %arg2[%c0_1, %c0_2] : memref<9x256xbf16, #tpu.memory_space<vmem>>, vector<9x256xbf16>
    %cst = arith.constant dense<0.000000e+00> : vector<128x256xf32>
    %2 = tpu.matmul %0, %1, %cst {dimension_numbers = #tpu.dot_dimension_numbers<[1], [0], [0], [1], [0, 0, 1, 1], [], []>} : vector<128x9xbf16>, vector<9x256xbf16>, vector<128x256xf32> -> vector<128x256xf32>
    %c0_3 = arith.constant 0 : index
    %c0_4 = arith.constant 0 : index
    %3 = vector.load %arg3[%c0_3, %c0_4] : memref<1x256xf32, #tpu.memory_space<vmem>>, vector<1x256xf32>
    %4 = vector.broadcast %3 : vector<1x256xf32> to vector<128x256xf32>
    %5 = arith.addf %2, %4 : vector<128x256xf32>
    %cst_5 = arith.constant 0.000000e+00 : f32
    %6 = vector.broadcast %cst_5 : f32 to vector<128x256xf32>
    %7 = arith.maximumf %5, %6 : vector<128x256xf32>
    %8 = arith.truncf %7 : vector<128x256xf32> to vector<128x256xbf16>
    %c0_6 = arith.constant 0 : index
    %c0_7 = arith.constant 0 : index
    %9 = vector.load %arg4[%c0_6, %c0_7] : memref<256x256xbf16, #tpu.memory_space<vmem>>, vector<256x256xbf16>
    %cst_8 = arith.constant dense<0.000000e+00> : vector<128x256xf32>
    %10 = tpu.matmul %8, %9, %cst_8 {dimension_numbers = #tpu.dot_dimension_numbers<[1], [0], [0], [1], [0, 0, 1, 1], [], []>} : vector<128x256xbf16>, vector<256x256xbf16>, vector<128x256xf32> -> vector<128x256xf32>
    %c0_9 = arith.constant 0 : index
    %c0_10 = arith.constant 0 : index
    %11 = vector.load %arg5[%c0_9, %c0_10] : memref<1x256xf32, #tpu.memory_space<vmem>>, vector<1x256xf32>
    %12 = vector.broadcast %11 : vector<1x256xf32> to vector<128x256xf32>
    %13 = arith.addf %10, %12 : vector<128x256xf32>
    %cst_11 = arith.constant 0.000000e+00 : f32
    %14 = vector.broadcast %cst_11 : f32 to vector<128x256xf32>
    %15 = arith.maximumf %13, %14 : vector<128x256xf32>
    %16 = arith.truncf %15 : vector<128x256xf32> to vector<128x256xbf16>
    %c0_12 = arith.constant 0 : index
    %c0_13 = arith.constant 0 : index
    %17 = vector.load %arg6[%c0_12, %c0_13] : memref<256x256xbf16, #tpu.memory_space<vmem>>, vector<256x256xbf16>
    %cst_14 = arith.constant dense<0.000000e+00> : vector<128x256xf32>
    %18 = tpu.matmul %16, %17, %cst_14 {dimension_numbers = #tpu.dot_dimension_numbers<[1], [0], [0], [1], [0, 0, 1, 1], [], []>} : vector<128x256xbf16>, vector<256x256xbf16>, vector<128x256xf32> -> vector<128x256xf32>
    %c0_15 = arith.constant 0 : index
    %c0_16 = arith.constant 0 : index
    %19 = vector.load %arg7[%c0_15, %c0_16] : memref<1x256xf32, #tpu.memory_space<vmem>>, vector<1x256xf32>
    %20 = vector.broadcast %19 : vector<1x256xf32> to vector<128x256xf32>
    %21 = arith.addf %18, %20 : vector<128x256xf32>
    %cst_17 = arith.constant 0.000000e+00 : f32
    %22 = vector.broadcast %cst_17 : f32 to vector<128x256xf32>
    %23 = arith.maximumf %21, %22 : vector<128x256xf32>
    %24 = vector.shape_cast %23 : vector<128x256xf32> to vector<16x8x256xf32>
    %cst_18 = arith.constant dense<0xFF800000> : vector<16x256xf32>
    %25 = vector.multi_reduction <maximumf>, %24, %cst_18 [1] : vector<16x8x256xf32> to vector<16x256xf32>
    %26 = arith.truncf %25 : vector<16x256xf32> to vector<16x256xbf16>
    %c0_19 = arith.constant 0 : index
    %c0_20 = arith.constant 0 : index
    %27 = vector.load %arg8[%c0_19, %c0_20] : memref<16x256xbf16, #tpu.memory_space<vmem>>, vector<16x256xbf16>
    tpu.vector_store %arg8[%c0_19, %c0_20], %26 {strides = array<i32>} : memref<16x256xbf16, #tpu.memory_space<vmem>>, vector<16x256xbf16>,
    return
  }
  func.func @transform_0(%arg0: i32) -> (i32, i32) {
    %c0_i32 = arith.constant 0 : i32
    %c0_i32_0 = arith.constant 0 : i32
    return %arg0, %c0_i32 : i32, i32
  }
  func.func @transform_1(%arg0: i32) -> (i32, i32) {
    %c0_i32 = arith.constant 0 : i32
    %c0_i32_0 = arith.constant 0 : i32
    %c0_i32_1 = arith.constant 0 : i32
    return %c0_i32, %c0_i32_0 : i32, i32
  }
  func.func @transform_2(%arg0: i32) -> (i32, i32) {
    %c0_i32 = arith.constant 0 : i32
    %c0_i32_0 = arith.constant 0 : i32
    %c0_i32_1 = arith.constant 0 : i32
    return %c0_i32, %c0_i32_0 : i32, i32
  }
  func.func @transform_3(%arg0: i32) -> (i32, i32) {
    %c0_i32 = arith.constant 0 : i32
    %c0_i32_0 = arith.constant 0 : i32
    %c0_i32_1 = arith.constant 0 : i32
    return %c0_i32, %c0_i32_0 : i32, i32
  }
  func.func @transform_4(%arg0: i32) -> (i32, i32) {
    %c0_i32 = arith.constant 0 : i32
    %c0_i32_0 = arith.constant 0 : i32
    %c0_i32_1 = arith.constant 0 : i32
    return %c0_i32, %c0_i32_0 : i32, i32
  }
  func.func @transform_5(%arg0: i32) -> (i32, i32) {
    %c0_i32 = arith.constant 0 : i32
    %c0_i32_0 = arith.constant 0 : i32
    %c0_i32_1 = arith.constant 0 : i32
    return %c0_i32, %c0_i32_0 : i32, i32
  }
  func.func @transform_6(%arg0: i32) -> (i32, i32) {
    %c0_i32 = arith.constant 0 : i32
    %c0_i32_0 = arith.constant 0 : i32
    %c0_i32_1 = arith.constant 0 : i32
    return %c0_i32, %c0_i32_0 : i32, i32
  }
  func.func @transform_7(%arg0: i32) -> (i32, i32) {
    %c0_i32 = arith.constant 0 : i32
    %c0_i32_0 = arith.constant 0 : i32
    return %arg0, %c0_i32 : i32, i32
  }
}

module attributes {stable_mosaic.version = 11 : i64} {
  func.func @_fp_heads_kernel(%arg0: i32, %arg1: memref<64x262xbf16, #tpu.memory_space<vmem>>, %arg2: memref<262x256xbf16, #tpu.memory_space<vmem>>, %arg3: memref<1x256xf32, #tpu.memory_space<vmem>>, %arg4: memref<256x256xbf16, #tpu.memory_space<vmem>>, %arg5: memref<1x256xf32, #tpu.memory_space<vmem>>, %arg6: memref<256x768xbf16, #tpu.memory_space<vmem>>, %arg7: memref<1x768xf32, #tpu.memory_space<vmem>>, %arg8: memref<256x256xbf16, #tpu.memory_space<vmem>>, %arg9: memref<1x256xf32, #tpu.memory_space<vmem>>, %arg10: memref<256x256xbf16, #tpu.memory_space<vmem>>, %arg11: memref<1x256xf32, #tpu.memory_space<vmem>>, %arg12: memref<768x128xbf16, #tpu.memory_space<vmem>>, %arg13: memref<1x128xf32, #tpu.memory_space<vmem>>, %arg14: memref<64x128xf32, #tpu.memory_space<vmem>>) attributes {dimension_semantics = [#tpu.dimension_semantics<parallel>], iteration_bounds = array<i64: 2>, scalar_prefetch = 0 : i64, scratch_operands = 0 : i64, tpu.core_type = #tpu.core_type<tc>, window_params = [{transform_indices = @transform_0, window_bounds = array<i64: 64, 262>}, {pipeline_mode = #tpu.pipeline_mode<synchronous>, transform_indices = @transform_1, window_bounds = array<i64: 262, 256>}, {pipeline_mode = #tpu.pipeline_mode<synchronous>, transform_indices = @transform_2, window_bounds = array<i64: 1, 256>}, {pipeline_mode = #tpu.pipeline_mode<synchronous>, transform_indices = @transform_3, window_bounds = array<i64: 256, 256>}, {pipeline_mode = #tpu.pipeline_mode<synchronous>, transform_indices = @transform_4, window_bounds = array<i64: 1, 256>}, {pipeline_mode = #tpu.pipeline_mode<synchronous>, transform_indices = @transform_5, window_bounds = array<i64: 256, 768>}, {pipeline_mode = #tpu.pipeline_mode<synchronous>, transform_indices = @transform_6, window_bounds = array<i64: 1, 768>}, {pipeline_mode = #tpu.pipeline_mode<synchronous>, transform_indices = @transform_7, window_bounds = array<i64: 256, 256>}, {pipeline_mode = #tpu.pipeline_mode<synchronous>, transform_indices = @transform_8, window_bounds = array<i64: 1, 256>}, {pipeline_mode = #tpu.pipeline_mode<synchronous>, transform_indices = @transform_9, window_bounds = array<i64: 256, 256>}, {pipeline_mode = #tpu.pipeline_mode<synchronous>, transform_indices = @transform_10, window_bounds = array<i64: 1, 256>}, {pipeline_mode = #tpu.pipeline_mode<synchronous>, transform_indices = @transform_11, window_bounds = array<i64: 768, 128>}, {pipeline_mode = #tpu.pipeline_mode<synchronous>, transform_indices = @transform_12, window_bounds = array<i64: 1, 128>}, {transform_indices = @transform_13, window_bounds = array<i64: 64, 128>}]} {
    %c0 = arith.constant 0 : index
    %c0_0 = arith.constant 0 : index
    %0 = vector.load %arg1[%c0, %c0_0] : memref<64x262xbf16, #tpu.memory_space<vmem>>, vector<64x262xbf16>
    %c0_1 = arith.constant 0 : index
    %c0_2 = arith.constant 0 : index
    %1 = vector.load %arg2[%c0_1, %c0_2] : memref<262x256xbf16, #tpu.memory_space<vmem>>, vector<262x256xbf16>
    %cst = arith.constant dense<0.000000e+00> : vector<64x256xf32>
    %2 = tpu.matmul %0, %1, %cst {dimension_numbers = #tpu.dot_dimension_numbers<[1], [0], [0], [1], [0, 0, 1, 1], [], []>} : vector<64x262xbf16>, vector<262x256xbf16>, vector<64x256xf32> -> vector<64x256xf32>
    %c0_3 = arith.constant 0 : index
    %c0_4 = arith.constant 0 : index
    %3 = vector.load %arg3[%c0_3, %c0_4] : memref<1x256xf32, #tpu.memory_space<vmem>>, vector<1x256xf32>
    %4 = vector.broadcast %3 : vector<1x256xf32> to vector<64x256xf32>
    %5 = arith.addf %2, %4 : vector<64x256xf32>
    %cst_5 = arith.constant 0.000000e+00 : f32
    %6 = vector.broadcast %cst_5 : f32 to vector<64x256xf32>
    %7 = arith.maximumf %5, %6 : vector<64x256xf32>
    %8 = arith.truncf %7 : vector<64x256xf32> to vector<64x256xbf16>
    %c0_6 = arith.constant 0 : index
    %c0_7 = arith.constant 0 : index
    %9 = vector.load %arg4[%c0_6, %c0_7] : memref<256x256xbf16, #tpu.memory_space<vmem>>, vector<256x256xbf16>
    %cst_8 = arith.constant dense<0.000000e+00> : vector<64x256xf32>
    %10 = tpu.matmul %8, %9, %cst_8 {dimension_numbers = #tpu.dot_dimension_numbers<[1], [0], [0], [1], [0, 0, 1, 1], [], []>} : vector<64x256xbf16>, vector<256x256xbf16>, vector<64x256xf32> -> vector<64x256xf32>
    %c0_9 = arith.constant 0 : index
    %c0_10 = arith.constant 0 : index
    %11 = vector.load %arg5[%c0_9, %c0_10] : memref<1x256xf32, #tpu.memory_space<vmem>>, vector<1x256xf32>
    %12 = vector.broadcast %11 : vector<1x256xf32> to vector<64x256xf32>
    %13 = arith.addf %10, %12 : vector<64x256xf32>
    %cst_11 = arith.constant 0.000000e+00 : f32
    %14 = vector.broadcast %cst_11 : f32 to vector<64x256xf32>
    %15 = arith.maximumf %13, %14 : vector<64x256xf32>
    %16 = arith.truncf %15 : vector<64x256xf32> to vector<64x256xbf16>
    %c0_12 = arith.constant 0 : index
    %c0_13 = arith.constant 0 : index
    %17 = vector.load %arg6[%c0_12, %c0_13] : memref<256x768xbf16, #tpu.memory_space<vmem>>, vector<256x768xbf16>
    %cst_14 = arith.constant dense<0.000000e+00> : vector<64x768xf32>
    %18 = tpu.matmul %16, %17, %cst_14 {dimension_numbers = #tpu.dot_dimension_numbers<[1], [0], [0], [1], [0, 0, 1, 1], [], []>} : vector<64x256xbf16>, vector<256x768xbf16>, vector<64x768xf32> -> vector<64x768xf32>
    %c0_15 = arith.constant 0 : index
    %c0_16 = arith.constant 0 : index
    %19 = vector.load %arg7[%c0_15, %c0_16] : memref<1x768xf32, #tpu.memory_space<vmem>>, vector<1x768xf32>
    %20 = vector.broadcast %19 : vector<1x768xf32> to vector<64x768xf32>
    %21 = arith.addf %18, %20 : vector<64x768xf32>
    %cst_17 = arith.constant 0.000000e+00 : f32
    %22 = vector.broadcast %cst_17 : f32 to vector<64x768xf32>
    %23 = arith.maximumf %21, %22 : vector<64x768xf32>
    %24 = vector.extract_strided_slice %23 {offsets = [0, 0], sizes = [64, 256], strides = [1, 1]} : vector<64x768xf32> to vector<64x256xf32>
    %25 = arith.truncf %24 : vector<64x256xf32> to vector<64x256xbf16>
    %26 = vector.extract_strided_slice %23 {offsets = [0, 256], sizes = [64, 256], strides = [1, 1]} : vector<64x768xf32> to vector<64x256xf32>
    %27 = arith.truncf %26 : vector<64x256xf32> to vector<64x256xbf16>
    %28 = vector.extract_strided_slice %23 {offsets = [0, 512], sizes = [64, 256], strides = [1, 1]} : vector<64x768xf32> to vector<64x256xf32>
    %29 = arith.truncf %28 : vector<64x256xf32> to vector<64x256xbf16>
    %c0_18 = arith.constant 0 : index
    %c0_19 = arith.constant 0 : index
    %30 = vector.load %arg8[%c0_18, %c0_19] : memref<256x256xbf16, #tpu.memory_space<vmem>>, vector<256x256xbf16>
    %cst_20 = arith.constant dense<0.000000e+00> : vector<64x256xf32>
    %31 = tpu.matmul %25, %30, %cst_20 {dimension_numbers = #tpu.dot_dimension_numbers<[1], [0], [0], [1], [0, 0, 1, 1], [], []>} : vector<64x256xbf16>, vector<256x256xbf16>, vector<64x256xf32> -> vector<64x256xf32>
    %c0_21 = arith.constant 0 : index
    %c0_22 = arith.constant 0 : index
    %32 = vector.load %arg9[%c0_21, %c0_22] : memref<1x256xf32, #tpu.memory_space<vmem>>, vector<1x256xf32>
    %33 = vector.broadcast %32 : vector<1x256xf32> to vector<64x256xf32>
    %34 = arith.addf %31, %33 : vector<64x256xf32>
    %cst_23 = arith.constant 0.000000e+00 : f32
    %35 = vector.broadcast %cst_23 : f32 to vector<64x256xf32>
    %36 = arith.maximumf %34, %35 : vector<64x256xf32>
    %37 = arith.truncf %36 : vector<64x256xf32> to vector<64x256xbf16>
    %c0_24 = arith.constant 0 : index
    %c0_25 = arith.constant 0 : index
    %38 = vector.load %arg10[%c0_24, %c0_25] : memref<256x256xbf16, #tpu.memory_space<vmem>>, vector<256x256xbf16>
    %cst_26 = arith.constant dense<0.000000e+00> : vector<64x256xf32>
    %39 = tpu.matmul %29, %38, %cst_26 {dimension_numbers = #tpu.dot_dimension_numbers<[1], [0], [0], [1], [0, 0, 1, 1], [], []>} : vector<64x256xbf16>, vector<256x256xbf16>, vector<64x256xf32> -> vector<64x256xf32>
    %c0_27 = arith.constant 0 : index
    %c0_28 = arith.constant 0 : index
    %40 = vector.load %arg11[%c0_27, %c0_28] : memref<1x256xf32, #tpu.memory_space<vmem>>, vector<1x256xf32>
    %41 = vector.broadcast %40 : vector<1x256xf32> to vector<64x256xf32>
    %42 = arith.addf %39, %41 : vector<64x256xf32>
    %cst_29 = arith.constant 0.000000e+00 : f32
    %43 = vector.broadcast %cst_29 : f32 to vector<64x256xf32>
    %44 = arith.maximumf %42, %43 : vector<64x256xf32>
    %45 = arith.truncf %44 : vector<64x256xf32> to vector<64x256xbf16>
    %46 = tpu.concatenate %37, %27, %45 in 1 : vector<64x256xbf16>, vector<64x256xbf16>, vector<64x256xbf16> -> vector<64x768xbf16>
    %c0_30 = arith.constant 0 : index
    %c0_31 = arith.constant 0 : index
    %47 = vector.load %arg12[%c0_30, %c0_31] : memref<768x128xbf16, #tpu.memory_space<vmem>>, vector<768x128xbf16>
    %cst_32 = arith.constant dense<0.000000e+00> : vector<64x128xf32>
    %48 = tpu.matmul %46, %47, %cst_32 {dimension_numbers = #tpu.dot_dimension_numbers<[1], [0], [0], [1], [0, 0, 1, 1], [], []>} : vector<64x768xbf16>, vector<768x128xbf16>, vector<64x128xf32> -> vector<64x128xf32>
    %c0_33 = arith.constant 0 : index
    %c0_34 = arith.constant 0 : index
    %49 = vector.load %arg13[%c0_33, %c0_34] : memref<1x128xf32, #tpu.memory_space<vmem>>, vector<1x128xf32>
    %50 = vector.broadcast %49 : vector<1x128xf32> to vector<64x128xf32>
    %51 = arith.addf %48, %50 : vector<64x128xf32>
    %52 = tpu.iota {dimensions = array<i32: 1>} : vector<64x128xi32>
    %c4_i32 = arith.constant 4 : i32
    %53 = vector.broadcast %c4_i32 : i32 to vector<64x128xi32>
    %54 = arith.cmpi sge, %52, %53 : vector<64x128xi32>
    %c36_i32 = arith.constant 36 : i32
    %55 = vector.broadcast %c36_i32 : i32 to vector<64x128xi32>
    %56 = arith.cmpi slt, %52, %55 : vector<64x128xi32>
    %57 = arith.andi %54, %56 : vector<64x128xi1>
    %58 = arith.mulf %51, %51 : vector<64x128xf32>
    %cst_35 = arith.constant 0.000000e+00 : f32
    %59 = vector.broadcast %cst_35 : f32 to vector<64x128xf32>
    %60 = arith.select %57, %58, %59 : vector<64x128xi1>, vector<64x128xf32>
    %cst_36 = arith.constant dense<0.000000e+00> : vector<64xf32>
    %61 = vector.multi_reduction <add>, %60, %cst_36 [1] : vector<64x128xf32> to vector<64xf32>
    %62 = vector.shape_cast %61 : vector<64xf32> to vector<64x1xf32>
    %cst_37 = arith.constant 1.000000e-24 : f32
    %63 = vector.broadcast %cst_37 : f32 to vector<64x1xf32>
    %64 = arith.maximumf %62, %63 : vector<64x1xf32>
    %65 = math.rsqrt %64 : vector<64x1xf32>
    %c3_i32 = arith.constant 3 : i32
    %66 = vector.broadcast %c3_i32 : i32 to vector<64x128xi32>
    %67 = arith.cmpi eq, %52, %66 : vector<64x128xi32>
    %68 = arith.negf %51 : vector<64x128xf32>
    %69 = math.exp %68 : vector<64x128xf32>
    %cst_38 = arith.constant 1.000000e+00 : f32
    %70 = vector.broadcast %cst_38 : f32 to vector<64x128xf32>
    %71 = arith.addf %70, %69 : vector<64x128xf32>
    %72 = arith.divf %70, %71 : vector<64x128xf32>
    %73 = vector.broadcast %65 : vector<64x1xf32> to vector<64x128xf32>
    %74 = arith.mulf %51, %73 : vector<64x128xf32>
    %75 = arith.select %57, %74, %51 : vector<64x128xi1>, vector<64x128xf32>
    %76 = arith.select %67, %72, %75 : vector<64x128xi1>, vector<64x128xf32>
    %c0_39 = arith.constant 0 : index
    %c0_40 = arith.constant 0 : index
    %77 = vector.load %arg14[%c0_39, %c0_40] : memref<64x128xf32, #tpu.memory_space<vmem>>, vector<64x128xf32>
    tpu.vector_store %arg14[%c0_39, %c0_40], %76 {strides = array<i32>} : memref<64x128xf32, #tpu.memory_space<vmem>>, vector<64x128xf32>,
    return
  }
  func.func @transform_0(%arg0: i32) -> (i32, i32) {
    %c0_i32 = arith.constant 0 : i32
    %c0_i32_0 = arith.constant 0 : i32
    return %arg0, %c0_i32 : i32, i32
  }
  func.func @transform_1(%arg0: i32) -> (i32, i32) {
    %c0_i32 = arith.constant 0 : i32
    %c0_i32_0 = arith.constant 0 : i32
    %c0_i32_1 = arith.constant 0 : i32
    return %c0_i32, %c0_i32_0 : i32, i32
  }
  func.func @transform_2(%arg0: i32) -> (i32, i32) {
    %c0_i32 = arith.constant 0 : i32
    %c0_i32_0 = arith.constant 0 : i32
    %c0_i32_1 = arith.constant 0 : i32
    return %c0_i32, %c0_i32_0 : i32, i32
  }
  func.func @transform_3(%arg0: i32) -> (i32, i32) {
    %c0_i32 = arith.constant 0 : i32
    %c0_i32_0 = arith.constant 0 : i32
    %c0_i32_1 = arith.constant 0 : i32
    return %c0_i32, %c0_i32_0 : i32, i32
  }
  func.func @transform_4(%arg0: i32) -> (i32, i32) {
    %c0_i32 = arith.constant 0 : i32
    %c0_i32_0 = arith.constant 0 : i32
    %c0_i32_1 = arith.constant 0 : i32
    return %c0_i32, %c0_i32_0 : i32, i32
  }
  func.func @transform_5(%arg0: i32) -> (i32, i32) {
    %c0_i32 = arith.constant 0 : i32
    %c0_i32_0 = arith.constant 0 : i32
    %c0_i32_1 = arith.constant 0 : i32
    return %c0_i32, %c0_i32_0 : i32, i32
  }
  func.func @transform_6(%arg0: i32) -> (i32, i32) {
    %c0_i32 = arith.constant 0 : i32
    %c0_i32_0 = arith.constant 0 : i32
    %c0_i32_1 = arith.constant 0 : i32
    return %c0_i32, %c0_i32_0 : i32, i32
  }
  func.func @transform_7(%arg0: i32) -> (i32, i32) {
    %c0_i32 = arith.constant 0 : i32
    %c0_i32_0 = arith.constant 0 : i32
    %c0_i32_1 = arith.constant 0 : i32
    return %c0_i32, %c0_i32_0 : i32, i32
  }
  func.func @transform_8(%arg0: i32) -> (i32, i32) {
    %c0_i32 = arith.constant 0 : i32
    %c0_i32_0 = arith.constant 0 : i32
    %c0_i32_1 = arith.constant 0 : i32
    return %c0_i32, %c0_i32_0 : i32, i32
  }
  func.func @transform_9(%arg0: i32) -> (i32, i32) {
    %c0_i32 = arith.constant 0 : i32
    %c0_i32_0 = arith.constant 0 : i32
    %c0_i32_1 = arith.constant 0 : i32
    return %c0_i32, %c0_i32_0 : i32, i32
  }
  func.func @transform_10(%arg0: i32) -> (i32, i32) {
    %c0_i32 = arith.constant 0 : i32
    %c0_i32_0 = arith.constant 0 : i32
    %c0_i32_1 = arith.constant 0 : i32
    return %c0_i32, %c0_i32_0 : i32, i32
  }
  func.func @transform_11(%arg0: i32) -> (i32, i32) {
    %c0_i32 = arith.constant 0 : i32
    %c0_i32_0 = arith.constant 0 : i32
    %c0_i32_1 = arith.constant 0 : i32
    return %c0_i32, %c0_i32_0 : i32, i32
  }
  func.func @transform_12(%arg0: i32) -> (i32, i32) {
    %c0_i32 = arith.constant 0 : i32
    %c0_i32_0 = arith.constant 0 : i32
    %c0_i32_1 = arith.constant 0 : i32
    return %c0_i32, %c0_i32_0 : i32, i32
  }
  func.func @transform_13(%arg0: i32) -> (i32, i32) {
    %c0_i32 = arith.constant 0 : i32
    %c0_i32_0 = arith.constant 0 : i32
    return %arg0, %c0_i32 : i32, i32
  }
}

</mosaic_0001>

<bundles_post_ra>
// kernel: custom-call.10
= control target key start
LH: loop header
LB: loop body
LE: loop exit
PB: predicated region body
PF: predicated region fallthrough
CT: control target
= control target key end

     0   :  { %s6_s0 = inlined_call_operand.vmem [shape: f32[2,64], index: 0, kind: output, shape index: {}]  }

// kernel: neg.2
= control target key start
LH: loop header
LB: loop body
LE: loop exit
PB: predicated region body
PF: predicated region fallthrough
CT: control target
= control target key end

     0   :  { %s72_s0 = inlined_call_operand.vmem [shape: f32[2,64,16], index: 0, kind: input, shape index: {}]   ;;  %s73_s1 = inlined_call_operand.vmem [shape: f32[2,64,16], index: 1, kind: output, shape index: {}]  }
   0x1   :  { %v2_v0 = vld [vmem:[%s72_s0] sm:$0xff]  ;;  %v32_v1 = vld [vmem:[%s72_s0 + $0x10] sm:$0xff]  ;;  %v34_v2 = vld [vmem:[%s72_s0 + $0x8] sm:$0xff] }
   0x2   :  { %v5_v3 = vxor.u32 2147483648, %v2_v0  ;;  %v12_v4 = vxor.u32 2147483648, %v32_v1  ;;  %v20_v5 = vxor.u32 2147483648, %v34_v2  ;;  %v36_v6 = vld [vmem:[%s72_s0 + $0x18] sm:$0xff] }
   0x3   :  { %v28_v7 = vxor.u32 2147483648, %v36_v6 }
   0x4   :  { %7 = vst [vmem:[%s73_s1] sm:$0xff] %v5_v3  ;;  %33 = vst [vmem:[%s73_s1 + $0x10] sm:$0xff] %v12_v4 }
   0x5   :  { %35 = vst [vmem:[%s73_s1 + $0x8] sm:$0xff] %v20_v5  ;;  %37 = vst [vmem:[%s73_s1 + $0x18] sm:$0xff] %v28_v7 }

// kernel: candidate_vote_forward.2
= control target key start
LH: loop header
LB: loop body
LE: loop exit
PB: predicated region body
PF: predicated region fallthrough
CT: control target
= control target key end

     0   :  { %s2002_s24 = smov 0   ;;  %s2427_s0 = inlined_call_operand.vmem [shape: bf16[256,9], index: 0, kind: input, shape index: {}]   ;;  %s2428_s1 = inlined_call_operand.vmem [shape: bf16[9,256], index: 1, kind: input, shape index: {}]   ;;  %s2429_s2 = inlined_call_operand.vmem [shape: f32[1,256], index: 2, kind: input, shape index: {}]   ;;  %s2430_s3 = inlined_call_operand.vmem [shape: bf16[256,256], index: 3, kind: input, shape index: {}]   ;;  %s2431_s4 = inlined_call_operand.vmem [shape: f32[1,256], index: 4, kind: input, shape index: {}]   ;;  %s2432_s5 = inlined_call_operand.vmem [shape: bf16[256,256], index: 5, kind: input, shape index: {}]   ;;  %s2433_s6 = inlined_call_operand.vmem [shape: f32[1,256], index: 6, kind: input, shape index: {}]   ;;  %s2434_s7 = inlined_call_operand.vmem [shape: bf16[32,256], index: 7, kind: output, shape index: {}]  }
   0x1 LB: > { %s1708_s25 = sadd.s32 4294967295, %s1958_s24   ;;  %p1712_p0 = scmp.ge.s32.totalorder %s1958_s24, 1  ;;  %s1958_s24 = sphi %s2002_s24, %s17_s24  }
   0x2   : > { %p238_p1 = scmp.lt.s32.totalorder %s1958_s24, 3 }
   0x4   : > { %p239_p2 = pnand %p1712_p0, %p238_p1 }
   0x5   : > { %v1845_v0 = vld [vmem:[%s2428_s1 + $0x4] ss:$8 sps:$4 sm:$0x1f] (!%p239_p2)   ;;  %vm388_vm0 = vcmask (!%p239_p2), 1043456   ;;  %vm389_vm1 = vcmask (!%p239_p2), 1044480   ;;  %v1960_v2 = vmov (!%p239_p2), 65535  }
   0x6   : > { %242 = sbr.rel (%p239_p2) target bundleno = 775 (0x307), region = 48  ;;  %v1847_v1 = vld [vmem:[%s2428_s1] ss:$8 sps:$4 sm:$0x1f] (!%p239_p2)   ;;  %v390_v3 = vsel (!%p239_p2), %vm388_vm0, 4294967295, %v1960_v2  ;;  %s1713_s30 = sshll.u32 (!%p239_p2), %s1708_s25, 4 }
   0x7   : > { %v391_v4 = vsel (!%p239_p2), %vm389_vm1, %v390_v3, 0  ;;  %v1961_v5 = vmov (!%p239_p2), 0   ;;  %p272_p3 = scmp.lt.s32.totalorder (!%p239_p2), %s1713_s30, 31  ;;  %v1856_v6 = vld [vmem:[%s2430_s3 + $0x4] ss:$8 sps:$4 sm:$0xff] (!%p239_p2)   ;;  %vm363_vm2 = vcmask (!%p239_p2), 72704  }
   0x8   : > { %430 = vmatprep.mubr.bf16.mxu0 (!%p239_p2), %v1961_v5  ;;  %v1858_v7 = vld [vmem:[%s2430_s3] ss:$8 sps:$4 sm:$0xff] (!%p239_p2)   ;;  %v396_v8 = vand.u32 (!%p239_p2), %v1845_v0, %v391_v4  ;;  %v393_v9 = vand.u32 (!%p239_p2), %v1847_v1, %v391_v4  ;;  %v1859_v10 = vld [vmem:[%s2430_s3 + $0x14] ss:$8 sps:$4 sm:$0xff] (!%p239_p2)   ;;  %763 = vmatprep.subr.bf16.mxu1 (!%p239_p2), %v1856_v6  ;;  %v1861_v11 = vld [vmem:[%s2430_s3 + $0x10] ss:$8 sps:$4 sm:$0xff] (!%p239_p2)  }
   0x9   : > { %764 = vmatpush1.bf16.msra.mxu1 (!%p239_p2), %v1858_v7  ;;  %v1862_v12 = vld [vmem:[%s2430_s3 + $0x24] ss:$8 sps:$4 sm:$0xff] (!%p239_p2)   ;;  %v1864_v14 = vld [vmem:[%s2430_s3 + $0x20] ss:$8 sps:$4 sm:$0xff] (!%p239_p2)   ;;  %v1865_v15 = vld [vmem:[%s2430_s3 + $0x34] ss:$8 sps:$4 sm:$0xff] (!%p239_p2)  }
   0xa   : > { %398 = vmatprep.subr.bf16.mxu0 (!%p239_p2), %v396_v8  ;;  %765 = vmatprep.subr.bf16.mxu1 (!%p239_p2), %v1859_v10  ;;  %v1867_v16 = vld [vmem:[%s2430_s3 + $0x30] ss:$8 sps:$4 sm:$0xff] (!%p239_p2)   ;;  %v1868_v17 = vld [vmem:[%s2430_s3 + $0x44] ss:$8 sps:$4 sm:$0xff] (!%p239_p2)   ;;  %v1870_v19 = vld [vmem:[%s2430_s3 + $0x40] ss:$8 sps:$4 sm:$0xff] (!%p239_p2)  }
   0xb   : > { %399 = vmatpush1.bf16.msra.mxu0 (!%p239_p2), %v393_v9  ;;  %v1871_v20 = vld [vmem:[%s2430_s3 + $0x54] ss:$8 sps:$4 sm:$0xff] (!%p239_p2)   ;;  %v1873_v21 = vld [vmem:[%s2430_s3 + $0x50] ss:$8 sps:$4 sm:$0xff] (!%p239_p2)   ;;  %v1874_v23 = vld [vmem:[%s2430_s3 + $0x64] ss:$8 sps:$4 sm:$0xff] (!%p239_p2)   ;;  %v305_v9 = vlaneseq (!%p239_p2) }
   0xc   : > { %v1876_v24 = vld [vmem:[%s2430_s3 + $0x60] ss:$8 sps:$4 sm:$0xff] (!%p239_p2)   ;;  %v1877_v25 = vld [vmem:[%s2430_s3 + $0x74] ss:$8 sps:$4 sm:$0xff] (!%p239_p2)   ;;  %v1879_v26 = vld [vmem:[%s2430_s3 + $0x70] ss:$8 sps:$4 sm:$0xff] (!%p239_p2)  }
   0xd   : > { %s2436_s30 = smov (!%p272_p3, %s1713_s30), 31  ;;  %766 = vmatpush1.bf16.msra.mxu1 %v1861_v11  ;;  %v1880_v28 = vld [vmem:[%s2430_s3 + $0x84] ss:$8 sps:$4 sm:$0xff]   ;;  %v1882_v29 = vld [vmem:[%s2430_s3 + $0x80] ss:$8 sps:$4 sm:$0xff]   ;;  %vm1609_vm3 = vcmask 1041409  }
   0xe   : > { %s1714_s16 = sshll.u32 %s2436_s30, 2  ;;  %767 = vmatprep.subr.bf16.mxu1 %v1862_v12  ;;  %v1883_v30 = vld [vmem:[%s2430_s3 + $0x94] ss:$8 sps:$4 sm:$0xff]   ;;  %v1885_v31 = vld [vmem:[%s2430_s3 + $0x90] ss:$8 sps:$4 sm:$0xff]   ;;  %v306_v12 = vshrl.u32 %v305_v9, 7 }
   0xf   : > { %s2037_s21 = scalar_lea.vmem %s2427_s0, %s1714_s16  ;;  %v1886_v33 = vld [vmem:[%s2430_s3 + $0xa4] ss:$8 sps:$4 sm:$0xff]   ;;  %v1888_v34 = vld [vmem:[%s2430_s3 + $0xa0] ss:$8 sps:$4 sm:$0xff]   ;;  %v1889_v35 = vld [vmem:[%s2430_s3 + $0xb4] ss:$8 sps:$4 sm:$0xff]  }
  0x10   : > { %v1848_v13 = vld [vmem:[%s2037_s21] sm:$0xff]   ;;  %v1849_v18 = vld [vmem:[%s2037_s21 + $0x8] sm:$0xff]   ;;  %v1850_v22 = vld [vmem:[%s2037_s21 + $0x10] sm:$0xff]   ;;  %vm1611_vm4 = vcmask 1042434   ;;  %vm1613_vm5 = vcmask 1043459   ;;  %vm1615_vm6 = vcmask 1044484  }
  0x11   : > { %1728 = vmatmul.mubr.msk.bf16.vlgmr.msra.gmra.mrb[0].mxu0 %vm363_vm2, %v1848_v13  ;;  %768 = vmatpush1.bf16.msra.mxu1 %v1864_v14  ;;  %v1851_v27 = vld [vmem:[%s2037_s21 + $0x18] sm:$0xff]   ;;  %v1852_v32 = vld [vmem:[%s2037_s21 + $0x20] sm:$0xff]   ;;  %v1853_v37 = vld [vmem:[%s2037_s21 + $0x28] sm:$0xff]   ;;  %v2227_v14 = vsub.s32 0, %v306_v12  ;;  %vm1617_vm7 = vcmask 1045509   ;;  %vm1619_vm8 = vcmask 1046534  }
  0x12   : > { %440 = vmatprep.mubr.bf16.mxu0 %v1961_v5  ;;  %769 = vmatprep.subr.bf16.mxu1 %v1865_v15  ;;  %v1891_v36 = vld [vmem:[%s2430_s3 + $0xb0] ss:$8 sps:$4 sm:$0xff]   ;;  %v1892_v38 = vld [vmem:[%s2430_s3 + $0xc4] ss:$8 sps:$4 sm:$0xff]   ;;  %v1894_v39 = vld [vmem:[%s2430_s3 + $0xc0] ss:$8 sps:$4 sm:$0xff]  }
  0x13   : > { %v1895_v40 = vld [vmem:[%s2430_s3 + $0xd4] ss:$8 sps:$4 sm:$0xff]   ;;  %v1897_v43 = vld [vmem:[%s2430_s3 + $0xd0] ss:$8 sps:$4 sm:$0xff]   ;;  %v1898_v44 = vld [vmem:[%s2430_s3 + $0xe4] ss:$8 sps:$4 sm:$0xff]  }
  0x14   : > { %v1854_v41 = vld [vmem:[%s2037_s21 + $0x30] sm:$0xff]   ;;  %v1855_v42 = vld [vmem:[%s2037_s21 + $0x38] sm:$0xff]   ;;  %v1900_v45 = vld [vmem:[%s2430_s3 + $0xe0] ss:$8 sps:$4 sm:$0xff]   ;;  %s2361_s22 = sshll.u32 %s1708_s25, 1  ;;  %vm1621_vm9 = vcmask 1047559  }
  0x15   : > { %770 = vmatpush1.bf16.msra.mxu1 %v1867_v16  ;;  %v1901_v46 = vld [vmem:[%s2430_s3 + $0xf4] ss:$8 sps:$4 sm:$0xff]   ;;  %v1903_v47 = vld [vmem:[%s2430_s3 + $0xf0] ss:$8 sps:$4 sm:$0xff]   ;;  %v1904_v48 = vld [vmem:[%s2432_s5] ss:$8 sps:$4 sm:$0xff]  }
  0x16   : > { %771 = vmatprep.subr.bf16.mxu1 %v1868_v17  ;;  %v1906_v49 = vld [vmem:[%s2432_s5 + $0x4] ss:$8 sps:$4 sm:$0xff]   ;;  %v1909_v50 = vld [vmem:[%s2432_s5 + $0x14] ss:$8 sps:$4 sm:$0xff]   ;;  %v1907_v51 = vld [vmem:[%s2432_s5 + $0x10] ss:$8 sps:$4 sm:$0xff]  }
  0x17   : > { %1128 = vmatprep.subr.bf16.mxu0 %v1906_v49  ;;  %v1912_v52 = vld [vmem:[%s2432_s5 + $0x24] ss:$8 sps:$4 sm:$0xff]   ;;  %v1910_v53 = vld [vmem:[%s2432_s5 + $0x20] ss:$8 sps:$4 sm:$0xff]   ;;  %v1915_v54 = vld [vmem:[%s2432_s5 + $0x34] ss:$8 sps:$4 sm:$0xff]  }
  0x18   : > { %1129 = vmatpush1.bf16.msra.mxu0 %v1904_v48  ;;  %v1913_v55 = vld [vmem:[%s2432_s5 + $0x30] ss:$8 sps:$4 sm:$0xff]   ;;  %v1918_v56 = vld [vmem:[%s2432_s5 + $0x44] ss:$8 sps:$4 sm:$0xff]   ;;  %v1916_v57 = vld [vmem:[%s2432_s5 + $0x40] ss:$8 sps:$4 sm:$0xff]  }
  0x19   : > { %1729 = vmatmul.mubr.msk.bf16.gmra.mrb[4].mxu0 %vm363_vm2, %v1849_v18  ;;  %772 = vmatpush1.bf16.msra.mxu1 %v1870_v19  ;;  %v1921_v58 = vld [vmem:[%s2432_s5 + $0x54] ss:$8 sps:$4 sm:$0xff]   ;;  %v1919_v59 = vld [vmem:[%s2432_s5 + $0x50] ss:$8 sps:$4 sm:$0xff]   ;;  %v1924_v60 = vld [vmem:[%s2432_s5 + $0x64] ss:$8 sps:$4 sm:$0xff]  }
  0x1a   : > { %450 = vmatprep.mubr.bf16.mxu0 %v1961_v5  ;;  %773 = vmatprep.subr.bf16.mxu1 %v1871_v20  ;;  %v1922_v61 = vld [vmem:[%s2432_s5 + $0x60] ss:$8 sps:$4 sm:$0xff]   ;;  %v1927_v62 = vld [vmem:[%s2432_s5 + $0x74] ss:$8 sps:$4 sm:$0xff]   ;;  %v1925_v63 = vld [vmem:[%s2432_s5 + $0x70] ss:$8 sps:$4 sm:$0xff]  }
  0x1b   : > { %1130 = vmatprep.subr.bf16.mxu0 %v1909_v50  ;;  %v1930_v0 = vld [vmem:[%s2432_s5 + $0x84] ss:$8 sps:$4 sm:$0xff]   ;;  %v1928_v1 = vld [vmem:[%s2432_s5 + $0x80] ss:$8 sps:$4 sm:$0xff]   ;;  %v1933_v2 = vld [vmem:[%s2432_s5 + $0x94] ss:$8 sps:$4 sm:$0xff]  }
  0x1c   : > { %1131 = vmatpush1.bf16.msra.mxu0 %v1907_v51  ;;  %v1931_v3 = vld [vmem:[%s2432_s5 + $0x90] ss:$8 sps:$4 sm:$0xff]   ;;  %v1936_v4 = vld [vmem:[%s2432_s5 + $0xa4] ss:$8 sps:$4 sm:$0xff]   ;;  %v1939_v6 = vld [vmem:[%s2432_s5 + $0xb4] ss:$8 sps:$4 sm:$0xff]  }
  0x1d   : > { %774 = vmatpush1.bf16.msra.mxu1 %v1873_v21  ;;  %1132 = vmatprep.subr.bf16.mxu0 %v1912_v52  ;;  %v1937_v7 = vld [vmem:[%s2432_s5 + $0xb0] ss:$8 sps:$4 sm:$0xff]   ;;  %v1942_v8 = vld [vmem:[%s2432_s5 + $0xc4] ss:$8 sps:$4 sm:$0xff]   ;;  %v1940_v10 = vld [vmem:[%s2432_s5 + $0xc0] ss:$8 sps:$4 sm:$0xff]  }
  0x1e   : > { %775 = vmatprep.subr.bf16.mxu1 %v1874_v23  ;;  %v1945_v11 = vld [vmem:[%s2432_s5 + $0xd4] ss:$8 sps:$4 sm:$0xff]   ;;  %v1943_v13 = vld [vmem:[%s2432_s5 + $0xd0] ss:$8 sps:$4 sm:$0xff]   ;;  %v303_v15 = vld [vmem:[%s2429_s2] sm:$0x3] }
  0x1f   : > { %v2232_v16 = vsub.s32 1, %v306_v12  ;;  %v2235_v17 = vrot.slane %v303_v15, %v2227_v14  ;;  %p278_p4 = scmp.lt.s32.totalorder %s2361_s22, 3 }
  0x20   : > { %1133 = vmatpush1.bf16.msra.mxu0 %v1910_v53 }
  0x21   : > { %1730 = vmatmul.mubr.msk.bf16.gmra.mrb[8].mxu0 %vm363_vm2, %v1850_v22  ;;  %776 = vmatpush1.bf16.msra.mxu1 %v1876_v24  ;;  %v2238_v18 = vrot.slane %v303_v15, %v2232_v16  ;;  %s2438_s22 = smov (!%p278_p4, %s2361_s22), 3 }
  0x22   : > { %460 = vmatprep.mubr.bf16.mxu0 %v1961_v5  ;;  %777 = vmatprep.subr.bf16.mxu1 %v1877_v25  ;;  %s1818_s25 = sshll.u32 %s2438_s22, 3 }
  0x23   : > { %1134 = vmatprep.subr.bf16.mxu0 %v1915_v54  ;;  %s2387_s27 = scalar_lea.vmem %s2434_s7, %s1818_s25 }
  0x24   : > { %1135 = vmatpush1.bf16.msra.mxu0 %v1913_v55 }
  0x25   : > { %778 = vmatpush1.bf16.msra.mxu1 %v1879_v26  ;;  %1136 = vmatprep.subr.bf16.mxu0 %v1918_v56 }
  0x26   : > { %779 = vmatprep.subr.bf16.mxu1 %v1880_v28 }
  0x28   : > { %1137 = vmatpush1.bf16.msra.mxu0 %v1916_v57 }
  0x29   : > { %1731 = vmatmul.mubr.msk.bf16.gmra.mrb[12].mxu0 %vm363_vm2, %v1851_v27  ;;  %780 = vmatpush1.bf16.msra.mxu1 %v1882_v29 }
  0x2a   : > { %470 = vmatprep.mubr.bf16.mxu0 %v1961_v5  ;;  %781 = vmatprep.subr.bf16.mxu1 %v1883_v30 }
  0x2b   : > { %1138 = vmatprep.subr.bf16.mxu0 %v1921_v58 }
  0x2c   : > { %1139 = vmatpush1.bf16.msra.mxu0 %v1919_v59 }
  0x2d   : > { %782 = vmatpush1.bf16.msra.mxu1 %v1885_v31  ;;  %1140 = vmatprep.subr.bf16.mxu0 %v1924_v60 }
  0x2e   : > { %783 = vmatprep.subr.bf16.mxu1 %v1886_v33 }
  0x30   : > { %1141 = vmatpush1.bf16.msra.mxu0 %v1922_v61 }
  0x31   : > { %1732 = vmatmul.mubr.msk.bf16.gmra.mrb[16].mxu0 %vm363_vm2, %v1852_v32  ;;  %784 = vmatpush1.bf16.msra.mxu1 %v1888_v34 }
  0x32   : > { %480 = vmatprep.mubr.bf16.mxu0 %v1961_v5  ;;  %785 = vmatprep.subr.bf16.mxu1 %v1889_v35 }
  0x33   : > { %1142 = vmatprep.subr.bf16.mxu0 %v1927_v62 }
  0x34   : > { %1143 = vmatpush1.bf16.msra.mxu0 %v1925_v63 }
  0x35   : > { %786 = vmatpush1.bf16.msra.mxu1 %v1891_v36  ;;  %1144 = vmatprep.subr.bf16.mxu0 %v1930_v0 }
  0x36   : > { %787 = vmatprep.subr.bf16.mxu1 %v1892_v38 }
  0x38   : > { %1145 = vmatpush1.bf16.msra.mxu0 %v1928_v1 }
  0x39   : > { %1733 = vmatmul.mubr.msk.bf16.gmra.mrb[20].mxu0 %vm363_vm2, %v1853_v37  ;;  %788 = vmatpush1.bf16.msra.mxu1 %v1894_v39 }
  0x3a   : > { %490 = vmatprep.mubr.bf16.mxu0 %v1961_v5  ;;  %789 = vmatprep.subr.bf16.mxu1 %v1895_v40 }
  0x3b   : > { %1146 = vmatprep.subr.bf16.mxu0 %v1933_v2 }
  0x3c   : > { %1147 = vmatpush1.bf16.msra.mxu0 %v1931_v3 }
  0x3d   : > { %790 = vmatpush1.bf16.msra.mxu1 %v1897_v43  ;;  %1148 = vmatprep.subr.bf16.mxu0 %v1936_v4 }
  0x3e   : > { %791 = vmatprep.subr.bf16.mxu1 %v1898_v44 }
  0x41   : > { %1734 = vmatmul.mubr.msk.bf16.gmra.mrb[24].mxu0 %vm363_vm2, %v1854_v41  ;;  %792 = vmatpush1.bf16.msra.mxu1 %v1900_v45 }
  0x42   : > { %500 = vmatprep.mubr.bf16.mxu0 %v1961_v5  ;;  %793 = vmatprep.subr.bf16.mxu1 %v1901_v46  ;;  %v1934_v5 = vld [vmem:[%s2432_s5 + $0xa0] ss:$8 sps:$4 sm:$0xff]  }
  0x43   : > { %1149 = vmatpush1.bf16.msra.mxu0 %v1934_v5 }
  0x44   : > { %1150 = vmatprep.subr.bf16.mxu0 %v1939_v6 }
  0x45   : > { %794 = vmatpush1.bf16.msra.mxu1 %v1903_v47 }
  0x47   : > { %1151 = vmatpush1.bf16.msra.mxu0 %v1937_v7 }
  0x48   : > { %1152 = vmatprep.subr.bf16.mxu0 %v1942_v8 }
  0x49   : > { %1735 = vmatmul.mubr.msk.bf16.gmra.mrb[28].mxu0 %vm363_vm2, %v1855_v42 }
  0x4b   : > { %1153 = vmatpush1.bf16.msra.mxu0 %v1940_v10 }
  0x4c   : > { %1154 = vmatprep.subr.bf16.mxu0 %v1945_v11 }
  0x4f   : > { %1155 = vmatpush1.bf16.msra.mxu0 %v1943_v13 }
  0xe4   : > { %v432_v19 = vpop.f32.mrb[0].mxu0 }
  0xe5   : > { %v433_v20 = vadd.f32 %v432_v19, %v2235_v17  ;;  %v434_v21 = vpop.f32.mrb[1].mxu0 }
  0xe6   : > { %v435_v22 = vadd.f32 %v434_v21, %v2238_v18  ;;  %v436_v23 = vpop.f32.mrb[2].mxu0 }
  0xe7   : > { %v437_v24 = vadd.f32 %v436_v23, %v2235_v17  ;;  %v438_v25 = vpop.f32.mrb[3].mxu0  ;;  %v511_v27 = vmax.f32 %v433_v20, 0.0 }
  0xe8   : > { %v439_v26 = vadd.f32 %v438_v25, %v2238_v18  ;;  %v512_v29 = vmax.f32 %v435_v22, 0.0 }
  0xe9   : > { %v513_v28 = vmax.f32 %v437_v24, 0.0 }
  0xea   : > { %v514_v30 = vmax.f32 %v439_v26, 0.0 }
  0xeb   : > { %v543_v31 = vpack.c.bf16 %v513_v28, %v511_v27 }
  0xec   : > { %v442_v32 = vpop.f32.mrb[4].mxu0  ;;  %v544_v33 = vpack.c.bf16 %v514_v30, %v512_v29 }
  0xed   : > { %v443_v34 = vadd.f32 %v442_v32, %v2235_v17  ;;  %v444_v35 = vpop.f32.mrb[5].mxu0 }
  0xee   : > { %v445_v36 = vadd.f32 %v444_v35, %v2238_v18  ;;  %v446_v37 = vpop.f32.mrb[6].mxu0  ;;  %795 = vmatprep.mubr.bf16.mxu1 %v544_v33 }
  0xef   : > { %v447_v38 = vadd.f32 %v446_v37, %v2235_v17  ;;  %v448_v39 = vpop.f32.mrb[7].mxu0  ;;  %796 = vmatmul.mubr.bf16.vlgmr.msra.gmra.mrb[0].mxu1 %v543_v31  ;;  %v515_v41 = vmax.f32 %v443_v34, 0.0 }
  0xf0   : > { %v449_v40 = vadd.f32 %v448_v39, %v2238_v18  ;;  %v516_v43 = vmax.f32 %v445_v36, 0.0 }
  0xf1   : > { %v517_v42 = vmax.f32 %v447_v38, 0.0 }
  0xf2   : > { %v518_v44 = vmax.f32 %v449_v40, 0.0 }
  0xf3   : > { %v545_v45 = vpack.c.bf16 %v517_v42, %v515_v41 }
  0xf4   : > { %v546_v46 = vpack.c.bf16 %v518_v44, %v516_v43  ;;  %v452_v47 = vpop.f32.mrb[8].mxu0 }
  0xf5   : > { %v453_v48 = vadd.f32 %v452_v47, %v2235_v17  ;;  %v454_v49 = vpop.f32.mrb[9].mxu0 }
  0xf6   : > { %v455_v50 = vadd.f32 %v454_v49, %v2238_v18  ;;  %v456_v51 = vpop.f32.mrb[10].mxu0  ;;  %805 = vmatprep.mubr.bf16.mxu1 %v546_v46 }
  0xf7   : > { %v457_v52 = vadd.f32 %v456_v51, %v2235_v17  ;;  %v458_v53 = vpop.f32.mrb[11].mxu0  ;;  %806 = vmatmul.mubr.bf16.gmra.mrb[4].mxu1 %v545_v45  ;;  %v519_v55 = vmax.f32 %v453_v48, 0.0 }
  0xf8   : > { %v459_v54 = vadd.f32 %v458_v53, %v2238_v18  ;;  %v520_v57 = vmax.f32 %v455_v50, 0.0 }
  0xf9   : > { %v521_v56 = vmax.f32 %v457_v52, 0.0 }
  0xfa   : > { %v522_v58 = vmax.f32 %v459_v54, 0.0 }
  0xfb   : > { %v547_v59 = vpack.c.bf16 %v521_v56, %v519_v55 }
  0xfc   : > { %v548_v60 = vpack.c.bf16 %v522_v58, %v520_v57  ;;  %v462_v61 = vpop.f32.mrb[12].mxu0 }
  0xfd   : > { %v463_v62 = vadd.f32 %v462_v61, %v2235_v17  ;;  %v464_v63 = vpop.f32.mrb[13].mxu0 }
  0xfe   : > { %v465_v0 = vadd.f32 %v464_v63, %v2238_v18  ;;  %v466_v1 = vpop.f32.mrb[14].mxu0  ;;  %815 = vmatprep.mubr.bf16.mxu1 %v548_v60 }
  0xff   : > { %v467_v2 = vadd.f32 %v466_v1, %v2235_v17  ;;  %v468_v3 = vpop.f32.mrb[15].mxu0  ;;  %816 = vmatmul.mubr.bf16.gmra.mrb[8].mxu1 %v547_v59  ;;  %v523_v5 = vmax.f32 %v463_v62, 0.0 }
 0x100   : > { %v469_v4 = vadd.f32 %v468_v3, %v2238_v18  ;;  %v524_v7 = vmax.f32 %v465_v0, 0.0 }
 0x101   : > { %v525_v6 = vmax.f32 %v467_v2, 0.0 }
 0x102   : > { %v526_v8 = vmax.f32 %v469_v4, 0.0 }
 0x103   : > { %v549_v9 = vpack.c.bf16 %v525_v6, %v523_v5 }
 0x104   : > { %v550_v10 = vpack.c.bf16 %v526_v8, %v524_v7  ;;  %v472_v11 = vpop.f32.mrb[16].mxu0  ;;  %v1948_v7 = vld [vmem:[%s2432_s5 + $0xe4] ss:$8 sps:$4 sm:$0xff]   ;;  %v1949_v8 = vld [vmem:[%s2432_s5 + $0xf0] ss:$8 sps:$4 sm:$0xff]  }
 0x105   : > { %v473_v12 = vadd.f32 %v472_v11, %v2235_v17  ;;  %v474_v13 = vpop.f32.mrb[17].mxu0  ;;  %1156 = vmatprep.subr.bf16.mxu0 %v1948_v7 }
 0x106   : > { %v475_v15 = vadd.f32 %v474_v13, %v2238_v18  ;;  %v476_v19 = vpop.f32.mrb[18].mxu0  ;;  %825 = vmatprep.mubr.bf16.mxu1 %v550_v10 }
 0x107   : > { %v477_v20 = vadd.f32 %v476_v19, %v2235_v17  ;;  %v478_v21 = vpop.f32.mrb[19].mxu0  ;;  %826 = vmatmul.mubr.bf16.gmra.mrb[12].mxu1 %v549_v9  ;;  %v527_v23 = vmax.f32 %v473_v12, 0.0  ;;  %v591_v9 = vld [vmem:[%s2431_s4] sm:$0x3] }
 0x108   : > { %v479_v22 = vadd.f32 %v478_v21, %v2238_v18  ;;  %v528_v25 = vmax.f32 %v475_v15, 0.0  ;;  %v2288_v10 = vrot.slane %v591_v9, %v2227_v14  ;;  %v2291_v11 = vrot.slane %v591_v9, %v2232_v16 }
 0x109   : > { %v529_v24 = vmax.f32 %v477_v20, 0.0 }
 0x10a   : > { %v530_v26 = vmax.f32 %v479_v22, 0.0 }
 0x10b   : > { %v551_v27 = vpack.c.bf16 %v529_v24, %v527_v23 }
 0x10c   : > { %v552_v28 = vpack.c.bf16 %v530_v26, %v528_v25  ;;  %v482_v29 = vpop.f32.mrb[20].mxu0 }
 0x10d   : > { %v483_v30 = vadd.f32 %v482_v29, %v2235_v17  ;;  %v484_v31 = vpop.f32.mrb[21].mxu0 }
 0x10e   : > { %v485_v32 = vadd.f32 %v484_v31, %v2238_v18  ;;  %v486_v33 = vpop.f32.mrb[22].mxu0  ;;  %835 = vmatprep.mubr.bf16.mxu1 %v552_v28 }
 0x10f   : > { %v487_v34 = vadd.f32 %v486_v33, %v2235_v17  ;;  %v488_v35 = vpop.f32.mrb[23].mxu0  ;;  %836 = vmatmul.mubr.bf16.gmra.mrb[16].mxu1 %v551_v27  ;;  %v531_v37 = vmax.f32 %v483_v30, 0.0 }
 0x110   : > { %v489_v36 = vadd.f32 %v488_v35, %v2238_v18  ;;  %v532_v39 = vmax.f32 %v485_v32, 0.0 }
 0x111   : > { %v533_v38 = vmax.f32 %v487_v34, 0.0 }
 0x112   : > { %v534_v40 = vmax.f32 %v489_v36, 0.0 }
 0x113   : > { %v553_v41 = vpack.c.bf16 %v533_v38, %v531_v37 }
 0x114   : > { %v554_v42 = vpack.c.bf16 %v534_v40, %v532_v39  ;;  %v492_v43 = vpop.f32.mrb[24].mxu0 }
 0x115   : > { %v493_v44 = vadd.f32 %v492_v43, %v2235_v17  ;;  %v494_v45 = vpop.f32.mrb[25].mxu0 }
 0x116   : > { %v495_v46 = vadd.f32 %v494_v45, %v2238_v18  ;;  %v496_v47 = vpop.f32.mrb[26].mxu0  ;;  %845 = vmatprep.mubr.bf16.mxu1 %v554_v42 }
 0x117   : > { %v497_v48 = vadd.f32 %v496_v47, %v2235_v17  ;;  %v498_v49 = vpop.f32.mrb[27].mxu0  ;;  %846 = vmatmul.mubr.bf16.gmra.mrb[20].mxu1 %v553_v41  ;;  %v535_v51 = vmax.f32 %v493_v44, 0.0 }
 0x118   : > { %v499_v50 = vadd.f32 %v498_v49, %v2238_v18  ;;  %v536_v53 = vmax.f32 %v495_v46, 0.0 }
 0x119   : > { %v537_v52 = vmax.f32 %v497_v48, 0.0 }
 0x11a   : > { %v538_v54 = vmax.f32 %v499_v50, 0.0 }
 0x11b   : > { %v555_v55 = vpack.c.bf16 %v537_v52, %v535_v51 }
 0x11c   : > { %v556_v56 = vpack.c.bf16 %v538_v54, %v536_v53  ;;  %v502_v57 = vpop.f32.mrb[28].mxu0 }
 0x11d   : > { %v503_v58 = vadd.f32 %v502_v57, %v2235_v17  ;;  %v504_v59 = vpop.f32.mrb[29].mxu0 }
 0x11e   : > { %v505_v60 = vadd.f32 %v504_v59, %v2238_v18  ;;  %v506_v61 = vpop.f32.mrb[30].mxu0  ;;  %855 = vmatprep.mubr.bf16.mxu1 %v556_v56 }
 0x11f   : > { %v507_v62 = vadd.f32 %v506_v61, %v2235_v17  ;;  %v508_v63 = vpop.f32.mrb[31].mxu0  ;;  %856 = vmatmul.mubr.bf16.gmra.mrb[24].mxu1 %v555_v55  ;;  %v539_v1 = vmax.f32 %v503_v58, 0.0  ;;  %v1946_v17 = vld [vmem:[%s2432_s5 + $0xe0] ss:$8 sps:$4 sm:$0xff]  }
 0x120   : > { %v509_v0 = vadd.f32 %v508_v63, %v2238_v18  ;;  %v540_v3 = vmax.f32 %v505_v60, 0.0  ;;  %1157 = vmatpush1.bf16.msra.mxu0 %v1946_v17  ;;  %v1951_v18 = vld [vmem:[%s2432_s5 + $0xf4] ss:$8 sps:$4 sm:$0xff]  }
 0x121   : > { %v541_v2 = vmax.f32 %v507_v62, 0.0  ;;  %1158 = vmatprep.subr.bf16.mxu0 %v1951_v18 }
 0x122   : > { %v542_v4 = vmax.f32 %v509_v0, 0.0 }
 0x123   : > { %v557_v5 = vpack.c.bf16 %v541_v2, %v539_v1 }
 0x124   : > { %v558_v6 = vpack.c.bf16 %v542_v4, %v540_v3  ;;  %1159 = vmatpush1.bf16.msra.mxu0 %v1949_v8 }
 0x126   : > { %865 = vmatprep.mubr.bf16.mxu1 %v558_v6 }
 0x127   : > { %866 = vmatmul.mubr.bf16.gmra.mrb[28].mxu1 %v557_v5 }
 0x1c2   : > { %v797_v12 = vpop.f32.mrb[0].mxu1 }
 0x1c3   : > { %v798_v13 = vadd.f32 %v797_v12, %v2288_v10  ;;  %v799_v15 = vpop.f32.mrb[1].mxu1 }
 0x1c4   : > { %v800_v19 = vadd.f32 %v799_v15, %v2291_v11  ;;  %v801_v20 = vpop.f32.mrb[2].mxu1 }
 0x1c5   : > { %v802_v21 = vadd.f32 %v801_v20, %v2288_v10  ;;  %v803_v22 = vpop.f32.mrb[3].mxu1  ;;  %v876_v24 = vmax.f32 %v798_v13, 0.0 }
 0x1c6   : > { %v804_v23 = vadd.f32 %v803_v22, %v2291_v11  ;;  %v877_v26 = vmax.f32 %v800_v19, 0.0 }
 0x1c7   : > { %v878_v25 = vmax.f32 %v802_v21, 0.0 }
 0x1c8   : > { %v879_v27 = vmax.f32 %v804_v23, 0.0 }
 0x1c9   : > { %v908_v28 = vpack.c.bf16 %v878_v25, %v876_v24 }
 0x1ca   : > { %v909_v29 = vpack.c.bf16 %v879_v27, %v877_v26  ;;  %v807_v30 = vpop.f32.mrb[4].mxu1 }
 0x1cb   : > { %v808_v31 = vadd.f32 %v807_v30, %v2288_v10  ;;  %v809_v32 = vpop.f32.mrb[5].mxu1 }
 0x1cc   : > { %v810_v33 = vadd.f32 %v809_v32, %v2291_v11  ;;  %v811_v34 = vpop.f32.mrb[6].mxu1  ;;  %1160 = vmatprep.mubr.bf16.mxu0 %v909_v29 }
 0x1cd   : > { %v812_v35 = vadd.f32 %v811_v34, %v2288_v10  ;;  %v813_v36 = vpop.f32.mrb[7].mxu1  ;;  %1161 = vmatmul.mubr.bf16.vlgmr.msra.gmra.mrb[32].mxu0 %v908_v28  ;;  %v880_v38 = vmax.f32 %v808_v31, 0.0 }
 0x1ce   : > { %v814_v37 = vadd.f32 %v813_v36, %v2291_v11  ;;  %v881_v40 = vmax.f32 %v810_v33, 0.0 }
 0x1cf   : > { %v882_v39 = vmax.f32 %v812_v35, 0.0 }
 0x1d0   : > { %v883_v41 = vmax.f32 %v814_v37, 0.0 }
 0x1d1   : > { %v910_v42 = vpack.c.bf16 %v882_v39, %v880_v38 }
 0x1d2   : > { %v911_v43 = vpack.c.bf16 %v883_v41, %v881_v40  ;;  %v817_v44 = vpop.f32.mrb[8].mxu1 }
 0x1d3   : > { %v818_v45 = vadd.f32 %v817_v44, %v2288_v10  ;;  %v819_v46 = vpop.f32.mrb[9].mxu1 }
 0x1d4   : > { %v820_v47 = vadd.f32 %v819_v46, %v2291_v11  ;;  %v821_v48 = vpop.f32.mrb[10].mxu1  ;;  %1170 = vmatprep.mubr.bf16.mxu0 %v911_v43 }
 0x1d5   : > { %v822_v49 = vadd.f32 %v821_v48, %v2288_v10  ;;  %v823_v50 = vpop.f32.mrb[11].mxu1  ;;  %1171 = vmatmul.mubr.bf16.gmra.mrb[36].mxu0 %v910_v42  ;;  %v884_v52 = vmax.f32 %v818_v45, 0.0 }
 0x1d6   : > { %v824_v51 = vadd.f32 %v823_v50, %v2291_v11  ;;  %v885_v54 = vmax.f32 %v820_v47, 0.0 }
 0x1d7   : > { %v886_v53 = vmax.f32 %v822_v49, 0.0 }
 0x1d8   : > { %v887_v55 = vmax.f32 %v824_v51, 0.0 }
 0x1d9   : > { %v912_v56 = vpack.c.bf16 %v886_v53, %v884_v52 }
 0x1da   : > { %v913_v57 = vpack.c.bf16 %v887_v55, %v885_v54  ;;  %v827_v58 = vpop.f32.mrb[12].mxu1 }
 0x1db   : > { %v828_v59 = vadd.f32 %v827_v58, %v2288_v10  ;;  %v829_v60 = vpop.f32.mrb[13].mxu1 }
 0x1dc   : > { %v830_v61 = vadd.f32 %v829_v60, %v2291_v11  ;;  %v831_v62 = vpop.f32.mrb[14].mxu1  ;;  %1180 = vmatprep.mubr.bf16.mxu0 %v913_v57 }
 0x1dd   : > { %v832_v63 = vadd.f32 %v831_v62, %v2288_v10  ;;  %v833_v0 = vpop.f32.mrb[15].mxu1  ;;  %1181 = vmatmul.mubr.bf16.gmra.mrb[40].mxu0 %v912_v56  ;;  %v888_v2 = vmax.f32 %v828_v59, 0.0 }
 0x1de   : > { %v834_v1 = vadd.f32 %v833_v0, %v2291_v11  ;;  %v889_v4 = vmax.f32 %v830_v61, 0.0 }
 0x1df   : > { %v890_v3 = vmax.f32 %v832_v63, 0.0 }
 0x1e0   : > { %v891_v5 = vmax.f32 %v834_v1, 0.0 }
 0x1e1   : > { %v914_v6 = vpack.c.bf16 %v890_v3, %v888_v2 }
 0x1e2   : > { %v915_v7 = vpack.c.bf16 %v891_v5, %v889_v4  ;;  %v837_v17 = vpop.f32.mrb[16].mxu1  ;;  %v956_v4 = vld [vmem:[%s2433_s6] sm:$0x3] }
 0x1e3   : > { %v838_v18 = vadd.f32 %v837_v17, %v2288_v10  ;;  %v839_v8 = vpop.f32.mrb[17].mxu1  ;;  %v2329_v5 = vrot.slane %v956_v4, %v2227_v14 }
 0x1e4   : > { %v840_v9 = vadd.f32 %v839_v8, %v2291_v11  ;;  %v841_v12 = vpop.f32.mrb[18].mxu1  ;;  %1190 = vmatprep.mubr.bf16.mxu0 %v915_v7 }
 0x1e5   : > { %v842_v13 = vadd.f32 %v841_v12, %v2288_v10  ;;  %v843_v15 = vpop.f32.mrb[19].mxu1  ;;  %1191 = vmatmul.mubr.bf16.gmra.mrb[44].mxu0 %v914_v6  ;;  %v892_v20 = vmax.f32 %v838_v18, 0.0 }
 0x1e6   : > { %v844_v19 = vadd.f32 %v843_v15, %v2291_v11  ;;  %v893_v22 = vmax.f32 %v840_v9, 0.0 }
 0x1e7   : > { %v894_v21 = vmax.f32 %v842_v13, 0.0 }
 0x1e8   : > { %v895_v23 = vmax.f32 %v844_v19, 0.0 }
 0x1e9   : > { %v916_v24 = vpack.c.bf16 %v894_v21, %v892_v20 }
 0x1ea   : > { %v917_v25 = vpack.c.bf16 %v895_v23, %v893_v22  ;;  %v847_v26 = vpop.f32.mrb[20].mxu1 }
 0x1eb   : > { %v848_v27 = vadd.f32 %v847_v26, %v2288_v10  ;;  %v849_v28 = vpop.f32.mrb[21].mxu1 }
 0x1ec   : > { %v850_v29 = vadd.f32 %v849_v28, %v2291_v11  ;;  %v851_v30 = vpop.f32.mrb[22].mxu1  ;;  %1200 = vmatprep.mubr.bf16.mxu0 %v917_v25 }
 0x1ed   : > { %v852_v31 = vadd.f32 %v851_v30, %v2288_v10  ;;  %v853_v32 = vpop.f32.mrb[23].mxu1  ;;  %1201 = vmatmul.mubr.bf16.gmra.mrb[48].mxu0 %v916_v24  ;;  %v896_v34 = vmax.f32 %v848_v27, 0.0 }
 0x1ee   : > { %v854_v33 = vadd.f32 %v853_v32, %v2291_v11  ;;  %v897_v36 = vmax.f32 %v850_v29, 0.0 }
 0x1ef   : > { %v898_v35 = vmax.f32 %v852_v31, 0.0 }
 0x1f0   : > { %v899_v37 = vmax.f32 %v854_v33, 0.0 }
 0x1f1   : > { %v918_v38 = vpack.c.bf16 %v898_v35, %v896_v34 }
 0x1f2   : > { %v919_v39 = vpack.c.bf16 %v899_v37, %v897_v36  ;;  %v857_v40 = vpop.f32.mrb[24].mxu1 }
 0x1f3   : > { %v858_v41 = vadd.f32 %v857_v40, %v2288_v10  ;;  %v859_v42 = vpop.f32.mrb[25].mxu1 }
 0x1f4   : > { %v860_v43 = vadd.f32 %v859_v42, %v2291_v11  ;;  %v861_v44 = vpop.f32.mrb[26].mxu1  ;;  %1210 = vmatprep.mubr.bf16.mxu0 %v919_v39 }
 0x1f5   : > { %v862_v45 = vadd.f32 %v861_v44, %v2288_v10  ;;  %v863_v46 = vpop.f32.mrb[27].mxu1  ;;  %1211 = vmatmul.mubr.bf16.gmra.mrb[52].mxu0 %v918_v38  ;;  %v900_v48 = vmax.f32 %v858_v41, 0.0 }
 0x1f6   : > { %v864_v47 = vadd.f32 %v863_v46, %v2291_v11  ;;  %v901_v50 = vmax.f32 %v860_v43, 0.0 }
 0x1f7   : > { %v902_v49 = vmax.f32 %v862_v45, 0.0 }
 0x1f8   : > { %v903_v51 = vmax.f32 %v864_v47, 0.0 }
 0x1f9   : > { %v920_v52 = vpack.c.bf16 %v902_v49, %v900_v48 }
 0x1fa   : > { %v921_v53 = vpack.c.bf16 %v903_v51, %v901_v50  ;;  %v867_v54 = vpop.f32.mrb[28].mxu1 }
 0x1fb   : > { %v868_v55 = vadd.f32 %v867_v54, %v2288_v10  ;;  %v869_v56 = vpop.f32.mrb[29].mxu1 }
 0x1fc   : > { %v870_v57 = vadd.f32 %v869_v56, %v2291_v11  ;;  %v871_v58 = vpop.f32.mrb[30].mxu1  ;;  %1220 = vmatprep.mubr.bf16.mxu0 %v921_v53 }
 0x1fd   : > { %v872_v59 = vadd.f32 %v871_v58, %v2288_v10  ;;  %v873_v60 = vpop.f32.mrb[31].mxu1  ;;  %1221 = vmatmul.mubr.bf16.gmra.mrb[56].mxu0 %v920_v52  ;;  %v904_v62 = vmax.f32 %v868_v55, 0.0  ;;  %v2332_v10 = vrot.slane %v956_v4, %v2232_v16 }
 0x1fe   : > { %v874_v61 = vadd.f32 %v873_v60, %v2291_v11  ;;  %v905_v0 = vmax.f32 %v870_v57, 0.0 }
 0x1ff   : > { %v906_v63 = vmax.f32 %v872_v59, 0.0 }
 0x200   : > { %v907_v1 = vmax.f32 %v874_v61, 0.0 }
 0x201   : > { %v922_v2 = vpack.c.bf16 %v906_v63, %v904_v62 }
 0x202   : > { %v923_v3 = vpack.c.bf16 %v907_v1, %v905_v0 }
 0x204   : > { %1230 = vmatprep.mubr.bf16.mxu0 %v923_v3 }
 0x205   : > { %1231 = vmatmul.mubr.bf16.gmra.mrb[60].mxu0 %v922_v2 }
 0x2a0   : > { %v1162_v6 = vpop.f32.mrb[32].mxu0 }
 0x2a1   : > { %v1163_v11 = vadd.f32 %v1162_v6, %v2329_v5  ;;  %v1164_v7 = vpop.f32.mrb[33].mxu0 }
 0x2a2   : > { %v1165_v17 = vadd.f32 %v1164_v7, %v2332_v10  ;;  %v1166_v18 = vpop.f32.mrb[34].mxu0 }
 0x2a3   : > { %v1241_v8 = vmax.f32 %v1163_v11, 0.0  ;;  %v1167_v9 = vadd.f32 %v1166_v18, %v2329_v5  ;;  %v1168_v12 = vpop.f32.mrb[35].mxu0 }
 0x2a4   : > { %v1242_v13 = vmax.f32 %v1165_v17, 0.0  ;;  %v1169_v15 = vadd.f32 %v1168_v12, %v2332_v10 }
 0x2a5   : > { %v1273_v19 = vrot.slane %v1241_v8, 4  ;;  %v1243_v14 = vmax.f32 %v1167_v9, 0.0 }
 0x2a6   : > { %v1279_v20 = vrot.slane %v1242_v13, 4  ;;  %v1244_v21 = vmax.f32 %v1169_v15, 0.0 }
 0x2a7   : > { %v1274_v16 = vmax.f32 %v1241_v8, %v1273_v19  ;;  %v1285_v22 = vrot.slane %v1243_v14, 4 }
 0x2a8   : > { %v1280_v23 = vmax.f32 %v1242_v13, %v1279_v20  ;;  %v1291_v24 = vrot.slane %v1244_v21, 4  ;;  %v1172_v25 = vpop.f32.mrb[36].mxu0 }
 0x2a9   : > { %v1275_v26 = vrot.slane %v1274_v16, 2  ;;  %v1286_v27 = vmax.f32 %v1243_v14, %v1285_v22  ;;  %v1173_v28 = vadd.f32 %v1172_v25, %v2329_v5  ;;  %v1174_v29 = vpop.f32.mrb[37].mxu0 }
 0x2aa   : > { %v1281_v30 = vrot.slane %v1280_v23, 2  ;;  %v1292_v31 = vmax.f32 %v1244_v21, %v1291_v24  ;;  %v1175_v32 = vadd.f32 %v1174_v29, %v2332_v10  ;;  %v1176_v33 = vpop.f32.mrb[38].mxu0 }
 0x2ab   : > { %v1276_v34 = vmax.f32 %v1274_v16, %v1275_v26  ;;  %v1287_v35 = vrot.slane %v1286_v27, 2  ;;  %v1245_v36 = vmax.f32 %v1173_v28, 0.0  ;;  %v1177_v37 = vadd.f32 %v1176_v33, %v2329_v5  ;;  %v1178_v38 = vpop.f32.mrb[39].mxu0 }
 0x2ac   : > { %v1282_v39 = vmax.f32 %v1280_v23, %v1281_v30  ;;  %v1293_v40 = vrot.slane %v1292_v31, 2  ;;  %v1246_v41 = vmax.f32 %v1175_v32, 0.0  ;;  %v1179_v42 = vadd.f32 %v1178_v38, %v2332_v10 }
 0x2ad   : > { %v1277_v43 = vrot.slane %v1276_v34, 1  ;;  %v1288_v44 = vmax.f32 %v1286_v27, %v1287_v35  ;;  %v1297_v45 = vrot.slane %v1245_v36, 4  ;;  %v1247_v46 = vmax.f32 %v1177_v37, 0.0 }
 0x2ae   : > { %v1283_v47 = vrot.slane %v1282_v39, 1  ;;  %v1294_v48 = vmax.f32 %v1292_v31, %v1293_v40  ;;  %v1303_v49 = vrot.slane %v1246_v41, 4  ;;  %v1248_v50 = vmax.f32 %v1179_v42, 0.0 }
 0x2af   : > { %v1278_v51 = vmax.f32 %v1276_v34, %v1277_v43  ;;  %v1289_v52 = vrot.slane %v1288_v44, 1  ;;  %v1298_v53 = vmax.f32 %v1245_v36, %v1297_v45  ;;  %v1309_v54 = vrot.slane %v1247_v46, 4 }
 0x2b0   : > { %v1284_v55 = vmax.f32 %v1282_v39, %v1283_v47  ;;  %v1295_v56 = vrot.slane %v1294_v48, 1  ;;  %v1304_v57 = vmax.f32 %v1246_v41, %v1303_v49  ;;  %v1315_v58 = vrot.slane %v1248_v50, 4  ;;  %v1182_v59 = vpop.f32.mrb[40].mxu0 }
 0x2b1   : > { %v1290_v60 = vmax.f32 %v1288_v44, %v1289_v52  ;;  %v1299_v61 = vrot.slane %v1298_v53, 2  ;;  %v1310_v62 = vmax.f32 %v1247_v46, %v1309_v54  ;;  %v1183_v63 = vadd.f32 %v1182_v59, %v2329_v5  ;;  %v1184_v0 = vpop.f32.mrb[41].mxu0 }
 0x2b2   : > { %v1819_v1 = vpack.c.bf16 %v1284_v55, %v1278_v51  ;;  %v1296_v2 = vmax.f32 %v1294_v48, %v1295_v56  ;;  %v1305_v3 = vrot.slane %v1304_v57, 2  ;;  %v1316_v4 = vmax.f32 %v1248_v50, %v1315_v58  ;;  %v1186_v6 = vpop.f32.mrb[42].mxu0 }
 0x2b3   : > { %v1300_v11 = vmax.f32 %v1298_v53, %v1299_v61  ;;  %v1311_v7 = vrot.slane %v1310_v62, 2  ;;  %v1249_v17 = vmax.f32 %v1183_v63, 0.0  ;;  %v1185_v18 = vadd.f32 %v1184_v0, %v2332_v10  ;;  %v1188_v8 = vpop.f32.mrb[43].mxu0 }
 0x2b4   : > { %v1577_v9 = vunpack.c.l.b16 %v1819_v1  ;;  %v1578_v12 = vunpack.c.h.b16 %v1819_v1  ;;  %v1820_v13 = vpack.c.bf16 %v1296_v2, %v1290_v60  ;;  %v1306_v15 = vmax.f32 %v1304_v57, %v1305_v3 }
 0x2b5   : > { %v1301_v19 = vrot.slane %v1300_v11, 1  ;;  %v1312_v14 = vmax.f32 %v1310_v62, %v1311_v7  ;;  %v1317_v20 = vrot.slane %v1316_v4, 2  ;;  %v1321_v21 = vrot.slane %v1249_v17, 4 }
 0x2b6   : > { %v1579_v16 = vunpack.c.l.b16 %v1820_v13  ;;  %v1580_v22 = vunpack.c.h.b16 %v1820_v13  ;;  %v1307_v23 = vrot.slane %v1306_v15, 1  ;;  %v1250_v24 = vmax.f32 %v1185_v18, 0.0 }
 0x2b7   : > { %v1302_v25 = vmax.f32 %v1300_v11, %v1301_v19  ;;  %v1313_v26 = vrot.slane %v1312_v14, 1  ;;  %v1318_v27 = vmax.f32 %v1316_v4, %v1317_v20  ;;  %v1322_v28 = vmax.f32 %v1249_v17, %v1321_v21 }
 0x2b8   : > { %v1610_v29 = vsel %vm1609_vm3, %v1579_v16, %v1577_v9  ;;  %v1623_v30 = vsel %vm1609_vm3, %v1580_v22, %v1578_v12  ;;  %v1308_v31 = vmax.f32 %v1306_v15, %v1307_v23  ;;  %v1327_v32 = vrot.slane %v1250_v24, 4  ;;  %v1192_v33 = vpop.f32.mrb[44].mxu0 }
 0x2b9   : > { %v1314_v34 = vmax.f32 %v1312_v14, %v1313_v26  ;;  %v1319_v35 = vrot.slane %v1318_v27, 1  ;;  %v1323_v36 = vrot.slane %v1322_v28, 2  ;;  %v1187_v37 = vadd.f32 %v1186_v6, %v2329_v5  ;;  %v1194_v38 = vpop.f32.mrb[45].mxu0 }
 0x2ba   : > { %v1821_v39 = vpack.c.bf16 %v1308_v31, %v1302_v25  ;;  %v1328_v40 = vmax.f32 %v1250_v24, %v1327_v32  ;;  %v1189_v41 = vadd.f32 %v1188_v8, %v2332_v10  ;;  %v1193_v42 = vadd.f32 %v1192_v33, %v2329_v5  ;;  %v1196_v43 = vpop.f32.mrb[46].mxu0 }
 0x2bb   : > { %v1320_v44 = vmax.f32 %v1318_v27, %v1319_v35  ;;  %v1324_v45 = vmax.f32 %v1322_v28, %v1323_v36  ;;  %v1251_v46 = vmax.f32 %v1187_v37, 0.0  ;;  %v1195_v47 = vadd.f32 %v1194_v38, %v2332_v10  ;;  %v1198_v48 = vpop.f32.mrb[47].mxu0 }
 0x2bc   : > { %v1581_v49 = vunpack.c.l.b16 %v1821_v39  ;;  %v1582_v50 = vunpack.c.h.b16 %v1821_v39  ;;  %v1329_v51 = vrot.slane %v1328_v40, 2  ;;  %v1252_v52 = vmax.f32 %v1189_v41, 0.0 }
 0x2bd   : > { %v1822_v53 = vpack.c.bf16 %v1320_v44, %v1314_v34  ;;  %v1325_v54 = vrot.slane %v1324_v45, 1  ;;  %v1333_v55 = vrot.slane %v1251_v46, 4  ;;  %v1253_v56 = vmax.f32 %v1193_v42, 0.0 }
 0x2be   : > { %v1612_v57 = vsel %vm1611_vm4, %v1581_v49, %v1610_v29  ;;  %v1624_v58 = vsel %vm1611_vm4, %v1582_v50, %v1623_v30  ;;  %v1330_v59 = vmax.f32 %v1328_v40, %v1329_v51  ;;  %v1339_v60 = vrot.slane %v1252_v52, 4 }
 0x2bf   : > { %v1583_v61 = vunpack.c.l.b16 %v1822_v53  ;;  %v1584_v62 = vunpack.c.h.b16 %v1822_v53  ;;  %v1326_v63 = vmax.f32 %v1324_v45, %v1325_v54  ;;  %v1334_v0 = vmax.f32 %v1251_v46, %v1333_v55 }
 0x2c0   : > { %v1331_v1 = vrot.slane %v1330_v59, 1  ;;  %v1340_v2 = vmax.f32 %v1252_v52, %v1339_v60  ;;  %v1345_v3 = vrot.slane %v1253_v56, 4  ;;  %v1254_v4 = vmax.f32 %v1195_v47, 0.0  ;;  %v1202_v6 = vpop.f32.mrb[48].mxu0 }
 0x2c1   : > { %v1614_v11 = vsel %vm1613_vm5, %v1583_v61, %v1612_v57  ;;  %v1625_v7 = vsel %vm1613_vm5, %v1584_v62, %v1624_v58  ;;  %v1335_v17 = vrot.slane %v1334_v0, 2  ;;  %v1197_v18 = vadd.f32 %v1196_v43, %v2329_v5  ;;  %v1204_v8 = vpop.f32.mrb[49].mxu0 }
 0x2c2   : > { %v1332_v9 = vmax.f32 %v1330_v59, %v1331_v1  ;;  %v1341_v12 = vrot.slane %v1340_v2, 2  ;;  %v1346_v13 = vmax.f32 %v1253_v56, %v1345_v3  ;;  %v1351_v15 = vrot.slane %v1254_v4, 4  ;;  %v1206_v19 = vpop.f32.mrb[50].mxu0 }
 0x2c3   : > { %v1336_v14 = vmax.f32 %v1334_v0, %v1335_v17  ;;  %v1255_v20 = vmax.f32 %v1197_v18, 0.0  ;;  %v1199_v21 = vadd.f32 %v1198_v48, %v2332_v10  ;;  %v1203_v16 = vadd.f32 %v1202_v6, %v2329_v5  ;;  %v1208_v22 = vpop.f32.mrb[51].mxu0 }
 0x2c4   : > { %v1823_v23 = vpack.c.bf16 %v1332_v9, %v1326_v63  ;;  %v1342_v24 = vmax.f32 %v1340_v2, %v1341_v12  ;;  %v1347_v25 = vrot.slane %v1346_v13, 2  ;;  %v1352_v26 = vmax.f32 %v1254_v4, %v1351_v15 }
 0x2c5   : > { %v1337_v27 = vrot.slane %v1336_v14, 1  ;;  %v1357_v28 = vrot.slane %v1255_v20, 4  ;;  %v1256_v29 = vmax.f32 %v1199_v21, 0.0  ;;  %v1257_v30 = vmax.f32 %v1203_v16, 0.0 }
 0x2c6   : > { %v1585_v31 = vunpack.c.l.b16 %v1823_v23  ;;  %v1586_v32 = vunpack.c.h.b16 %v1823_v23  ;;  %v1343_v33 = vrot.slane %v1342_v24, 1  ;;  %v1348_v34 = vmax.f32 %v1346_v13, %v1347_v25 }
 0x2c7   : > { %v1338_v35 = vmax.f32 %v1336_v14, %v1337_v27  ;;  %v1353_v36 = vrot.slane %v1352_v26, 2  ;;  %v1358_v37 = vmax.f32 %v1255_v20, %v1357_v28  ;;  %v1363_v38 = vrot.slane %v1256_v29, 4 }
 0x2c8   : > { %v1616_v39 = vsel %vm1615_vm6, %v1585_v31, %v1614_v11  ;;  %v1626_v40 = vsel %vm1615_vm6, %v1586_v32, %v1625_v7  ;;  %v1344_v41 = vmax.f32 %v1342_v24, %v1343_v33  ;;  %v1349_v42 = vrot.slane %v1348_v34, 1  ;;  %v1212_v43 = vpop.f32.mrb[52].mxu0 }
 0x2c9   : > { %v1354_v44 = vmax.f32 %v1352_v26, %v1353_v36  ;;  %v1359_v45 = vrot.slane %v1358_v37, 2  ;;  %v1364_v46 = vmax.f32 %v1256_v29, %v1363_v38  ;;  %v1369_v47 = vrot.slane %v1257_v30, 4  ;;  %v1214_v48 = vpop.f32.mrb[53].mxu0 }
 0x2ca   : > { %v1824_v49 = vpack.c.bf16 %v1344_v41, %v1338_v35  ;;  %v1350_v50 = vmax.f32 %v1348_v34, %v1349_v42  ;;  %v1205_v51 = vadd.f32 %v1204_v8, %v2332_v10  ;;  %v1207_v52 = vadd.f32 %v1206_v19, %v2329_v5  ;;  %v1216_v53 = vpop.f32.mrb[54].mxu0 }
 0x2cb   : > { %v1355_v54 = vrot.slane %v1354_v44, 1  ;;  %v1360_v55 = vmax.f32 %v1358_v37, %v1359_v45  ;;  %v1365_v56 = vrot.slane %v1364_v46, 2  ;;  %v1370_v57 = vmax.f32 %v1257_v30, %v1369_v47  ;;  %v2365_v58 = vpop.f32.mrb[55].mxu0 }
 0x2cc   : > { %v1587_v59 = vunpack.c.l.b16 %v1824_v49  ;;  %v1588_v60 = vunpack.c.h.b16 %v1824_v49  ;;  %v1258_v61 = vmax.f32 %v1205_v51, 0.0  ;;  %v1259_v62 = vmax.f32 %v1207_v52, 0.0 }
 0x2cd   : > { %v1356_v63 = vmax.f32 %v1354_v44, %v1355_v54  ;;  %v1361_v0 = vrot.slane %v1360_v55, 1  ;;  %v1366_v1 = vmax.f32 %v1364_v46, %v1365_v56  ;;  %v1371_v2 = vrot.slane %v1370_v57, 2 }
 0x2ce   : > { %v1618_v3 = vsel %vm1617_vm7, %v1587_v59, %v1616_v39  ;;  %v1627_v4 = vsel %vm1617_vm7, %v1588_v60, %v1626_v40  ;;  %v1375_v6 = vrot.slane %v1258_v61, 4  ;;  %v1381_v11 = vrot.slane %v1259_v62, 4 }
 0x2cf   : > { %v1825_v7 = vpack.c.bf16 %v1356_v63, %v1350_v50  ;;  %v1362_v17 = vmax.f32 %v1360_v55, %v1361_v0  ;;  %v1367_v18 = vrot.slane %v1366_v1, 1  ;;  %v1372_v8 = vmax.f32 %v1370_v57, %v1371_v2 }
 0x2d0   : > { %v1376_v9 = vmax.f32 %v1258_v61, %v1375_v6  ;;  %v1382_v12 = vmax.f32 %v1259_v62, %v1381_v11  ;;  %v1209_v13 = vadd.f32 %v1208_v22, %v2332_v10  ;;  %v1213_v15 = vadd.f32 %v1212_v43, %v2329_v5  ;;  %v1222_v19 = vpop.f32.mrb[56].mxu0 }
 0x2d1   : > { %v1589_v14 = vunpack.c.l.b16 %v1825_v7  ;;  %v1590_v20 = vunpack.c.h.b16 %v1825_v7  ;;  %v1368_v21 = vmax.f32 %v1366_v1, %v1367_v18  ;;  %v1373_v16 = vrot.slane %v1372_v8, 1  ;;  %v1224_v23 = vpop.f32.mrb[57].mxu0 }
 0x2d2   : > { %v1377_v24 = vrot.slane %v1376_v9, 2  ;;  %v1383_v25 = vrot.slane %v1382_v12, 2  ;;  %v1260_v26 = vmax.f32 %v1209_v13, 0.0  ;;  %v1261_v27 = vmax.f32 %v1213_v15, 0.0  ;;  %v1226_v28 = vpop.f32.mrb[58].mxu0 }
 0x2d3   : > { %v1620_v29 = vsel %vm1619_vm8, %v1589_v14, %v1618_v3  ;;  %v1628_v30 = vsel %vm1619_vm8, %v1590_v20, %v1627_v4  ;;  %v1826_v31 = vpack.c.bf16 %v1368_v21, %v1362_v17  ;;  %v1374_v22 = vmax.f32 %v1372_v8, %v1373_v16  ;;  %v2379_v32 = vpop.f32.mrb[59].mxu0 }
 0x2d4   : > { %v1378_v33 = vmax.f32 %v1376_v9, %v1377_v24  ;;  %v1384_v34 = vmax.f32 %v1382_v12, %v1383_v25  ;;  %v1387_v35 = vrot.slane %v1260_v26, 4  ;;  %v1393_v36 = vrot.slane %v1261_v27, 4 }
 0x2d5   : > { %v1591_v37 = vunpack.c.l.b16 %v1826_v31  ;;  %v1592_v38 = vunpack.c.h.b16 %v1826_v31  ;;  %v1215_v39 = vadd.f32 %v1214_v48, %v2332_v10  ;;  %v1217_v40 = vadd.f32 %v1216_v53, %v2329_v5 }
 0x2d6   : > { %v1379_v41 = vrot.slane %v1378_v33, 1  ;;  %v1385_v42 = vrot.slane %v1384_v34, 1  ;;  %v1388_v43 = vmax.f32 %v1260_v26, %v1387_v35  ;;  %v1394_v44 = vmax.f32 %v1261_v27, %v1393_v36 }
 0x2d7   : > { %v1622_v45 = vsel %vm1621_vm9, %v1591_v37, %v1620_v29  ;;  %v1629_v46 = vsel %vm1621_vm9, %v1592_v38, %v1628_v30  ;;  %v1262_v47 = vmax.f32 %v1215_v39, 0.0  ;;  %v1263_v49 = vmax.f32 %v1217_v40, 0.0 }
 0x2d8   : > { %v1644_v50 = vpack.c.b16 %v1629_v46, %v1622_v45  ;;  %v1380_v48 = vmax.f32 %v1378_v33, %v1379_v41  ;;  %v1386_v51 = vmax.f32 %v1384_v34, %v1385_v42  ;;  %v1389_v52 = vrot.slane %v1388_v43, 2  ;;  %v1232_v53 = vpop.f32.mrb[60].mxu0 }
 0x2d9   : > { %v1395_v54 = vrot.slane %v1394_v44, 2  ;;  %v1399_v55 = vrot.slane %v1262_v47, 4  ;;  %v1405_v56 = vrot.slane %v1263_v49, 4  ;;  %v1219_v57 = vadd.f32 %v2365_v58, %v2332_v10  ;;  %v1234_v59 = vpop.f32.mrb[61].mxu0 }
 0x2da   : > { %1648 = vst [vmem:[%s2387_s27] sm:$0xff] %v1644_v50  ;;  %v1827_v60 = vpack.c.bf16 %v1380_v48, %v1374_v22  ;;  %v1390_v61 = vmax.f32 %v1388_v43, %v1389_v52  ;;  %v1223_v62 = vadd.f32 %v1222_v19, %v2329_v5  ;;  %v1225_v63 = vadd.f32 %v1224_v23, %v2332_v10  ;;  %v2396_v0 = vpop.f32.mrb[62].mxu0 }
 0x2db   : > { %v1396_v1 = vmax.f32 %v1394_v44, %v1395_v54  ;;  %v1400_v2 = vmax.f32 %v1262_v47, %v1399_v55  ;;  %v1406_v3 = vmax.f32 %v1263_v49, %v1405_v56  ;;  %v1264_v4 = vmax.f32 %v1219_v57, 0.0  ;;  %v2398_v6 = vpop.f32.mrb[63].mxu0 }
 0x2dc   : > { %v1593_v11 = vunpack.c.l.b16 %v1827_v60  ;;  %v1594_v7 = vunpack.c.h.b16 %v1827_v60  ;;  %v1391_v17 = vrot.slane %v1390_v61, 1  ;;  %v1265_v58 = vmax.f32 %v1223_v62, 0.0 }
 0x2dd   : > { %v1397_v18 = vrot.slane %v1396_v1, 1  ;;  %v1401_v8 = vrot.slane %v1400_v2, 2  ;;  %v1407_v9 = vrot.slane %v1406_v3, 2  ;;  %v1411_v12 = vrot.slane %v1264_v4, 4 }
 0x2de   : > { %v1392_v13 = vmax.f32 %v1390_v61, %v1391_v17  ;;  %v1417_v15 = vrot.slane %v1265_v58, 4  ;;  %v1266_v19 = vmax.f32 %v1225_v63, 0.0  ;;  %v1227_v14 = vadd.f32 %v1226_v28, %v2329_v5 }
 0x2df   : > { %v1398_v20 = vmax.f32 %v1396_v1, %v1397_v18  ;;  %v1402_v21 = vmax.f32 %v1400_v2, %v1401_v8  ;;  %v1408_v16 = vmax.f32 %v1406_v3, %v1407_v9  ;;  %v1412_v23 = vmax.f32 %v1264_v4, %v1411_v12 }
 0x2e0   : > { %v1828_v24 = vpack.c.bf16 %v1392_v13, %v1386_v51  ;;  %v1418_v25 = vmax.f32 %v1265_v58, %v1417_v15  ;;  %v1423_v26 = vrot.slane %v1266_v19, 4  ;;  %v1267_v27 = vmax.f32 %v1227_v14, 0.0 }
 0x2e1   : > { %v1403_v29 = vrot.slane %v1402_v21, 1  ;;  %v1409_v30 = vrot.slane %v1408_v16, 1  ;;  %v1413_v31 = vrot.slane %v1412_v23, 2  ;;  %v1229_v22 = vadd.f32 %v2379_v32, %v2332_v10 }
 0x2e2   : > { %v1595_v33 = vunpack.c.l.b16 %v1828_v24  ;;  %v1596_v34 = vunpack.c.h.b16 %v1828_v24  ;;  %v1419_v35 = vrot.slane %v1418_v25, 2  ;;  %v1424_v36 = vmax.f32 %v1266_v19, %v1423_v26 }
 0x2e3   : > { %v1404_v37 = vmax.f32 %v1402_v21, %v1403_v29  ;;  %v1410_v28 = vmax.f32 %v1408_v16, %v1409_v30  ;;  %v1414_v38 = vmax.f32 %v1412_v23, %v1413_v31  ;;  %v1429_v39 = vrot.slane %v1267_v27, 4 }
 0x2e4   : > { %v1630_v40 = vsel %vm1609_vm3, %v1595_v33, %v1593_v11  ;;  %v1637_v41 = vsel %vm1609_vm3, %v1596_v34, %v1594_v7  ;;  %v1420_v42 = vmax.f32 %v1418_v25, %v1419_v35  ;;  %v1425_v43 = vrot.slane %v1424_v36, 2 }
 0x2e5   : > { %v1829_v44 = vpack.c.bf16 %v1404_v37, %v1398_v20  ;;  %v1415_v45 = vrot.slane %v1414_v38, 1  ;;  %v1430_v46 = vmax.f32 %v1267_v27, %v1429_v39  ;;  %v1268_v47 = vmax.f32 %v1229_v22, 0.0 }
 0x2e6   : > { %v1421_v49 = vrot.slane %v1420_v42, 1  ;;  %v1426_v32 = vmax.f32 %v1424_v36, %v1425_v43  ;;  %v1233_v50 = vadd.f32 %v1232_v53, %v2329_v5  ;;  %v1235_v48 = vadd.f32 %v1234_v59, %v2332_v10 }
 0x2e7   : > { %v1597_v51 = vunpack.c.l.b16 %v1829_v44  ;;  %v1598_v52 = vunpack.c.h.b16 %v1829_v44  ;;  %v1416_v54 = vmax.f32 %v1414_v38, %v1415_v45  ;;  %v1431_v55 = vrot.slane %v1430_v46, 2 }
 0x2e8   : > { %v1422_v56 = vmax.f32 %v1420_v42, %v1421_v49  ;;  %v1427_v57 = vrot.slane %v1426_v32, 1  ;;  %v1435_v60 = vrot.slane %v1268_v47, 4  ;;  %v1269_v61 = vmax.f32 %v1233_v50, 0.0 }
 0x2e9   : > { %v1631_v62 = vsel %vm1611_vm4, %v1597_v51, %v1630_v40  ;;  %v1638_v63 = vsel %vm1611_vm4, %v1598_v52, %v1637_v41  ;;  %v1830_v1 = vpack.c.bf16 %v1416_v54, %v1410_v28  ;;  %v1432_v2 = vmax.f32 %v1430_v46, %v1431_v55 }
 0x2ea   : > { %v1428_v3 = vmax.f32 %v1426_v32, %v1427_v57  ;;  %v1436_v4 = vmax.f32 %v1268_v47, %v1435_v60  ;;  %v1441_v11 = vrot.slane %v1269_v61, 4  ;;  %v1270_v53 = vmax.f32 %v1235_v48, 0.0 }
 0x2eb   : > { %v1599_v7 = vunpack.c.l.b16 %v1830_v1  ;;  %v1600_v59 = vunpack.c.h.b16 %v1830_v1  ;;  %v1433_v17 = vrot.slane %v1432_v2, 1  ;;  %v1237_v58 = vadd.f32 %v2396_v0, %v2329_v5 }
 0x2ec   : > { %v1831_v18 = vpack.c.bf16 %v1428_v3, %v1422_v56  ;;  %v1437_v8 = vrot.slane %v1436_v4, 2  ;;  %v1442_v9 = vmax.f32 %v1269_v61, %v1441_v11  ;;  %v1447_v12 = vrot.slane %v1270_v53, 4 }
 0x2ed   : > { %v1632_v13 = vsel %vm1613_vm5, %v1599_v7, %v1631_v62  ;;  %v1639_v15 = vsel %vm1613_vm5, %v1600_v59, %v1638_v63  ;;  %v1271_v19 = vmax.f32 %v1237_v58, 0.0  ;;  %v1434_v23 = vmax.f32 %v1432_v2, %v1433_v17 }
 0x2ee   : > { %v1601_v14 = vunpack.c.l.b16 %v1831_v18  ;;  %v1602_v20 = vunpack.c.h.b16 %v1831_v18  ;;  %v1438_v21 = vmax.f32 %v1436_v4, %v1437_v8  ;;  %v1443_v16 = vrot.slane %v1442_v9, 2 }
 0x2ef   : > { %v1448_v24 = vmax.f32 %v1270_v53, %v1447_v12  ;;  %v1453_v25 = vrot.slane %v1271_v19, 4  ;;  %v1239_v26 = vadd.f32 %v2398_v6, %v2332_v10 }
 0x2f0   : > { %v1633_v5 = vsel %vm1615_vm6, %v1601_v14, %v1632_v13  ;;  %v1640_v0 = vsel %vm1615_vm6, %v1602_v20, %v1639_v15  ;;  %v1439_v27 = vrot.slane %v1438_v21, 1  ;;  %v1444_v29 = vmax.f32 %v1442_v9, %v1443_v16 }
 0x2f1   : > { %v1449_v30 = vrot.slane %v1448_v24, 2  ;;  %v1454_v31 = vmax.f32 %v1271_v19, %v1453_v25  ;;  %v1272_v22 = vmax.f32 %v1239_v26, 0.0 }
 0x2f2   : > { %v1440_v33 = vmax.f32 %v1438_v21, %v1439_v27  ;;  %v1445_v34 = vrot.slane %v1444_v29, 1 }
 0x2f3   : > { %v1450_v35 = vmax.f32 %v1448_v24, %v1449_v30  ;;  %v1455_v36 = vrot.slane %v1454_v31, 2  ;;  %v1459_v37 = vrot.slane %v1272_v22, 4 }
 0x2f4   : > { %v1832_v28 = vpack.c.bf16 %v1440_v33, %v1434_v23  ;;  %v1446_v38 = vmax.f32 %v1444_v29, %v1445_v34 }
 0x2f5   : > { %v1451_v39 = vrot.slane %v1450_v35, 1  ;;  %v1456_v40 = vmax.f32 %v1454_v31, %v1455_v36  ;;  %v1460_v41 = vmax.f32 %v1272_v22, %v1459_v37 }
 0x2f6   : > { %v1603_v10 = vunpack.c.l.b16 %v1832_v28  ;;  %v1604_v6 = vunpack.c.h.b16 %v1832_v28 }
 0x2f7   : > { %v1452_v42 = vmax.f32 %v1450_v35, %v1451_v39  ;;  %v1457_v43 = vrot.slane %v1456_v40, 1  ;;  %v1461_v44 = vrot.slane %v1460_v41, 2 }
 0x2f8   : > { %v1634_v45 = vsel %vm1617_vm7, %v1603_v10, %v1633_v5  ;;  %v1641_v46 = vsel %vm1617_vm7, %v1604_v6, %v1640_v0 }
 0x2f9   : > { %v1833_v47 = vpack.c.bf16 %v1452_v42, %v1446_v38  ;;  %v1462_v49 = vmax.f32 %v1460_v41, %v1461_v44  ;;  %v1458_v48 = vmax.f32 %v1456_v40, %v1457_v43 }
 0x2fb   : > { %v1605_v32 = vunpack.c.l.b16 %v1833_v47  ;;  %v1606_v50 = vunpack.c.h.b16 %v1833_v47  ;;  %v1463_v51 = vrot.slane %v1462_v49, 1 }
 0x2fd   : > { %v1635_v52 = vsel %vm1619_vm8, %v1605_v32, %v1634_v45  ;;  %v1642_v54 = vsel %vm1619_vm8, %v1606_v50, %v1641_v46  ;;  %v1464_v55 = vmax.f32 %v1462_v49, %v1463_v51 }
 0x2ff   : > { %v1834_v56 = vpack.c.bf16 %v1464_v55, %v1458_v48 }
 0x301   : > { %v1607_v57 = vunpack.c.l.b16 %v1834_v56  ;;  %v1608_v60 = vunpack.c.h.b16 %v1834_v56 }
 0x303   : > { %v1636_v61 = vsel %vm1621_vm9, %v1607_v57, %v1635_v52  ;;  %v1643_v62 = vsel %vm1621_vm9, %v1608_v60, %v1642_v54 }
 0x304   : > { %v1645_v63 = vpack.c.b16 %v1643_v62, %v1636_v61 }
 0x306   : > { %1649 = vst [vmem:[%s2387_s27 + $0x8] sm:$0xff] %v1645_v63 }
 0x307 PF: > { %s17_s24 = sadd.s32 1, %s1958_s24  }
 0x308   : > { %p14_p5 = scmp.ge.s32.totalorder %s17_s24, 4  }
 0x30a   :  { %16 = sbr.rel (!%p14_p5) target bundleno = 1 (0x1), region = 78 }

// kernel: candidate_vote_forward.3
= control target key start
LH: loop header
LB: loop body
LE: loop exit
PB: predicated region body
PF: predicated region fallthrough
CT: control target
= control target key end

     0   :  { %s4504_s25 = smov 0   ;;  %s5695_s0 = inlined_call_operand.vmem [shape: bf16[128,262], index: 0, kind: input, shape index: {}]   ;;  %s5696_s1 = inlined_call_operand.vmem [shape: bf16[262,256], index: 1, kind: input, shape index: {}]   ;;  %s5697_s2 = inlined_call_operand.vmem [shape: f32[1,256], index: 2, kind: input, shape index: {}]   ;;  %s5698_s3 = inlined_call_operand.vmem [shape: bf16[256,256], index: 3, kind: input, shape index: {}]   ;;  %s5699_s4 = inlined_call_operand.vmem [shape: f32[1,256], index: 4, kind: input, shape index: {}]   ;;  %s5700_s5 = inlined_call_operand.vmem [shape: bf16[256,768], index: 5, kind: input, shape index: {}]   ;;  %s5701_s6 = inlined_call_operand.vmem [shape: f32[1,768], index: 6, kind: input, shape index: {}]   ;;  %s5702_s7 = inlined_call_operand.vmem [shape: bf16[256,256], index: 7, kind: input, shape index: {}]   ;;  %s5703_s8 = inlined_call_operand.vmem [shape: f32[1,256], index: 8, kind: input, shape index: {}]   ;;  %s5704_s9 = inlined_call_operand.vmem [shape: bf16[256,256], index: 9, kind: input, shape index: {}]   ;;  %s5705_s10 = inlined_call_operand.vmem [shape: f32[1,256], index: 10, kind: input, shape index: {}]   ;;  %s5706_s11 = inlined_call_operand.vmem [shape: bf16[768,128], index: 11, kind: input, shape index: {}]   ;;  %s5707_s12 = inlined_call_operand.vmem [shape: f32[1,128], index: 12, kind: input, shape index: {}]   ;;  %s5708_s13 = inlined_call_operand.vmem [shape: f32[128,128], index: 13, kind: output, shape index: {}]  }
   0x1 LB: > { %s3502_s26 = sadd.s32 4294967295, %s4431_s25   ;;  %p3506_p0 = scmp.ge.s32.totalorder %s4431_s25, 1  ;;  %s4431_s25 = sphi %s4504_s25, %s23_s25  }
   0x2   : > { %p389_p1 = scmp.lt.s32.totalorder %s4431_s25, 3 }
   0x4   : > { %p390_p2 = pnand %p3506_p0, %p389_p1 }
   0x5   : > { %v3975_v0 = vld [vmem:[%s5696_s1 + $0x4] ss:$8 sps:$4 sm:$0xff] (!%p390_p2)   ;;  %v3977_v1 = vld [vmem:[%s5696_s1] ss:$8 sps:$4 sm:$0xff] (!%p390_p2)   ;;  %v3978_v2 = vld [vmem:[%s5696_s1 + $0x14] ss:$8 sps:$4 sm:$0xff] (!%p390_p2)  }
   0x6   : > { %393 = sbr.rel (%p390_p2) target bundleno = 1460 (0x5b4), region = 72  ;;  %754 = vmatprep.subr.bf16.mxu0 (!%p390_p2), %v3975_v0  ;;  %v3980_v3 = vld [vmem:[%s5696_s1 + $0x10] ss:$8 sps:$4 sm:$0xff] (!%p390_p2)   ;;  %v3981_v4 = vld [vmem:[%s5696_s1 + $0x24] ss:$8 sps:$4 sm:$0xff] (!%p390_p2)   ;;  %s3507_s20 = sshll.u32 (!%p390_p2), %s3502_s26, 3 }
   0x7   : > { %755 = vmatpush1.bf16.msra.mxu0 (!%p390_p2), %v3977_v1  ;;  %v3983_v5 = vld [vmem:[%s5696_s1 + $0x20] ss:$8 sps:$4 sm:$0xff] (!%p390_p2)   ;;  %p435_p3 = scmp.lt.s32.totalorder (!%p390_p2), %s3507_s20, 15  ;;  %v3984_v6 = vld [vmem:[%s5696_s1 + $0x34] ss:$8 sps:$4 sm:$0xff] (!%p390_p2)   ;;  %vm747_vm0 = vcmask (!%p390_p2), 1042432  }
   0x8   : > { %756 = vmatprep.subr.bf16.mxu0 (!%p390_p2), %v3978_v2  ;;  %v3986_v7 = vld [vmem:[%s5696_s1 + $0x30] ss:$8 sps:$4 sm:$0xff] (!%p390_p2)   ;;  %v3987_v8 = vld [vmem:[%s5696_s1 + $0x44] ss:$8 sps:$4 sm:$0xff] (!%p390_p2)   ;;  %v3989_v9 = vld [vmem:[%s5696_s1 + $0x40] ss:$8 sps:$4 sm:$0xff] (!%p390_p2)  }
   0x9   : > { %v3990_v10 = vld [vmem:[%s5696_s1 + $0x54] ss:$8 sps:$4 sm:$0xff] (!%p390_p2)   ;;  %v3992_v11 = vld [vmem:[%s5696_s1 + $0x50] ss:$8 sps:$4 sm:$0xff] (!%p390_p2)   ;;  %v3993_v12 = vld [vmem:[%s5696_s1 + $0x64] ss:$8 sps:$4 sm:$0xff] (!%p390_p2)  }
   0xa   : > { %v3995_v14 = vld [vmem:[%s5696_s1 + $0x60] ss:$8 sps:$4 sm:$0xff] (!%p390_p2)   ;;  %v3996_v15 = vld [vmem:[%s5696_s1 + $0x74] ss:$8 sps:$4 sm:$0xff] (!%p390_p2)   ;;  %v3998_v16 = vld [vmem:[%s5696_s1 + $0x70] ss:$8 sps:$4 sm:$0xff] (!%p390_p2)  }
   0xb   : > { %757 = vmatpush1.bf16.msra.mxu0 (!%p390_p2), %v3980_v3  ;;  %v3999_v17 = vld [vmem:[%s5696_s1 + $0x84] ss:$8 sps:$4 sm:$0xff] (!%p390_p2)   ;;  %v4001_v18 = vld [vmem:[%s5696_s1 + $0x80] ss:$8 sps:$4 sm:$0xff] (!%p390_p2)   ;;  %v4002_v19 = vld [vmem:[%s5696_s1 + $0x94] ss:$8 sps:$4 sm:$0xff] (!%p390_p2)  }
   0xc   : > { %758 = vmatprep.subr.bf16.mxu0 (!%p390_p2), %v3981_v4  ;;  %v4041_v20 = vld [vmem:[%s5698_s3 + $0x4] ss:$8 sps:$4 sm:$0xff] (!%p390_p2)   ;;  %v4043_v21 = vld [vmem:[%s5698_s3] ss:$8 sps:$4 sm:$0xff] (!%p390_p2)   ;;  %v4044_v22 = vld [vmem:[%s5698_s3 + $0x14] ss:$8 sps:$4 sm:$0xff] (!%p390_p2)  }
   0xd   : > { %s5712_s20 = smov (!%p435_p3, %s3507_s20), 15  ;;  %1128 = vmatprep.subr.bf16.mxu1 %v4041_v20  ;;  %v4004_v23 = vld [vmem:[%s5696_s1 + $0x90] ss:$8 sps:$4 sm:$0xff]   ;;  %v4047_v25 = vld [vmem:[%s5698_s3 + $0x24] ss:$8 sps:$4 sm:$0xff]   ;;  %vm734_vm1 = vcmask 48128  }
   0xe   : > { %s3965_s15 = smul.u32 12, %s5712_s20  ;;  %1129 = vmatpush1.bf16.msra.mxu1 %v4043_v21  ;;  %v4046_v24 = vld [vmem:[%s5698_s3 + $0x10] ss:$8 sps:$4 sm:$0xff]   ;;  %v4005_v26 = vld [vmem:[%s5696_s1 + $0xa4] ss:$8 sps:$4 sm:$0xff]   ;;  %s3510_s27 = sshll.u32 %s5712_s20, 3 }
   0xf   : > { %759 = vmatpush1.bf16.msra.mxu0 %v3983_v5  ;;  %1130 = vmatprep.subr.bf16.mxu1 %v4044_v22  ;;  %v4007_v27 = vld [vmem:[%s5696_s1 + $0xa0] ss:$8 sps:$4 sm:$0xff]   ;;  %v4050_v29 = vld [vmem:[%s5698_s3 + $0x34] ss:$8 sps:$4 sm:$0xff]   ;;  %v4010_v31 = vld [vmem:[%s5696_s1 + $0xb0] ss:$8 sps:$4 sm:$0xff]   ;;  %s5635_s29 = scalar_lea.vmem %s5708_s13, %s3510_s27 }
  0x10   : > { %760 = vmatprep.subr.bf16.mxu0 %v3984_v6  ;;  %s4554_s23 = scalar_lea.vmem %s5695_s0, %s3965_s15  ;;  %v4049_v28 = vld [vmem:[%s5698_s3 + $0x20] ss:$8 sps:$4 sm:$0xff]   ;;  %v4008_v30 = vld [vmem:[%s5696_s1 + $0xb4] ss:$8 sps:$4 sm:$0xff]   ;;  %v4052_v32 = vld [vmem:[%s5698_s3 + $0x30] ss:$8 sps:$4 sm:$0xff]  }
  0x11   : > { %v4025_v13 = vld [vmem:[%s4554_s23 + $0x4] ss:$12 sps:$4 sm:$0xff]   ;;  %v4013_v35 = vld [vmem:[%s5696_s1 + $0xc0] ss:$8 sps:$4 sm:$0xff]   ;;  %v4056_v37 = vld [vmem:[%s5698_s3 + $0x54] ss:$8 sps:$4 sm:$0xff]  }
  0x12   : > { %786 = vmatprep.mubr.bf16.mxu0 %v4025_v13  ;;  %1131 = vmatpush1.bf16.msra.mxu1 %v4046_v24  ;;  %v4053_v33 = vld [vmem:[%s5698_s3 + $0x44] ss:$8 sps:$4 sm:$0xff]   ;;  %v4055_v36 = vld [vmem:[%s5698_s3 + $0x40] ss:$8 sps:$4 sm:$0xff]   ;;  %v4014_v38 = vld [vmem:[%s5696_s1 + $0xd4] ss:$8 sps:$4 sm:$0xff]  }
  0x13   : > { %761 = vmatpush1.bf16.msra.mxu0 %v3986_v7  ;;  %1132 = vmatprep.subr.bf16.mxu1 %v4047_v25  ;;  %v4011_v34 = vld [vmem:[%s5696_s1 + $0xc4] ss:$8 sps:$4 sm:$0xff]   ;;  %v4016_v39 = vld [vmem:[%s5696_s1 + $0xd0] ss:$8 sps:$4 sm:$0xff]   ;;  %v4061_v43 = vld [vmem:[%s5698_s3 + $0x60] ss:$8 sps:$4 sm:$0xff]  }
  0x14   : > { %762 = vmatprep.subr.bf16.mxu0 %v3987_v8  ;;  %v4058_v40 = vld [vmem:[%s5698_s3 + $0x50] ss:$8 sps:$4 sm:$0xff]   ;;  %v4059_v41 = vld [vmem:[%s5698_s3 + $0x64] ss:$8 sps:$4 sm:$0xff]   ;;  %v4019_v44 = vld [vmem:[%s5696_s1 + $0xe0] ss:$8 sps:$4 sm:$0xff]  }
  0x15   : > { %v4017_v42 = vld [vmem:[%s5696_s1 + $0xe4] ss:$8 sps:$4 sm:$0xff]   ;;  %v4062_v45 = vld [vmem:[%s5698_s3 + $0x74] ss:$8 sps:$4 sm:$0xff]   ;;  %v4064_v48 = vld [vmem:[%s5698_s3 + $0x70] ss:$8 sps:$4 sm:$0xff]  }
  0x16   : > { %1133 = vmatpush1.bf16.msra.mxu1 %v4049_v28  ;;  %v4020_v46 = vld [vmem:[%s5696_s1 + $0xf4] ss:$8 sps:$4 sm:$0xff]   ;;  %v496_v47 = vld [vmem:[%s5696_s1 + $0x100] sm:$0x77]  ;;  %v4022_v49 = vld [vmem:[%s5696_s1 + $0xf0] ss:$8 sps:$4 sm:$0xff]  }
  0x17   : > { %763 = vmatpush1.bf16.msra.mxu0 %v3989_v9  ;;  %1134 = vmatprep.subr.bf16.mxu1 %v4050_v29  ;;  %v4065_v50 = vld [vmem:[%s5698_s3 + $0x84] ss:$8 sps:$4 sm:$0xff]   ;;  %v3556_v52 = vcombine.high %v496_v47, %v496_v47  ;;  %v3555_v53 = vcombine.low %v496_v47, %v496_v47  ;;  %v4067_v54 = vld [vmem:[%s5698_s3 + $0x80] ss:$8 sps:$4 sm:$0xff]   ;;  %v4068_v56 = vld [vmem:[%s5698_s3 + $0x94] ss:$8 sps:$4 sm:$0xff]  }
  0x18   : > { %764 = vmatprep.subr.bf16.mxu0 %v3990_v10  ;;  %v4023_v51 = vld [vmem:[%s4554_s23] ss:$12 sps:$4 sm:$0xff]   ;;  %v4028_v55 = vld [vmem:[%s4554_s23 + $0x1c] ss:$12 sps:$4 sm:$0xff]   ;;  %v4070_v58 = vld [vmem:[%s5698_s3 + $0x90] ss:$8 sps:$4 sm:$0xff]  }
  0x19   : > { %v749_v57 = vsel %vm747_vm0, %v3555_v53, 0  ;;  %v4071_v59 = vld [vmem:[%s5698_s3 + $0xa4] ss:$8 sps:$4 sm:$0xff]   ;;  %v4073_v61 = vld [vmem:[%s5698_s3 + $0xa0] ss:$8 sps:$4 sm:$0xff]   ;;  %v4433_v7 = vmov 0  }
  0x1a   : > { %1135 = vmatpush1.bf16.msra.mxu1 %v4052_v32  ;;  %v4030_v60 = vld [vmem:[%s4554_s23 + $0x18] ss:$12 sps:$4 sm:$0xff]   ;;  %v4031_v62 = vld [vmem:[%s4554_s23 + $0x34] ss:$12 sps:$4 sm:$0xff]   ;;  %v4033_v2 = vld [vmem:[%s4554_s23 + $0x30] ss:$12 sps:$4 sm:$0xff]  }
  0x1b   : > { %765 = vmatpush1.bf16.msra.mxu0 %v3992_v11  ;;  %1136 = vmatprep.subr.bf16.mxu1 %v4053_v33  ;;  %v4074_v63 = vld [vmem:[%s5698_s3 + $0xb4] ss:$8 sps:$4 sm:$0xff]   ;;  %v4076_v0 = vld [vmem:[%s5698_s3 + $0xb0] ss:$8 sps:$4 sm:$0xff]   ;;  %v4077_v1 = vld [vmem:[%s5698_s3 + $0xc4] ss:$8 sps:$4 sm:$0xff]  }
  0x1c   : > { %766 = vmatprep.subr.bf16.mxu0 %v3993_v12  ;;  %v4079_v3 = vld [vmem:[%s5698_s3 + $0xc0] ss:$8 sps:$4 sm:$0xff]   ;;  %v4034_v4 = vld [vmem:[%s4554_s23 + $0x4c] ss:$12 sps:$4 sm:$0xff]   ;;  %v4080_v5 = vld [vmem:[%s5698_s3 + $0xd4] ss:$8 sps:$4 sm:$0xff]  }
  0x1d   : > { %v4036_v6 = vld [vmem:[%s4554_s23 + $0x48] ss:$12 sps:$4 sm:$0xff]   ;;  %v4038_v9 = vld [vmem:[%s4554_s23 + $0x20] ss:$12 sps:$4 sm:$0xff]   ;;  %v4039_v10 = vld [vmem:[%s4554_s23 + $0x38] ss:$12 sps:$4 sm:$0xff]  }
  0x1e   : > { %1137 = vmatpush1.bf16.msra.mxu1 %v4055_v36  ;;  %v4037_v8 = vld [vmem:[%s4554_s23 + $0x8] ss:$12 sps:$4 sm:$0xff]   ;;  %v4040_v11 = vld [vmem:[%s4554_s23 + $0x50] ss:$12 sps:$4 sm:$0xff]   ;;  %v4083_v13 = vld [vmem:[%s5698_s3 + $0xe4] ss:$8 sps:$4 sm:$0xff]  }
  0x1f   : > { %767 = vmatpush1.bf16.msra.mxu0 %v3995_v14  ;;  %1138 = vmatprep.subr.bf16.mxu1 %v4056_v37  ;;  %v4082_v12 = vld [vmem:[%s5698_s3 + $0xd0] ss:$8 sps:$4 sm:$0xff]   ;;  %v4085_v14 = vld [vmem:[%s5698_s3 + $0xe0] ss:$8 sps:$4 sm:$0xff]   ;;  %v4100_v20 = vld [vmem:[%s5700_s5 + $0x3c] ss:$24 sps:$4 sm:$0xff]  }
  0x20   : > { %768 = vmatprep.subr.bf16.mxu0 %v3996_v15  ;;  %v4086_v15 = vld [vmem:[%s5698_s3 + $0xf4] ss:$8 sps:$4 sm:$0xff]   ;;  %v4098_v21 = vld [vmem:[%s5700_s5 + $0x38] ss:$24 sps:$4 sm:$0xff]   ;;  %v4106_v22 = vld [vmem:[%s5700_s5 + $0x6c] ss:$24 sps:$4 sm:$0xff]  }
  0x21   : > { %v4112_v24 = vld [vmem:[%s5700_s5 + $0x9c] ss:$24 sps:$4 sm:$0xff]   ;;  %v4110_v25 = vld [vmem:[%s5700_s5 + $0x98] ss:$24 sps:$4 sm:$0xff]  }
  0x22   : > { %1139 = vmatpush1.bf16.msra.mxu1 %v4058_v40  ;;  %v4124_v28 = vld [vmem:[%s5700_s5 + $0xfc] ss:$24 sps:$4 sm:$0xff]   ;;  %v4122_v29 = vld [vmem:[%s5700_s5 + $0xf8] ss:$24 sps:$4 sm:$0xff]  }
  0x23   : > { %769 = vmatpush1.bf16.msra.mxu0 %v3998_v16  ;;  %1140 = vmatprep.subr.bf16.mxu1 %v4059_v41  ;;  %v4088_v16 = vld [vmem:[%s5698_s3 + $0xf0] ss:$8 sps:$4 sm:$0xff]   ;;  %v4136_v32 = vld [vmem:[%s5700_s5 + $0x15c] ss:$24 sps:$4 sm:$0xff]  }
  0x24   : > { %770 = vmatprep.subr.bf16.mxu0 %v3999_v17  ;;  %v4091_v17 = vld [vmem:[%s5700_s5 + $0x4] ss:$24 sps:$4 sm:$0xff]   ;;  %v4134_v33 = vld [vmem:[%s5700_s5 + $0x158] ss:$24 sps:$4 sm:$0xff]  }
  0x25   : > { %v4148_v36 = vld [vmem:[%s5700_s5 + $0x1bc] ss:$24 sps:$4 sm:$0xff]   ;;  %v4146_v37 = vld [vmem:[%s5700_s5 + $0x1b8] ss:$24 sps:$4 sm:$0xff]  }
  0x26   : > { %1141 = vmatpush1.bf16.msra.mxu1 %v4061_v43  ;;  %v4160_v40 = vld [vmem:[%s5700_s5 + $0x21c] ss:$24 sps:$4 sm:$0xff]   ;;  %v4158_v41 = vld [vmem:[%s5700_s5 + $0x218] ss:$24 sps:$4 sm:$0xff]   ;;  %v4164_v43 = vld [vmem:[%s5700_s5 + $0x248] ss:$24 sps:$4 sm:$0xff]  }
  0x27   : > { %771 = vmatpush1.bf16.msra.mxu0 %v4001_v18  ;;  %1142 = vmatprep.subr.bf16.mxu1 %v4062_v45  ;;  %v4092_v18 = vld [vmem:[%s5700_s5 + $0x8] ss:$24 sps:$4 sm:$0xff]   ;;  %v4170_v45 = vld [vmem:[%s5700_s5 + $0x278] ss:$24 sps:$4 sm:$0xff]  }
  0x28   : > { %772 = vmatprep.subr.bf16.mxu0 %v4002_v19  ;;  %v4094_v19 = vld [vmem:[%s5700_s5 + $0xc] ss:$24 sps:$4 sm:$0xff]  }
  0x2a   : > { %1143 = vmatpush1.bf16.msra.mxu1 %v4064_v48 }
  0x2b   : > { %773 = vmatpush1.bf16.msra.mxu0 %v4004_v23  ;;  %1144 = vmatprep.subr.bf16.mxu1 %v4065_v50  ;;  %v4104_v23 = vld [vmem:[%s5700_s5 + $0x68] ss:$24 sps:$4 sm:$0xff]  }
  0x2c   : > { %774 = vmatprep.subr.bf16.mxu0 %v4005_v26  ;;  %v4118_v26 = vld [vmem:[%s5700_s5 + $0xcc] ss:$24 sps:$4 sm:$0xff]  }
  0x2e   : > { %1145 = vmatpush1.bf16.msra.mxu1 %v4067_v54 }
  0x2f   : > { %775 = vmatpush1.bf16.msra.mxu0 %v4007_v27  ;;  %1146 = vmatprep.subr.bf16.mxu1 %v4068_v56  ;;  %v4116_v27 = vld [vmem:[%s5700_s5 + $0xc8] ss:$24 sps:$4 sm:$0xff]  }
  0x30   : > { %776 = vmatprep.subr.bf16.mxu0 %v4008_v30  ;;  %v4130_v30 = vld [vmem:[%s5700_s5 + $0x12c] ss:$24 sps:$4 sm:$0xff]  }
  0x32   : > { %1147 = vmatpush1.bf16.msra.mxu1 %v4070_v58 }
  0x33   : > { %777 = vmatpush1.bf16.msra.mxu0 %v4010_v31  ;;  %1148 = vmatprep.subr.bf16.mxu1 %v4071_v59  ;;  %v4128_v31 = vld [vmem:[%s5700_s5 + $0x128] ss:$24 sps:$4 sm:$0xff]  }
  0x34   : > { %778 = vmatprep.subr.bf16.mxu0 %v4011_v34  ;;  %v4142_v34 = vld [vmem:[%s5700_s5 + $0x18c] ss:$24 sps:$4 sm:$0xff]  }
  0x36   : > { %1149 = vmatpush1.bf16.msra.mxu1 %v4073_v61 }
  0x37   : > { %779 = vmatpush1.bf16.msra.mxu0 %v4013_v35  ;;  %1150 = vmatprep.subr.bf16.mxu1 %v4074_v63  ;;  %v4140_v35 = vld [vmem:[%s5700_s5 + $0x188] ss:$24 sps:$4 sm:$0xff]  }
  0x38   : > { %780 = vmatprep.subr.bf16.mxu0 %v4014_v38  ;;  %v4154_v38 = vld [vmem:[%s5700_s5 + $0x1ec] ss:$24 sps:$4 sm:$0xff]  }
  0x3a   : > { %1151 = vmatpush1.bf16.msra.mxu1 %v4076_v0 }
  0x3b   : > { %781 = vmatpush1.bf16.msra.mxu0 %v4016_v39  ;;  %1152 = vmatprep.subr.bf16.mxu1 %v4077_v1  ;;  %v4152_v39 = vld [vmem:[%s5700_s5 + $0x1e8] ss:$24 sps:$4 sm:$0xff]  }
  0x3c   : > { %782 = vmatprep.subr.bf16.mxu0 %v4017_v42  ;;  %v4166_v42 = vld [vmem:[%s5700_s5 + $0x24c] ss:$24 sps:$4 sm:$0xff]  }
  0x3e   : > { %1153 = vmatpush1.bf16.msra.mxu1 %v4079_v3 }
  0x3f   : > { %783 = vmatpush1.bf16.msra.mxu0 %v4019_v44  ;;  %1154 = vmatprep.subr.bf16.mxu1 %v4080_v5  ;;  %v4172_v44 = vld [vmem:[%s5700_s5 + $0x27c] ss:$24 sps:$4 sm:$0xff]  }
  0x40   : > { %784 = vmatprep.subr.bf16.mxu0 %v4020_v46  ;;  %v499_v46 = vlaneseq }
  0x42   : > { %1155 = vmatpush1.bf16.msra.mxu1 %v4082_v12  ;;  %v4815_v47 = vshrl.u32 %v499_v46, 7 }
  0x43   : > { %785 = vmatpush1.bf16.msra.mxu0 %v4022_v49  ;;  %1156 = vmatprep.subr.bf16.mxu1 %v4083_v13  ;;  %v497_v49 = vld [vmem:[%s5697_s2] sm:$0x3]  ;;  %v4095_v13 = vld [vmem:[%s5700_s5 + $0x30] ss:$24 sps:$4 sm:$0xff]  }
  0x44   : > { %3557 = vmatprep.subr.msk.bf16.mxu0 %vm747_vm0, %v3556_v52  ;;  %v4818_v48 = vsub.s32 0, %v4815_v47  ;;  %v4824_v50 = vsub.s32 1, %v4815_v47 }
  0x46   : > { %787 = vmatmul.mubr.bf16.vlgmr.msra.gmra.mrb[0].mxu0 %v4023_v51  ;;  %1157 = vmatpush1.bf16.msra.mxu1 %v4085_v14  ;;  %v4827_v51 = vrot.slane %v497_v49, %v4818_v48  ;;  %v4830_v52 = vrot.slane %v497_v49, %v4824_v50 }
  0x47   : > { %828 = vmatpush1.bf16.msra.mxu0 %v749_v57  ;;  %796 = vmatprep.mubr.bf16.mxu0 %v4028_v55 }
  0x48   : > { %1158 = vmatprep.subr.bf16.mxu1 %v4086_v15  ;;  %1906 = vmatprep.subr.bf16.mxu0 %v4094_v19 }
  0x4a   : > { %1159 = vmatpush1.bf16.msra.mxu1 %v4088_v16  ;;  %v4103_v16 = vld [vmem:[%s5700_s5 + $0x64] ss:$24 sps:$4 sm:$0xff]  }
  0x4b   : > { %1833 = vmatprep.subr.bf16.mxu1 %v4091_v17 }
  0x4e   : > { %797 = vmatmul.mubr.bf16.gmra.mrb[4].mxu0 %v4030_v60 }
  0x4f   : > { %806 = vmatprep.mubr.bf16.mxu0 %v4031_v62 }
  0x56   : > { %807 = vmatmul.mubr.bf16.gmra.mrb[8].mxu0 %v4033_v2 }
  0x57   : > { %816 = vmatprep.mubr.bf16.mxu0 %v4034_v4  ;;  %v4089_v4 = vld [vmem:[%s5700_s5] ss:$24 sps:$4 sm:$0xff]  }
  0x5e   : > { %817 = vmatmul.mubr.bf16.gmra.mrb[12].mxu0 %v4036_v6 }
  0x5f   : > { %859 = vmatprep.mubr.bf16.mxu0 %v4433_v7 }
  0x66   : > { %3558 = vmatmul.mubr.msk.bf16.vlgmr.msra.gmra.mrb[0].mxu0 %vm734_vm1, %v4037_v8 }
  0x67   : > { %869 = vmatprep.mubr.bf16.mxu0 %v4433_v7  ;;  %1907 = vmatpush1.bf16.msra.mxu0 %v4092_v18 }
  0x68   : > { %1908 = vmatprep.subr.bf16.mxu0 %v4100_v20 }
  0x6b   : > { %1909 = vmatpush1.bf16.msra.mxu0 %v4098_v21 }
  0x6c   : > { %1910 = vmatprep.subr.bf16.mxu0 %v4106_v22  ;;  %v4101_v22 = vld [vmem:[%s5700_s5 + $0x60] ss:$24 sps:$4 sm:$0xff]  }
  0x6e   : > { %3559 = vmatmul.mubr.msk.bf16.gmra.mrb[4].mxu0 %vm734_vm1, %v4038_v9 }
  0x6f   : > { %879 = vmatprep.mubr.bf16.mxu0 %v4433_v7  ;;  %1911 = vmatpush1.bf16.msra.mxu0 %v4104_v23 }
  0x70   : > { %1912 = vmatprep.subr.bf16.mxu0 %v4112_v24 }
  0x73   : > { %1913 = vmatpush1.bf16.msra.mxu0 %v4110_v25  ;;  %v4109_v25 = vld [vmem:[%s5700_s5 + $0x94] ss:$24 sps:$4 sm:$0xff]  }
  0x74   : > { %1914 = vmatprep.subr.bf16.mxu0 %v4118_v26 }
  0x76   : > { %3560 = vmatmul.mubr.msk.bf16.gmra.mrb[8].mxu0 %vm734_vm1, %v4039_v10 }
  0x77   : > { %889 = vmatprep.mubr.bf16.mxu0 %v4433_v7  ;;  %1915 = vmatpush1.bf16.msra.mxu0 %v4116_v27  ;;  %v4097_v7 = vld [vmem:[%s5700_s5 + $0x34] ss:$24 sps:$4 sm:$0xff]  }
  0x78   : > { %1916 = vmatprep.subr.bf16.mxu0 %v4124_v28 }
  0x7b   : > { %1917 = vmatpush1.bf16.msra.mxu0 %v4122_v29 }
  0x7c   : > { %1918 = vmatprep.subr.bf16.mxu0 %v4130_v30 }
  0x7e   : > { %3561 = vmatmul.mubr.msk.bf16.gmra.mrb[12].mxu0 %vm734_vm1, %v4040_v11 }
  0x7f   : > { %1919 = vmatpush1.bf16.msra.mxu0 %v4128_v31  ;;  %v4107_v31 = vld [vmem:[%s5700_s5 + $0x90] ss:$24 sps:$4 sm:$0xff]  }
  0x80   : > { %1920 = vmatprep.subr.bf16.mxu0 %v4136_v32 }
  0x83   : > { %1921 = vmatpush1.bf16.msra.mxu0 %v4134_v33 }
  0x84   : > { %1922 = vmatprep.subr.bf16.mxu0 %v4142_v34  ;;  %v4115_v34 = vld [vmem:[%s5700_s5 + $0xc4] ss:$24 sps:$4 sm:$0xff]  }
  0x87   : > { %1923 = vmatpush1.bf16.msra.mxu0 %v4140_v35 }
  0x88   : > { %1924 = vmatprep.subr.bf16.mxu0 %v4148_v36 }
  0x8b   : > { %1925 = vmatpush1.bf16.msra.mxu0 %v4146_v37 }
  0x8c   : > { %1926 = vmatprep.subr.bf16.mxu0 %v4154_v38 }
  0x8f   : > { %1927 = vmatpush1.bf16.msra.mxu0 %v4152_v39 }
  0x90   : > { %1928 = vmatprep.subr.bf16.mxu0 %v4160_v40  ;;  %v4113_v40 = vld [vmem:[%s5700_s5 + $0xc0] ss:$24 sps:$4 sm:$0xff]  }
  0x93   : > { %1929 = vmatpush1.bf16.msra.mxu0 %v4158_v41 }
  0x94   : > { %1930 = vmatprep.subr.bf16.mxu0 %v4166_v42 }
  0x97   : > { %1931 = vmatpush1.bf16.msra.mxu0 %v4164_v43  ;;  %v4121_v43 = vld [vmem:[%s5700_s5 + $0xf4] ss:$24 sps:$4 sm:$0xff]  }
  0x98   : > { %1932 = vmatprep.subr.bf16.mxu0 %v4172_v44 }
  0x9b   : > { %1933 = vmatpush1.bf16.msra.mxu0 %v4170_v45 }
 0x139   : > { %v861_v53 = vpop.f32.mrb[0].mxu0 }
 0x13a   : > { %v3933_v54 = vadd.f32 %v861_v53, %v4827_v51  ;;  %v863_v55 = vpop.f32.mrb[1].mxu0 }
 0x13b   : > { %v3934_v56 = vadd.f32 %v863_v55, %v4830_v52  ;;  %v865_v57 = vpop.f32.mrb[2].mxu0  ;;  %v4119_v55 = vld [vmem:[%s5700_s5 + $0xf0] ss:$24 sps:$4 sm:$0xff]  }
 0x13c   : > { %v3935_v58 = vadd.f32 %v865_v57, %v4827_v51  ;;  %v867_v59 = vpop.f32.mrb[3].mxu0  ;;  %v900_v61 = vmax.f32 %v3933_v54, 0.0 }
 0x13d   : > { %v3936_v60 = vadd.f32 %v867_v59, %v4830_v52  ;;  %v901_v63 = vmax.f32 %v3934_v56, 0.0 }
 0x13e   : > { %v902_v62 = vmax.f32 %v3935_v58, 0.0  ;;  %v4127_v58 = vld [vmem:[%s5700_s5 + $0x124] ss:$24 sps:$4 sm:$0xff]  }
 0x13f   : > { %v903_v0 = vmax.f32 %v3936_v60, 0.0 }
 0x140   : > { %v916_v1 = vpack.c.bf16 %v902_v62, %v900_v61  ;;  %v4133_v62 = vld [vmem:[%s5700_s5 + $0x154] ss:$24 sps:$4 sm:$0xff]  }
 0x141   : > { %v871_v2 = vpop.f32.mrb[4].mxu0  ;;  %v917_v3 = vpack.c.bf16 %v903_v0, %v901_v63  ;;  %v4131_v63 = vld [vmem:[%s5700_s5 + $0x150] ss:$24 sps:$4 sm:$0xff]   ;;  %v4139_v0 = vld [vmem:[%s5700_s5 + $0x184] ss:$24 sps:$4 sm:$0xff]  }
 0x142   : > { %v3937_v5 = vadd.f32 %v871_v2, %v4827_v51  ;;  %v873_v6 = vpop.f32.mrb[5].mxu0  ;;  %v4145_v2 = vld [vmem:[%s5700_s5 + $0x1b4] ss:$24 sps:$4 sm:$0xff]  }
 0x143   : > { %v3938_v8 = vadd.f32 %v873_v6, %v4830_v52  ;;  %v875_v9 = vpop.f32.mrb[6].mxu0  ;;  %1160 = vmatprep.mubr.bf16.mxu1 %v917_v3  ;;  %v4143_v3 = vld [vmem:[%s5700_s5 + $0x1b0] ss:$24 sps:$4 sm:$0xff]   ;;  %v4157_v6 = vld [vmem:[%s5700_s5 + $0x214] ss:$24 sps:$4 sm:$0xff]  }
 0x144   : > { %v3939_v10 = vadd.f32 %v875_v9, %v4827_v51  ;;  %v877_v11 = vpop.f32.mrb[7].mxu0  ;;  %1161 = vmatmul.mubr.bf16.vlgmr.msra.gmra.mrb[0].mxu1 %v916_v1  ;;  %v904_v14 = vmax.f32 %v3937_v5, 0.0  ;;  %v4137_v1 = vld [vmem:[%s5700_s5 + $0x180] ss:$24 sps:$4 sm:$0xff]  }
 0x145   : > { %v3940_v12 = vadd.f32 %v877_v11, %v4830_v52  ;;  %1834 = vmatpush1.bf16.msra.mxu1 %v4089_v4  ;;  %v905_v17 = vmax.f32 %v3938_v8, 0.0  ;;  %v4151_v4 = vld [vmem:[%s5700_s5 + $0x1e4] ss:$24 sps:$4 sm:$0xff]   ;;  %v4149_v5 = vld [vmem:[%s5700_s5 + $0x1e0] ss:$24 sps:$4 sm:$0xff]  }
 0x146   : > { %v906_v15 = vmax.f32 %v3939_v10, 0.0  ;;  %1835 = vmatprep.subr.bf16.mxu1 %v4097_v7  ;;  %v4155_v7 = vld [vmem:[%s5700_s5 + $0x210] ss:$24 sps:$4 sm:$0xff]   ;;  %v4163_v8 = vld [vmem:[%s5700_s5 + $0x244] ss:$24 sps:$4 sm:$0xff]  }
 0x147   : > { %v907_v18 = vmax.f32 %v3940_v12, 0.0  ;;  %v4161_v9 = vld [vmem:[%s5700_s5 + $0x240] ss:$24 sps:$4 sm:$0xff]   ;;  %v4169_v10 = vld [vmem:[%s5700_s5 + $0x274] ss:$24 sps:$4 sm:$0xff]  }
 0x148   : > { %v918_v19 = vpack.c.bf16 %v906_v15, %v904_v14  ;;  %v4167_v11 = vld [vmem:[%s5700_s5 + $0x270] ss:$24 sps:$4 sm:$0xff]   ;;  %v4175_v12 = vld [vmem:[%s5700_s5 + $0x2a4] ss:$24 sps:$4 sm:$0xff]  }
 0x149   : > { %v919_v20 = vpack.c.bf16 %v907_v18, %v905_v17  ;;  %v881_v21 = vpop.f32.mrb[8].mxu0  ;;  %1836 = vmatpush1.bf16.msra.mxu1 %v4095_v13  ;;  %v4173_v13 = vld [vmem:[%s5700_s5 + $0x2a0] ss:$24 sps:$4 sm:$0xff]   ;;  %v4178_v14 = vld [vmem:[%s5700_s5 + $0x2ac] ss:$24 sps:$4 sm:$0xff]  }
 0x14a   : > { %v3941_v23 = vadd.f32 %v881_v21, %v4827_v51  ;;  %v883_v24 = vpop.f32.mrb[9].mxu0  ;;  %1837 = vmatprep.subr.bf16.mxu1 %v4103_v16  ;;  %v4176_v15 = vld [vmem:[%s5700_s5 + $0x2a8] ss:$24 sps:$4 sm:$0xff]   ;;  %1934 = vmatprep.subr.bf16.mxu0 %v4178_v14  ;;  %v4181_v16 = vld [vmem:[%s5700_s5 + $0x2d4] ss:$24 sps:$4 sm:$0xff]  }
 0x14b   : > { %v3942_v26 = vadd.f32 %v883_v24, %v4830_v52  ;;  %v885_v27 = vpop.f32.mrb[10].mxu0  ;;  %1170 = vmatprep.mubr.bf16.mxu1 %v919_v20  ;;  %1935 = vmatpush1.bf16.msra.mxu0 %v4176_v15  ;;  %v4179_v17 = vld [vmem:[%s5700_s5 + $0x2d0] ss:$24 sps:$4 sm:$0xff]   ;;  %v4184_v18 = vld [vmem:[%s5700_s5 + $0x2dc] ss:$24 sps:$4 sm:$0xff]  }
 0x14c   : > { %v3943_v28 = vadd.f32 %v885_v27, %v4827_v51  ;;  %v887_v29 = vpop.f32.mrb[11].mxu0  ;;  %1171 = vmatmul.mubr.bf16.gmra.mrb[4].mxu1 %v918_v19  ;;  %v908_v32 = vmax.f32 %v3941_v23, 0.0  ;;  %v4182_v19 = vld [vmem:[%s5700_s5 + $0x2d8] ss:$24 sps:$4 sm:$0xff]   ;;  %1936 = vmatprep.subr.bf16.mxu0 %v4184_v18  ;;  %v4187_v20 = vld [vmem:[%s5700_s5 + $0x14] ss:$24 sps:$4 sm:$0xff]  }
 0x14d   : > { %v3944_v30 = vadd.f32 %v887_v29, %v4830_v52  ;;  %1838 = vmatpush1.bf16.msra.mxu1 %v4101_v22  ;;  %v909_v35 = vmax.f32 %v3942_v26, 0.0  ;;  %v4235_v21 = vld [vmem:[%s5702_s7 + $0x4] ss:$8 sps:$4 sm:$0xff]   ;;  %v956_v22 = vld [vmem:[%s5699_s4] sm:$0x3] }
 0x14e   : > { %v910_v33 = vmax.f32 %v3943_v28, 0.0  ;;  %1839 = vmatprep.subr.bf16.mxu1 %v4109_v25  ;;  %v4963_v23 = vrot.slane %v956_v22, %v4818_v48  ;;  %v4966_v24 = vrot.slane %v956_v22, %v4824_v50  ;;  %v4242_v14 = vld [vmem:[%s5702_s7 + $0x30] ss:$8 sps:$4 sm:$0xff]   ;;  %v4247_v18 = vld [vmem:[%s5702_s7 + $0x44] ss:$8 sps:$4 sm:$0xff]  }
 0x14f   : > { %v911_v36 = vmax.f32 %v3944_v30, 0.0  ;;  %1937 = vmatpush1.bf16.msra.mxu0 %v4182_v19 }
 0x150   : > { %v920_v37 = vpack.c.bf16 %v910_v33, %v908_v32  ;;  %2328 = vmatprep.subr.bf16.mxu0 %v4235_v21 }
 0x151   : > { %v921_v38 = vpack.c.bf16 %v911_v36, %v909_v35  ;;  %v891_v39 = vpop.f32.mrb[12].mxu0  ;;  %1840 = vmatpush1.bf16.msra.mxu1 %v4107_v31 }
 0x152   : > { %v3945_v41 = vadd.f32 %v891_v39, %v4827_v51  ;;  %v893_v42 = vpop.f32.mrb[13].mxu0  ;;  %1841 = vmatprep.subr.bf16.mxu1 %v4115_v34 }
 0x153   : > { %v3946_v44 = vadd.f32 %v893_v42, %v4830_v52  ;;  %v895_v45 = vpop.f32.mrb[14].mxu0  ;;  %1180 = vmatprep.mubr.bf16.mxu1 %v921_v38 }
 0x154   : > { %v3947_v49 = vadd.f32 %v895_v45, %v4827_v51  ;;  %v897_v53 = vpop.f32.mrb[15].mxu0  ;;  %1181 = vmatmul.mubr.bf16.gmra.mrb[8].mxu1 %v920_v37  ;;  %v912_v56 = vmax.f32 %v3945_v41, 0.0  ;;  %v4233_v41 = vld [vmem:[%s5702_s7] ss:$8 sps:$4 sm:$0xff]   ;;  %v4238_v45 = vld [vmem:[%s5702_s7 + $0x14] ss:$8 sps:$4 sm:$0xff]  }
 0x155   : > { %v3948_v54 = vadd.f32 %v897_v53, %v4830_v52  ;;  %1842 = vmatpush1.bf16.msra.mxu1 %v4113_v40  ;;  %v913_v59 = vmax.f32 %v3946_v44, 0.0  ;;  %v4125_v52 = vld [vmem:[%s5700_s5 + $0x120] ss:$24 sps:$4 sm:$0xff]   ;;  %v4185_v40 = vld [vmem:[%s5700_s5 + $0x10] ss:$24 sps:$4 sm:$0xff]  }
 0x156   : > { %v914_v57 = vmax.f32 %v3947_v49, 0.0  ;;  %1843 = vmatprep.subr.bf16.mxu1 %v4121_v43  ;;  %v4190_v44 = vld [vmem:[%s5700_s5 + $0x44] ss:$24 sps:$4 sm:$0xff]  }
 0x157   : > { %v915_v60 = vmax.f32 %v3948_v54, 0.0 }
 0x158   : > { %v922_v61 = vpack.c.bf16 %v914_v57, %v912_v56  ;;  %v4188_v57 = vld [vmem:[%s5700_s5 + $0x40] ss:$24 sps:$4 sm:$0xff]  }
 0x159   : > { %v923_v51 = vpack.c.bf16 %v915_v60, %v913_v59  ;;  %1844 = vmatpush1.bf16.msra.mxu1 %v4119_v55 }
 0x15a   : > { %1845 = vmatprep.subr.bf16.mxu1 %v4127_v58  ;;  %v4236_v58 = vld [vmem:[%s5702_s7 + $0x10] ss:$8 sps:$4 sm:$0xff]  }
 0x15b   : > { %1190 = vmatprep.mubr.bf16.mxu1 %v923_v51  ;;  %v4241_v51 = vld [vmem:[%s5702_s7 + $0x24] ss:$8 sps:$4 sm:$0xff]  }
 0x15c   : > { %1191 = vmatmul.mubr.bf16.gmra.mrb[12].mxu1 %v922_v61  ;;  %v4193_v61 = vld [vmem:[%s5700_s5 + $0x74] ss:$24 sps:$4 sm:$0xff]  }
 0x15d   : > { %1846 = vmatpush1.bf16.msra.mxu1 %v4125_v52 }
 0x15e   : > { %1847 = vmatprep.subr.bf16.mxu1 %v4133_v62 }
 0x161   : > { %1848 = vmatpush1.bf16.msra.mxu1 %v4131_v63 }
 0x162   : > { %1849 = vmatprep.subr.bf16.mxu1 %v4139_v0 }
 0x165   : > { %1850 = vmatpush1.bf16.msra.mxu1 %v4137_v1 }
 0x166   : > { %1851 = vmatprep.subr.bf16.mxu1 %v4145_v2  ;;  %v4191_v2 = vld [vmem:[%s5700_s5 + $0x70] ss:$24 sps:$4 sm:$0xff]  }
 0x169   : > { %1852 = vmatpush1.bf16.msra.mxu1 %v4143_v3  ;;  %v4239_v3 = vld [vmem:[%s5702_s7 + $0x20] ss:$8 sps:$4 sm:$0xff]  }
 0x16a   : > { %1853 = vmatprep.subr.bf16.mxu1 %v4151_v4 }
 0x16d   : > { %1854 = vmatpush1.bf16.msra.mxu1 %v4149_v5 }
 0x16e   : > { %1855 = vmatprep.subr.bf16.mxu1 %v4157_v6  ;;  %v4196_v6 = vld [vmem:[%s5700_s5 + $0xa4] ss:$24 sps:$4 sm:$0xff]  }
 0x171   : > { %1856 = vmatpush1.bf16.msra.mxu1 %v4155_v7  ;;  %v4244_v7 = vld [vmem:[%s5702_s7 + $0x34] ss:$8 sps:$4 sm:$0xff]  }
 0x172   : > { %1857 = vmatprep.subr.bf16.mxu1 %v4163_v8 }
 0x175   : > { %1858 = vmatpush1.bf16.msra.mxu1 %v4161_v9 }
 0x176   : > { %1859 = vmatprep.subr.bf16.mxu1 %v4169_v10 }
 0x179   : > { %1860 = vmatpush1.bf16.msra.mxu1 %v4167_v11 }
 0x17a   : > { %1861 = vmatprep.subr.bf16.mxu1 %v4175_v12 }
 0x17d   : > { %1862 = vmatpush1.bf16.msra.mxu1 %v4173_v13  ;;  %v4194_v13 = vld [vmem:[%s5700_s5 + $0xa0] ss:$24 sps:$4 sm:$0xff]  }
 0x17e   : > { %1863 = vmatprep.subr.bf16.mxu1 %v4181_v16 }
 0x181   : > { %1864 = vmatpush1.bf16.msra.mxu1 %v4179_v17  ;;  %v4199_v17 = vld [vmem:[%s5700_s5 + $0xd4] ss:$24 sps:$4 sm:$0xff]  }
 0x182   : > { %1979 = vmatprep.subr.bf16.mxu1 %v4187_v20 }
 0x217   : > { %v1162_v25 = vpop.f32.mrb[0].mxu1 }
 0x218   : > { %v1163_v26 = vadd.f32 %v1162_v25, %v4963_v23  ;;  %v1164_v27 = vpop.f32.mrb[1].mxu1 }
 0x219   : > { %v1165_v28 = vadd.f32 %v1164_v27, %v4966_v24  ;;  %v1166_v29 = vpop.f32.mrb[2].mxu1  ;;  %v4245_v27 = vld [vmem:[%s5702_s7 + $0x40] ss:$8 sps:$4 sm:$0xff]  }
 0x21a   : > { %v1167_v30 = vadd.f32 %v1166_v29, %v4963_v23  ;;  %v1168_v31 = vpop.f32.mrb[3].mxu1  ;;  %v1201_v33 = vmax.f32 %v1163_v26, 0.0  ;;  %v4197_v26 = vld [vmem:[%s5700_s5 + $0xd0] ss:$24 sps:$4 sm:$0xff]  }
 0x21b   : > { %v1169_v32 = vadd.f32 %v1168_v31, %v4966_v24  ;;  %v1202_v35 = vmax.f32 %v1165_v28, 0.0  ;;  %v4250_v31 = vld [vmem:[%s5702_s7 + $0x54] ss:$8 sps:$4 sm:$0xff]  }
 0x21c   : > { %v1203_v34 = vmax.f32 %v1167_v30, 0.0  ;;  %v4202_v30 = vld [vmem:[%s5700_s5 + $0x104] ss:$24 sps:$4 sm:$0xff]  }
 0x21d   : > { %v1204_v36 = vmax.f32 %v1169_v32, 0.0 }
 0x21e   : > { %v4972_v37 = vpack.c.bf16 %v1203_v34, %v1201_v33 }
 0x21f   : > { %v4974_v38 = vpack.c.bf16 %v1204_v36, %v1202_v35  ;;  %v1172_v39 = vpop.f32.mrb[4].mxu1 }
 0x220   : > { %v1173_v42 = vadd.f32 %v1172_v39, %v4963_v23  ;;  %v1174_v43 = vpop.f32.mrb[5].mxu1  ;;  %v4200_v39 = vld [vmem:[%s5700_s5 + $0x100] ss:$24 sps:$4 sm:$0xff]  }
 0x221   : > { %v1175_v49 = vadd.f32 %v1174_v43, %v4966_v24  ;;  %v1176_v53 = vpop.f32.mrb[6].mxu1  ;;  %1865 = vmatprep.mubr.bf16.mxu1 %v4974_v38  ;;  %1938 = vmatprep.mubr.bf16.mxu0 %v4974_v38 }
 0x222   : > { %v1177_v54 = vadd.f32 %v1176_v53, %v4963_v23  ;;  %v1178_v55 = vpop.f32.mrb[7].mxu1  ;;  %1866 = vmatmul.mubr.bf16.vlgmr.msra.gmra.mrb[16].mxu1 %v4972_v37  ;;  %1939 = vmatmul.mubr.bf16.vlgmr.msra.gmra.mrb[16].mxu0 %v4972_v37  ;;  %v1205_v59 = vmax.f32 %v1173_v42, 0.0  ;;  %v4203_v53 = vld [vmem:[%s5700_s5 + $0x130] ss:$24 sps:$4 sm:$0xff]  }
 0x223   : > { %v1179_v56 = vadd.f32 %v1178_v55, %v4966_v24  ;;  %1980 = vmatpush1.bf16.msra.mxu1 %v4185_v40  ;;  %2329 = vmatpush1.bf16.msra.mxu0 %v4233_v41  ;;  %v1206_v52 = vmax.f32 %v1175_v49, 0.0  ;;  %v4248_v40 = vld [vmem:[%s5702_s7 + $0x50] ss:$8 sps:$4 sm:$0xff]   ;;  %v4251_v55 = vld [vmem:[%s5702_s7 + $0x60] ss:$8 sps:$4 sm:$0xff]  }
 0x224   : > { %v1207_v60 = vmax.f32 %v1177_v54, 0.0  ;;  %1981 = vmatprep.subr.bf16.mxu1 %v4190_v44  ;;  %2330 = vmatprep.subr.bf16.mxu0 %v4238_v45  ;;  %v4208_v54 = vld [vmem:[%s5700_s5 + $0x164] ss:$24 sps:$4 sm:$0xff]  }
 0x225   : > { %v1208_v62 = vmax.f32 %v1179_v56, 0.0  ;;  %v4256_v56 = vld [vmem:[%s5702_s7 + $0x74] ss:$8 sps:$4 sm:$0xff]  }
 0x226   : > { %v5008_v63 = vpack.c.bf16 %v1207_v60, %v1205_v59  ;;  %v4254_v59 = vld [vmem:[%s5702_s7 + $0x70] ss:$8 sps:$4 sm:$0xff]   ;;  %v4259_v60 = vld [vmem:[%s5702_s7 + $0x84] ss:$8 sps:$4 sm:$0xff]  }
 0x227   : > { %v5010_v0 = vpack.c.bf16 %v1208_v62, %v1206_v52  ;;  %1982 = vmatpush1.bf16.msra.mxu1 %v4188_v57  ;;  %v1182_v1 = vpop.f32.mrb[8].mxu1  ;;  %2331 = vmatpush1.bf16.msra.mxu0 %v4236_v58  ;;  %v4206_v57 = vld [vmem:[%s5700_s5 + $0x160] ss:$24 sps:$4 sm:$0xff]   ;;  %v4211_v58 = vld [vmem:[%s5700_s5 + $0x194] ss:$24 sps:$4 sm:$0xff]  }
 0x228   : > { %v1183_v4 = vadd.f32 %v1182_v1, %v4963_v23  ;;  %v1184_v5 = vpop.f32.mrb[9].mxu1  ;;  %1983 = vmatprep.subr.bf16.mxu1 %v4193_v61  ;;  %2332 = vmatprep.subr.bf16.mxu0 %v4241_v51  ;;  %v4214_v61 = vld [vmem:[%s5700_s5 + $0x1c4] ss:$24 sps:$4 sm:$0xff]   ;;  %v4257_v51 = vld [vmem:[%s5702_s7 + $0x80] ss:$8 sps:$4 sm:$0xff]  }
 0x229   : > { %v1185_v8 = vadd.f32 %v1184_v5, %v4966_v24  ;;  %v1186_v9 = vpop.f32.mrb[10].mxu1  ;;  %1875 = vmatprep.mubr.bf16.mxu1 %v5010_v0  ;;  %1948 = vmatprep.mubr.bf16.mxu0 %v5010_v0  ;;  %v4262_v52 = vld [vmem:[%s5702_s7 + $0x94] ss:$8 sps:$4 sm:$0xff]   ;;  %v4212_v62 = vld [vmem:[%s5700_s5 + $0x1c0] ss:$24 sps:$4 sm:$0xff]  }
 0x22a   : > { %v1187_v10 = vadd.f32 %v1186_v9, %v4963_v23  ;;  %v1188_v11 = vpop.f32.mrb[11].mxu1  ;;  %1876 = vmatmul.mubr.bf16.gmra.mrb[20].mxu1 %v5008_v63  ;;  %1949 = vmatmul.mubr.bf16.gmra.mrb[20].mxu0 %v5008_v63  ;;  %v1209_v15 = vmax.f32 %v1183_v4, 0.0  ;;  %v4217_v1 = vld [vmem:[%s5700_s5 + $0x1f4] ss:$24 sps:$4 sm:$0xff]   ;;  %v4215_v4 = vld [vmem:[%s5700_s5 + $0x1f0] ss:$24 sps:$4 sm:$0xff]  }
 0x22b   : > { %v1189_v12 = vadd.f32 %v1188_v11, %v4966_v24  ;;  %1984 = vmatpush1.bf16.msra.mxu1 %v4191_v2  ;;  %2333 = vmatpush1.bf16.msra.mxu0 %v4239_v3  ;;  %v1210_v19 = vmax.f32 %v1185_v8, 0.0  ;;  %v4260_v2 = vld [vmem:[%s5702_s7 + $0x90] ss:$8 sps:$4 sm:$0xff]   ;;  %v4265_v3 = vld [vmem:[%s5702_s7 + $0xa4] ss:$8 sps:$4 sm:$0xff]  }
 0x22c   : > { %v1211_v16 = vmax.f32 %v1187_v10, 0.0  ;;  %1985 = vmatprep.subr.bf16.mxu1 %v4196_v6  ;;  %2334 = vmatprep.subr.bf16.mxu0 %v4244_v7  ;;  %v4220_v5 = vld [vmem:[%s5700_s5 + $0x224] ss:$24 sps:$4 sm:$0xff]   ;;  %v4263_v6 = vld [vmem:[%s5702_s7 + $0xa0] ss:$8 sps:$4 sm:$0xff]  }
 0x22d   : > { %v1212_v20 = vmax.f32 %v1189_v12, 0.0  ;;  %v4268_v7 = vld [vmem:[%s5702_s7 + $0xb4] ss:$8 sps:$4 sm:$0xff]   ;;  %v4218_v8 = vld [vmem:[%s5700_s5 + $0x220] ss:$24 sps:$4 sm:$0xff]  }
 0x22e   : > { %v5044_v21 = vpack.c.bf16 %v1211_v16, %v1209_v15  ;;  %v4223_v9 = vld [vmem:[%s5700_s5 + $0x254] ss:$24 sps:$4 sm:$0xff]   ;;  %v4266_v10 = vld [vmem:[%s5702_s7 + $0xb0] ss:$8 sps:$4 sm:$0xff]  }
 0x22f   : > { %v5046_v22 = vpack.c.bf16 %v1212_v20, %v1210_v19  ;;  %1986 = vmatpush1.bf16.msra.mxu1 %v4194_v13  ;;  %v1192_v25 = vpop.f32.mrb[12].mxu1  ;;  %2335 = vmatpush1.bf16.msra.mxu0 %v4242_v14  ;;  %v4271_v11 = vld [vmem:[%s5702_s7 + $0xc4] ss:$8 sps:$4 sm:$0xff]   ;;  %v4221_v12 = vld [vmem:[%s5700_s5 + $0x250] ss:$24 sps:$4 sm:$0xff]  }
 0x230   : > { %v1193_v28 = vadd.f32 %v1192_v25, %v4963_v23  ;;  %v1194_v29 = vpop.f32.mrb[13].mxu1  ;;  %1987 = vmatprep.subr.bf16.mxu1 %v4199_v17  ;;  %2336 = vmatprep.subr.bf16.mxu0 %v4247_v18  ;;  %v4226_v13 = vld [vmem:[%s5700_s5 + $0x284] ss:$24 sps:$4 sm:$0xff]   ;;  %v4269_v14 = vld [vmem:[%s5702_s7 + $0xc0] ss:$8 sps:$4 sm:$0xff]  }
 0x231   : > { %v1195_v32 = vadd.f32 %v1194_v29, %v4966_v24  ;;  %v1196_v33 = vpop.f32.mrb[14].mxu1  ;;  %1885 = vmatprep.mubr.bf16.mxu1 %v5046_v22  ;;  %1958 = vmatprep.mubr.bf16.mxu0 %v5046_v22  ;;  %v4274_v15 = vld [vmem:[%s5702_s7 + $0xd4] ss:$8 sps:$4 sm:$0xff]   ;;  %v4224_v16 = vld [vmem:[%s5700_s5 + $0x280] ss:$24 sps:$4 sm:$0xff]  }
 0x232   : > { %v1197_v34 = vadd.f32 %v1196_v33, %v4963_v23  ;;  %v1198_v35 = vpop.f32.mrb[15].mxu1  ;;  %1886 = vmatmul.mubr.bf16.gmra.mrb[24].mxu1 %v5044_v21  ;;  %1959 = vmatmul.mubr.bf16.gmra.mrb[24].mxu0 %v5044_v21  ;;  %v1213_v41 = vmax.f32 %v1193_v28, 0.0  ;;  %v4205_v23 = vld [vmem:[%s5700_s5 + $0x134] ss:$24 sps:$4 sm:$0xff]   ;;  %v4272_v18 = vld [vmem:[%s5702_s7 + $0xd0] ss:$8 sps:$4 sm:$0xff]  }
 0x233   : > { %v1199_v36 = vadd.f32 %v1198_v35, %v4966_v24  ;;  %1988 = vmatpush1.bf16.msra.mxu1 %v4197_v26  ;;  %2337 = vmatpush1.bf16.msra.mxu0 %v4245_v27  ;;  %v4253_v24 = vld [vmem:[%s5702_s7 + $0x64] ss:$8 sps:$4 sm:$0xff]   ;;  %v1214_v43 = vmax.f32 %v1195_v32, 0.0  ;;  %v4227_v19 = vld [vmem:[%s5700_s5 + $0x2b0] ss:$24 sps:$4 sm:$0xff]  }
 0x234   : > { %v1215_v42 = vmax.f32 %v1197_v34, 0.0  ;;  %1989 = vmatprep.subr.bf16.mxu1 %v4202_v30  ;;  %2338 = vmatprep.subr.bf16.mxu0 %v4250_v31  ;;  %v4229_v17 = vld [vmem:[%s5700_s5 + $0x2b4] ss:$24 sps:$4 sm:$0xff]   ;;  %v4232_v20 = vld [vmem:[%s5700_s5 + $0x2e4] ss:$24 sps:$4 sm:$0xff]  }
 0x235   : > { %v1216_v44 = vmax.f32 %v1199_v36, 0.0  ;;  %v4230_v25 = vld [vmem:[%s5700_s5 + $0x2e0] ss:$24 sps:$4 sm:$0xff]   ;;  %v4277_v26 = vld [vmem:[%s5702_s7 + $0xe4] ss:$8 sps:$4 sm:$0xff]  }
 0x236   : > { %v5080_v45 = vpack.c.bf16 %v1215_v42, %v1213_v41  ;;  %v4275_v27 = vld [vmem:[%s5702_s7 + $0xe0] ss:$8 sps:$4 sm:$0xff]   ;;  %v4284_v28 = vld [vmem:[%s5704_s9 + $0x10] ss:$8 sps:$4 sm:$0xff]   ;;  %v4289_v29 = vld [vmem:[%s5704_s9 + $0x24] ss:$8 sps:$4 sm:$0xff]  }
 0x237   : > { %v5082_v49 = vpack.c.bf16 %v1216_v44, %v1214_v43  ;;  %1990 = vmatpush1.bf16.msra.mxu1 %v4200_v39  ;;  %2339 = vmatpush1.bf16.msra.mxu0 %v4248_v40  ;;  %v4287_v30 = vld [vmem:[%s5704_s9 + $0x20] ss:$8 sps:$4 sm:$0xff]   ;;  %v4292_v31 = vld [vmem:[%s5704_s9 + $0x34] ss:$8 sps:$4 sm:$0xff]   ;;  %v4290_v32 = vld [vmem:[%s5704_s9 + $0x30] ss:$8 sps:$4 sm:$0xff]  }
 0x238   : > { %1991 = vmatprep.subr.bf16.mxu1 %v4205_v23  ;;  %2340 = vmatprep.subr.bf16.mxu0 %v4253_v24  ;;  %v4295_v33 = vld [vmem:[%s5704_s9 + $0x44] ss:$8 sps:$4 sm:$0xff]   ;;  %v4293_v34 = vld [vmem:[%s5704_s9 + $0x40] ss:$8 sps:$4 sm:$0xff]   ;;  %v4298_v35 = vld [vmem:[%s5704_s9 + $0x54] ss:$8 sps:$4 sm:$0xff]  }
 0x239   : > { %1895 = vmatprep.mubr.bf16.mxu1 %v5082_v49  ;;  %1968 = vmatprep.mubr.bf16.mxu0 %v5082_v49  ;;  %v4296_v36 = vld [vmem:[%s5704_s9 + $0x50] ss:$8 sps:$4 sm:$0xff]   ;;  %v4301_v39 = vld [vmem:[%s5704_s9 + $0x64] ss:$8 sps:$4 sm:$0xff]   ;;  %v4299_v40 = vld [vmem:[%s5704_s9 + $0x60] ss:$8 sps:$4 sm:$0xff]  }
 0x23a   : > { %1896 = vmatmul.mubr.bf16.gmra.mrb[28].mxu1 %v5080_v45  ;;  %1969 = vmatmul.mubr.bf16.gmra.mrb[28].mxu0 %v5080_v45  ;;  %v4304_v41 = vld [vmem:[%s5704_s9 + $0x74] ss:$8 sps:$4 sm:$0xff]   ;;  %v4302_v42 = vld [vmem:[%s5704_s9 + $0x70] ss:$8 sps:$4 sm:$0xff]   ;;  %v4307_v23 = vld [vmem:[%s5704_s9 + $0x84] ss:$8 sps:$4 sm:$0xff]  }
 0x23b   : > { %1992 = vmatpush1.bf16.msra.mxu1 %v4203_v53  ;;  %2011 = vmatprep.mubr.bf16.mxu1 %v4974_v38  ;;  %v4209_v38 = vld [vmem:[%s5700_s5 + $0x190] ss:$24 sps:$4 sm:$0xff]   ;;  %v4310_v43 = vld [vmem:[%s5704_s9 + $0x94] ss:$8 sps:$4 sm:$0xff]  }
 0x23c   : > { %1993 = vmatprep.subr.bf16.mxu1 %v4208_v54  ;;  %2341 = vmatpush1.bf16.msra.mxu0 %v4251_v55  ;;  %v4305_v24 = vld [vmem:[%s5704_s9 + $0x80] ss:$8 sps:$4 sm:$0xff]   ;;  %v4308_v44 = vld [vmem:[%s5704_s9 + $0x90] ss:$8 sps:$4 sm:$0xff]   ;;  %v4316_v53 = vld [vmem:[%s5704_s9 + $0xb4] ss:$8 sps:$4 sm:$0xff]  }
 0x23d   : > { %2342 = vmatprep.subr.bf16.mxu0 %v4256_v56  ;;  %v4314_v54 = vld [vmem:[%s5704_s9 + $0xb0] ss:$8 sps:$4 sm:$0xff]   ;;  %v4319_v55 = vld [vmem:[%s5704_s9 + $0xc4] ss:$8 sps:$4 sm:$0xff]   ;;  %v4317_v56 = vld [vmem:[%s5704_s9 + $0xc0] ss:$8 sps:$4 sm:$0xff]  }
 0x23f   : > { %1994 = vmatpush1.bf16.msra.mxu1 %v4206_v57  ;;  %v4322_v57 = vld [vmem:[%s5704_s9 + $0xd4] ss:$8 sps:$4 sm:$0xff]  }
 0x240   : > { %1995 = vmatprep.subr.bf16.mxu1 %v4211_v58  ;;  %2343 = vmatpush1.bf16.msra.mxu0 %v4254_v59  ;;  %v4320_v58 = vld [vmem:[%s5704_s9 + $0xd0] ss:$8 sps:$4 sm:$0xff]   ;;  %v4325_v59 = vld [vmem:[%s5704_s9 + $0xe4] ss:$8 sps:$4 sm:$0xff]  }
 0x241   : > { %2344 = vmatprep.subr.bf16.mxu0 %v4259_v60  ;;  %v4323_v60 = vld [vmem:[%s5704_s9 + $0xe0] ss:$8 sps:$4 sm:$0xff]  }
 0x243   : > { %1996 = vmatpush1.bf16.msra.mxu1 %v4209_v38  ;;  %v4328_v38 = vld [vmem:[%s5704_s9 + $0xf4] ss:$8 sps:$4 sm:$0xff]  }
 0x244   : > { %1997 = vmatprep.subr.bf16.mxu1 %v4214_v61  ;;  %2345 = vmatpush1.bf16.msra.mxu0 %v4257_v51  ;;  %v4326_v61 = vld [vmem:[%s5704_s9 + $0xf0] ss:$8 sps:$4 sm:$0xff]   ;;  %v4329_v51 = vld [vmem:[%s5706_s11 + $0x40] sm:$0xff]  }
 0x245   : > { %2346 = vmatprep.subr.bf16.mxu0 %v4262_v52  ;;  %v1333_v52 = vsub.s32 2, %v4815_v47 }
 0x247   : > { %1998 = vmatpush1.bf16.msra.mxu1 %v4212_v62  ;;  %v5313_v62 = vld [vmem:[%s5701_s6] sm:$0x3f] }
 0x248   : > { %1999 = vmatprep.subr.bf16.mxu1 %v4217_v1  ;;  %2347 = vmatpush1.bf16.msra.mxu0 %v4260_v2  ;;  %v1337_v1 = vsub.s32 3, %v4815_v47  ;;  %v5318_v2 = vrot.slane %v5313_v62, %v4818_v48 }
 0x249   : > { %2348 = vmatprep.subr.bf16.mxu0 %v4265_v3  ;;  %v5321_v3 = vrot.slane %v5313_v62, %v1333_v52 }
 0x24b   : > { %2000 = vmatpush1.bf16.msra.mxu1 %v4215_v4  ;;  %v5325_v4 = vrot.slane %v5313_v62, %v4824_v50 }
 0x24c   : > { %2001 = vmatprep.subr.bf16.mxu1 %v4220_v5  ;;  %2349 = vmatpush1.bf16.msra.mxu0 %v4263_v6  ;;  %v5328_v5 = vrot.slane %v5313_v62, %v1337_v1 }
 0x24d   : > { %2350 = vmatprep.subr.bf16.mxu0 %v4268_v7 }
 0x24f   : > { %2002 = vmatpush1.bf16.msra.mxu1 %v4218_v8 }
 0x250   : > { %2003 = vmatprep.subr.bf16.mxu1 %v4223_v9  ;;  %2351 = vmatpush1.bf16.msra.mxu0 %v4266_v10 }
 0x251   : > { %2352 = vmatprep.subr.bf16.mxu0 %v4271_v11 }
 0x253   : > { %2004 = vmatpush1.bf16.msra.mxu1 %v4221_v12 }
 0x254   : > { %2005 = vmatprep.subr.bf16.mxu1 %v4226_v13  ;;  %2353 = vmatpush1.bf16.msra.mxu0 %v4269_v14 }
 0x255   : > { %2354 = vmatprep.subr.bf16.mxu0 %v4274_v15 }
 0x257   : > { %2006 = vmatpush1.bf16.msra.mxu1 %v4224_v16 }
 0x258   : > { %2007 = vmatprep.subr.bf16.mxu1 %v4229_v17  ;;  %2355 = vmatpush1.bf16.msra.mxu0 %v4272_v18 }
 0x259   : > { %2356 = vmatprep.subr.bf16.mxu0 %v4277_v26 }
 0x25b   : > { %2008 = vmatpush1.bf16.msra.mxu1 %v4227_v19 }
 0x25c   : > { %2009 = vmatprep.subr.bf16.mxu1 %v4232_v20  ;;  %2357 = vmatpush1.bf16.msra.mxu0 %v4275_v27 }
 0x25f   : > { %2010 = vmatpush1.bf16.msra.mxu1 %v4230_v25 }
 0x262   : > { %2012 = vmatmul.mubr.bf16.vlgmr.msra.gmra.mrb[32].mxu1 %v4972_v37  ;;  %v4280_v37 = vld [vmem:[%s5702_s7 + $0xf4] ss:$8 sps:$4 sm:$0xff]  }
 0x263   : > { %2021 = vmatprep.mubr.bf16.mxu1 %v5010_v0  ;;  %2358 = vmatprep.subr.bf16.mxu0 %v4280_v37  ;;  %v4283_v0 = vld [vmem:[%s5704_s9 + $0x4] ss:$8 sps:$4 sm:$0xff]  }
 0x264   : > { %2629 = vmatprep.subr.bf16.mxu1 %v4283_v0 }
 0x26a   : > { %2022 = vmatmul.mubr.bf16.gmra.mrb[36].mxu1 %v5008_v63  ;;  %v4278_v63 = vld [vmem:[%s5702_s7 + $0xf0] ss:$8 sps:$4 sm:$0xff]  }
 0x26b   : > { %2031 = vmatprep.mubr.bf16.mxu1 %v5046_v22  ;;  %2359 = vmatpush1.bf16.msra.mxu0 %v4278_v63  ;;  %v4286_v22 = vld [vmem:[%s5704_s9 + $0x14] ss:$8 sps:$4 sm:$0xff]  }
 0x26c   : > { %3813 = vmatprep.subr.bf16.mxu0 %v4329_v51 }
 0x272   : > { %2032 = vmatmul.mubr.bf16.gmra.mrb[40].mxu1 %v5044_v21  ;;  %v4281_v21 = vld [vmem:[%s5704_s9] ss:$8 sps:$4 sm:$0xff]  }
 0x273   : > { %2041 = vmatprep.mubr.bf16.mxu1 %v5082_v49  ;;  %2630 = vmatpush1.bf16.msra.mxu1 %v4281_v21  ;;  %v4311_v49 = vld [vmem:[%s5704_s9 + $0xa0] ss:$8 sps:$4 sm:$0xff]  }
 0x274   : > { %2631 = vmatprep.subr.bf16.mxu1 %v4286_v22 }
 0x277   : > { %2632 = vmatpush1.bf16.msra.mxu1 %v4284_v28 }
 0x278   : > { %2633 = vmatprep.subr.bf16.mxu1 %v4289_v29 }
 0x27a   : > { %2042 = vmatmul.mubr.bf16.gmra.mrb[44].mxu1 %v5080_v45  ;;  %v4313_v45 = vld [vmem:[%s5704_s9 + $0xa4] ss:$8 sps:$4 sm:$0xff]  }
 0x27b   : > { %2634 = vmatpush1.bf16.msra.mxu1 %v4287_v30 }
 0x27c   : > { %2635 = vmatprep.subr.bf16.mxu1 %v4292_v31 }
 0x27f   : > { %2636 = vmatpush1.bf16.msra.mxu1 %v4290_v32 }
 0x280   : > { %2637 = vmatprep.subr.bf16.mxu1 %v4295_v33 }
 0x283   : > { %2638 = vmatpush1.bf16.msra.mxu1 %v4293_v34 }
 0x284   : > { %2639 = vmatprep.subr.bf16.mxu1 %v4298_v35  ;;  %v4330_v35 = vld [vmem:[%s5706_s11] sm:$0xff]  }
 0x287   : > { %2640 = vmatpush1.bf16.msra.mxu1 %v4296_v36 }
 0x288   : > { %2641 = vmatprep.subr.bf16.mxu1 %v4301_v39 }
 0x28b   : > { %2642 = vmatpush1.bf16.msra.mxu1 %v4299_v40 }
 0x28c   : > { %2643 = vmatprep.subr.bf16.mxu1 %v4304_v41 }
 0x28f   : > { %2644 = vmatpush1.bf16.msra.mxu1 %v4302_v42  ;;  %v4331_v42 = vld [vmem:[%s5706_s11 + $0x48] sm:$0xff]  }
 0x290   : > { %2645 = vmatprep.subr.bf16.mxu1 %v4307_v23 }
 0x293   : > { %2646 = vmatpush1.bf16.msra.mxu1 %v4305_v24 }
 0x294   : > { %2647 = vmatprep.subr.bf16.mxu1 %v4310_v43 }
 0x297   : > { %2648 = vmatpush1.bf16.msra.mxu1 %v4308_v44 }
 0x298   : > { %2649 = vmatprep.subr.bf16.mxu1 %v4313_v45 }
 0x29b   : > { %2650 = vmatpush1.bf16.msra.mxu1 %v4311_v49 }
 0x29c   : > { %2651 = vmatprep.subr.bf16.mxu1 %v4316_v53 }
 0x29f   : > { %2652 = vmatpush1.bf16.msra.mxu1 %v4314_v54 }
 0x2a0   : > { %2653 = vmatprep.subr.bf16.mxu1 %v4319_v55 }
 0x2a3   : > { %2654 = vmatpush1.bf16.msra.mxu1 %v4317_v56 }
 0x2a4   : > { %2655 = vmatprep.subr.bf16.mxu1 %v4322_v57  ;;  %v4332_v57 = vld [vmem:[%s5706_s11 + $0x8] sm:$0xff]  }
 0x2a7   : > { %2656 = vmatpush1.bf16.msra.mxu1 %v4320_v58 }
 0x2a8   : > { %2657 = vmatprep.subr.bf16.mxu1 %v4325_v59 }
 0x2ab   : > { %2658 = vmatpush1.bf16.msra.mxu1 %v4323_v60 }
 0x2ac   : > { %2659 = vmatprep.subr.bf16.mxu1 %v4328_v38 }
 0x2af   : > { %2660 = vmatpush1.bf16.msra.mxu1 %v4326_v61  ;;  %v4333_v61 = vld [vmem:[%s5706_s11 + $0x50] sm:$0xff]  }
 0x2f5   : > { %v1867_v6 = vpop.f32.mrb[16].mxu1  ;;  %v1940_v7 = vpop.f32.mrb[16].mxu0 }
 0x2f6   : > { %v1868_v8 = vadd.f32 %v1867_v6, %v5318_v2  ;;  %v1941_v9 = vadd.f32 %v1940_v7, %v5321_v3  ;;  %v1869_v10 = vpop.f32.mrb[17].mxu1  ;;  %v1942_v11 = vpop.f32.mrb[17].mxu0 }
 0x2f7   : > { %v1870_v12 = vadd.f32 %v1869_v10, %v5325_v4  ;;  %v1943_v13 = vadd.f32 %v1942_v11, %v5328_v5  ;;  %v1871_v14 = vpop.f32.mrb[18].mxu1  ;;  %v1944_v15 = vpop.f32.mrb[18].mxu0 }
 0x2f8   : > { %v1872_v16 = vadd.f32 %v1871_v14, %v5318_v2  ;;  %v1945_v17 = vadd.f32 %v1944_v15, %v5321_v3  ;;  %v1873_v18 = vpop.f32.mrb[19].mxu1  ;;  %v1946_v19 = vpop.f32.mrb[19].mxu0  ;;  %v2052_v26 = vmax.f32 %v1868_v8, 0.0  ;;  %v2054_v27 = vmax.f32 %v1941_v9, 0.0 }
 0x2f9   : > { %v1874_v20 = vadd.f32 %v1873_v18, %v5325_v4  ;;  %v1947_v25 = vadd.f32 %v1946_v19, %v5328_v5  ;;  %v2053_v0 = vmax.f32 %v1870_v12, 0.0  ;;  %v2055_v21 = vmax.f32 %v1943_v13, 0.0  ;;  %v4334_v13 = vld [vmem:[%s5706_s11 + $0x10] sm:$0xff]   ;;  %v4335_v18 = vld [vmem:[%s5706_s11 + $0x58] sm:$0xff]  }
 0x2fa   : > { %v2058_v37 = vmax.f32 %v1872_v16, 0.0  ;;  %v2060_v63 = vmax.f32 %v1945_v17, 0.0 }
 0x2fb   : > { %v2059_v22 = vmax.f32 %v1874_v20, 0.0  ;;  %v2061_v28 = vmax.f32 %v1947_v25, 0.0 }
 0x2fc   : > { %v2100_v29 = vpack.c.bf16 %v2058_v37, %v2052_v26  ;;  %v5338_v30 = vpack.c.bf16 %v2060_v63, %v2054_v27 }
 0x2fd   : > { %v2101_v31 = vpack.c.bf16 %v2059_v22, %v2053_v0  ;;  %v5340_v32 = vpack.c.bf16 %v2061_v28, %v2055_v21  ;;  %v1877_v33 = vpop.f32.mrb[20].mxu1  ;;  %v1950_v34 = vpop.f32.mrb[20].mxu0  ;;  %v4336_v28 = vld [vmem:[%s5706_s11 + $0x18] sm:$0xff]  }
 0x2fe   : > { %v1878_v36 = vadd.f32 %v1877_v33, %v5318_v2  ;;  %v1951_v39 = vadd.f32 %v1950_v34, %v5321_v3  ;;  %v1879_v40 = vpop.f32.mrb[21].mxu1  ;;  %v1952_v41 = vpop.f32.mrb[21].mxu0 }
 0x2ff   : > { %v1880_v23 = vadd.f32 %v1879_v40, %v5325_v4  ;;  %v1953_v24 = vadd.f32 %v1952_v41, %v5328_v5  ;;  %v1881_v43 = vpop.f32.mrb[22].mxu1  ;;  %v1954_v44 = vpop.f32.mrb[22].mxu0  ;;  %2360 = vmatprep.mubr.bf16.mxu0 %v2101_v31 }
 0x300   : > { %v1882_v45 = vadd.f32 %v1881_v43, %v5318_v2  ;;  %v1955_v49 = vadd.f32 %v1954_v44, %v5321_v3  ;;  %v1883_v53 = vpop.f32.mrb[23].mxu1  ;;  %v1956_v54 = vpop.f32.mrb[23].mxu0  ;;  %2361 = vmatmul.mubr.bf16.vlgmr.msra.gmra.mrb[32].mxu0 %v2100_v29  ;;  %v2064_v58 = vmax.f32 %v1878_v36, 0.0  ;;  %v2066_v59 = vmax.f32 %v1951_v39, 0.0 }
 0x301   : > { %v1884_v55 = vadd.f32 %v1883_v53, %v5325_v4  ;;  %v1957_v56 = vadd.f32 %v1956_v54, %v5328_v5  ;;  %3814 = vmatpush3.bf16.msra.mxu0 %v4330_v35  ;;  %v2065_v51 = vmax.f32 %v1880_v23, 0.0  ;;  %v2067_v52 = vmax.f32 %v1953_v24, 0.0  ;;  %v4337_v35 = vld [vmem:[%s5706_s11 + $0x60] sm:$0xff]  }
 0x302   : > { %v2070_v60 = vmax.f32 %v1882_v45, 0.0  ;;  %v2072_v38 = vmax.f32 %v1955_v49, 0.0  ;;  %3815 = vmatprep.subr.bf16.mxu0 %v4331_v42  ;;  %v4338_v49 = vld [vmem:[%s5706_s11 + $0x20] sm:$0xff]  }
 0x303   : > { %v2071_v1 = vmax.f32 %v1884_v55, 0.0  ;;  %v2073_v6 = vmax.f32 %v1957_v56, 0.0 }
 0x304   : > { %v2102_v7 = vpack.c.bf16 %v2070_v60, %v2064_v58  ;;  %v5362_v8 = vpack.c.bf16 %v2072_v38, %v2066_v59 }
 0x305   : > { %v2103_v9 = vpack.c.bf16 %v2071_v1, %v2065_v51  ;;  %v5364_v10 = vpack.c.bf16 %v2073_v6, %v2067_v52  ;;  %v1887_v11 = vpop.f32.mrb[24].mxu1  ;;  %v1960_v12 = vpop.f32.mrb[24].mxu0  ;;  %3816 = vmatpush3.bf16.msra.mxu0 %v4332_v57  ;;  %v4339_v57 = vld [vmem:[%s5706_s11 + $0x68] sm:$0xff]  }
 0x306   : > { %v1888_v14 = vadd.f32 %v1887_v11, %v5318_v2  ;;  %v1961_v15 = vadd.f32 %v1960_v12, %v5321_v3  ;;  %v1889_v16 = vpop.f32.mrb[25].mxu1  ;;  %v1962_v17 = vpop.f32.mrb[25].mxu0  ;;  %3817 = vmatprep.subr.bf16.mxu0 %v4333_v61 }
 0x307   : > { %v1890_v19 = vadd.f32 %v1889_v16, %v5325_v4  ;;  %v1963_v20 = vadd.f32 %v1962_v17, %v5328_v5  ;;  %v1891_v25 = vpop.f32.mrb[26].mxu1  ;;  %v1964_v26 = vpop.f32.mrb[26].mxu0  ;;  %2370 = vmatprep.mubr.bf16.mxu0 %v2103_v9 }
 0x308   : > { %v1892_v27 = vadd.f32 %v1891_v25, %v5318_v2  ;;  %v1965_v37 = vadd.f32 %v1964_v26, %v5321_v3  ;;  %v1893_v63 = vpop.f32.mrb[27].mxu1  ;;  %v1966_v0 = vpop.f32.mrb[27].mxu0  ;;  %2371 = vmatmul.mubr.bf16.gmra.mrb[36].mxu0 %v2102_v7  ;;  %v2076_v29 = vmax.f32 %v1888_v14, 0.0  ;;  %v2078_v31 = vmax.f32 %v1961_v15, 0.0 }
 0x309   : > { %v1894_v21 = vadd.f32 %v1893_v63, %v5325_v4  ;;  %v1967_v22 = vadd.f32 %v1966_v0, %v5328_v5  ;;  %3818 = vmatpush3.bf16.msra.mxu0 %v4334_v13  ;;  %v2077_v36 = vmax.f32 %v1890_v19, 0.0  ;;  %v2079_v39 = vmax.f32 %v1963_v20, 0.0 }
 0x30a   : > { %v2082_v33 = vmax.f32 %v1892_v27, 0.0  ;;  %v2084_v34 = vmax.f32 %v1965_v37, 0.0  ;;  %3819 = vmatprep.subr.bf16.mxu0 %v4335_v18 }
 0x30b   : > { %v2083_v40 = vmax.f32 %v1894_v21, 0.0  ;;  %v2085_v41 = vmax.f32 %v1967_v22, 0.0 }
 0x30c   : > { %v2104_v42 = vpack.c.bf16 %v2082_v33, %v2076_v29  ;;  %v5386_v23 = vpack.c.bf16 %v2084_v34, %v2078_v31 }
 0x30d   : > { %v2105_v24 = vpack.c.bf16 %v2083_v40, %v2077_v36  ;;  %v5388_v43 = vpack.c.bf16 %v2085_v41, %v2079_v39  ;;  %v1897_v44 = vpop.f32.mrb[28].mxu1  ;;  %v1970_v45 = vpop.f32.mrb[28].mxu0  ;;  %3820 = vmatpush3.bf16.msra.mxu0 %v4336_v28 }
 0x30e   : > { %v1898_v53 = vadd.f32 %v1897_v44, %v5318_v2  ;;  %v1971_v54 = vadd.f32 %v1970_v45, %v5321_v3  ;;  %v1899_v55 = vpop.f32.mrb[29].mxu1  ;;  %v1972_v56 = vpop.f32.mrb[29].mxu0  ;;  %3821 = vmatprep.subr.bf16.mxu0 %v4337_v35 }
 0x30f   : > { %v1900_v58 = vadd.f32 %v1899_v55, %v5325_v4  ;;  %v1973_v59 = vadd.f32 %v1972_v56, %v5328_v5  ;;  %v1901_v60 = vpop.f32.mrb[30].mxu1  ;;  %v1974_v38 = vpop.f32.mrb[30].mxu0  ;;  %2380 = vmatprep.mubr.bf16.mxu0 %v2105_v24 }
 0x310   : > { %v1902_v61 = vadd.f32 %v1901_v60, %v5318_v2  ;;  %v1975_v51 = vadd.f32 %v1974_v38, %v5321_v3  ;;  %v1903_v52 = vpop.f32.mrb[31].mxu1  ;;  %v1976_v1 = vpop.f32.mrb[31].mxu0  ;;  %2381 = vmatmul.mubr.bf16.gmra.mrb[40].mxu0 %v2104_v42  ;;  %v2088_v9 = vmax.f32 %v1898_v53, 0.0  ;;  %v2090_v11 = vmax.f32 %v1971_v54, 0.0 }
 0x311   : > { %v1904_v6 = vadd.f32 %v1903_v52, %v5325_v4  ;;  %v1977_v7 = vadd.f32 %v1976_v1, %v5328_v5  ;;  %3822 = vmatpush3.bf16.msra.mxu0 %v4338_v49  ;;  %v2089_v14 = vmax.f32 %v1900_v58, 0.0  ;;  %v2091_v15 = vmax.f32 %v1973_v59, 0.0 }
 0x312   : > { %v2094_v12 = vmax.f32 %v1902_v61, 0.0  ;;  %v2096_v13 = vmax.f32 %v1975_v51, 0.0  ;;  %3823 = vmatprep.subr.bf16.mxu0 %v4339_v57  ;;  %v1341_v4 = vsub.s32 4, %v4815_v47  ;;  %v1345_v5 = vsub.s32 5, %v4815_v47 }
 0x313   : > { %v2095_v16 = vmax.f32 %v1904_v6, 0.0  ;;  %v2097_v17 = vmax.f32 %v1977_v7, 0.0 }
 0x314   : > { %v2106_v2 = vpack.c.bf16 %v2094_v12, %v2088_v9  ;;  %v5404_v18 = vpack.c.bf16 %v2096_v13, %v2090_v11  ;;  %v1342_v20 = vrot.slane %v5313_v62, %v1341_v4  ;;  %v1346_v25 = vrot.slane %v5313_v62, %v1345_v5 }
 0x315   : > { %v2107_v3 = vpack.c.bf16 %v2095_v16, %v2089_v14  ;;  %v5406_v19 = vpack.c.bf16 %v2097_v17, %v2091_v15 }
 0x317   : > { %2390 = vmatprep.mubr.bf16.mxu0 %v2107_v3 }
 0x318   : > { %2391 = vmatmul.mubr.bf16.gmra.mrb[44].mxu0 %v2106_v2 }
 0x335   : > { %v2013_v26 = vpop.f32.mrb[32].mxu1 }
 0x336   : > { %v2014_v27 = vadd.f32 %v2013_v26, %v1342_v20  ;;  %v2015_v37 = vpop.f32.mrb[33].mxu1 }
 0x337   : > { %v2016_v63 = vadd.f32 %v2015_v37, %v1346_v25  ;;  %v2017_v0 = vpop.f32.mrb[34].mxu1 }
 0x338   : > { %v2018_v21 = vadd.f32 %v2017_v0, %v1342_v20  ;;  %v2019_v22 = vpop.f32.mrb[35].mxu1  ;;  %v2056_v29 = vmax.f32 %v2014_v27, 0.0  ;;  %v4340_v27 = vld [vmem:[%s5706_s11 + $0x28] sm:$0xff]  }
 0x339   : > { %v2020_v28 = vadd.f32 %v2019_v22, %v1346_v25  ;;  %v2057_v33 = vmax.f32 %v2016_v63, 0.0  ;;  %3824 = vmatpush3.bf16.msra.mxu0 %v4340_v27  ;;  %v4341_v22 = vld [vmem:[%s5706_s11 + $0x70] sm:$0xff]   ;;  %v4348_v27 = vld [vmem:[%s5706_s11 + $0x88] sm:$0xff]  }
 0x33a   : > { %v2062_v31 = vmax.f32 %v2018_v21, 0.0  ;;  %3825 = vmatprep.subr.bf16.mxu0 %v4341_v22 }
 0x33b   : > { %v2063_v34 = vmax.f32 %v2020_v28, 0.0  ;;  %v4344_v28 = vld [vmem:[%s5706_s11 + $0x38] sm:$0xff]  }
 0x33c   : > { %v2116_v35 = vpack.c.bf16 %v2062_v31, %v2056_v29  ;;  %v4345_v29 = vld [vmem:[%s5706_s11 + $0xc0] sm:$0xff]  }
 0x33d   : > { %v2117_v36 = vpack.c.bf16 %v2063_v34, %v2057_v33  ;;  %v2023_v39 = vpop.f32.mrb[36].mxu1  ;;  %v4361_v31 = vld [vmem:[%s5706_s11 + $0x140] sm:$0xff]   ;;  %v4363_v34 = vld [vmem:[%s5706_s11 + $0x148] sm:$0xff]  }
 0x33e   : > { %v2024_v47 = vadd.f32 %v2023_v39, %v1342_v20  ;;  %v2025_v40 = vpop.f32.mrb[37].mxu1  ;;  %3893 = vmatprep.subr.bf16.mxu1 %v4361_v31  ;;  %v4362_v33 = vld [vmem:[%s5706_s11 + $0x100] sm:$0xff]   ;;  %v4366_v39 = vld [vmem:[%s5706_s11 + $0x110] sm:$0xff]  }
 0x33f   : > { %v2026_v41 = vadd.f32 %v2025_v40, %v1346_v25  ;;  %v2027_v42 = vpop.f32.mrb[38].mxu1  ;;  %2661 = vmatprep.mubr.bf16.mxu1 %v2117_v36  ;;  %v4365_v36 = vld [vmem:[%s5706_s11 + $0x150] sm:$0xff]   ;;  %v4368_v40 = vld [vmem:[%s5706_s11 + $0x118] sm:$0xff]  }
 0x340   : > { %v2028_v62 = vadd.f32 %v2027_v42, %v1342_v20  ;;  %v2029_v24 = vpop.f32.mrb[39].mxu1  ;;  %2662 = vmatmul.mubr.bf16.vlgmr.msra.gmra.mrb[48].mxu1 %v2116_v35  ;;  %v2068_v45 = vmax.f32 %v2024_v47, 0.0  ;;  %v4364_v35 = vld [vmem:[%s5706_s11 + $0x108] sm:$0xff]   ;;  %v4367_v47 = vld [vmem:[%s5706_s11 + $0x158] sm:$0xff]   ;;  %v4370_v42 = vld [vmem:[%s5706_s11 + $0x120] sm:$0xff]  }
 0x341   : > { %v2030_v44 = vadd.f32 %v2029_v24, %v1346_v25  ;;  %v2069_v53 = vmax.f32 %v2026_v41, 0.0  ;;  %3894 = vmatpush3.bf16.msra.mxu1 %v4362_v33  ;;  %v4369_v41 = vld [vmem:[%s5706_s11 + $0x160] sm:$0xff]   ;;  %v4372_v24 = vld [vmem:[%s5706_s11 + $0x128] sm:$0xff]  }
 0x342   : > { %v2074_v49 = vmax.f32 %v2028_v62, 0.0  ;;  %3895 = vmatprep.subr.bf16.mxu1 %v4363_v34  ;;  %v4371_v62 = vld [vmem:[%s5706_s11 + $0x168] sm:$0xff]   ;;  %v4351_v34 = vld [vmem:[%s5706_s11 + $0xd8] sm:$0xff]  }
 0x343   : > { %v2075_v54 = vmax.f32 %v2030_v44, 0.0  ;;  %v4373_v44 = vld [vmem:[%s5706_s11 + $0x170] sm:$0xff]  }
 0x344   : > { %v2118_v55 = vpack.c.bf16 %v2074_v49, %v2068_v45  ;;  %v4374_v45 = vld [vmem:[%s5706_s11 + $0x130] sm:$0xff]   ;;  %v4375_v49 = vld [vmem:[%s5706_s11 + $0x178] sm:$0xff]  }
 0x345   : > { %v2119_v56 = vpack.c.bf16 %v2075_v54, %v2069_v53  ;;  %v2033_v57 = vpop.f32.mrb[40].mxu1  ;;  %3896 = vmatpush3.bf16.msra.mxu1 %v4364_v35  ;;  %v4376_v53 = vld [vmem:[%s5706_s11 + $0x138] sm:$0xff]   ;;  %v2156_v54 = vld [vmem:[%s5703_s8] sm:$0x3] }
 0x346   : > { %v2034_v58 = vadd.f32 %v2033_v57, %v1342_v20  ;;  %v2035_v59 = vpop.f32.mrb[41].mxu1  ;;  %3897 = vmatprep.subr.bf16.mxu1 %v4365_v36 }
 0x347   : > { %v2036_v60 = vadd.f32 %v2035_v59, %v1346_v25  ;;  %v2037_v38 = vpop.f32.mrb[42].mxu1  ;;  %2671 = vmatprep.mubr.bf16.mxu1 %v2119_v56  ;;  %v5485_v56 = vrot.slane %v2156_v54, %v4824_v50 }
 0x348   : > { %v2038_v61 = vadd.f32 %v2037_v38, %v1342_v20  ;;  %v2039_v51 = vpop.f32.mrb[43].mxu1  ;;  %2672 = vmatmul.mubr.bf16.gmra.mrb[52].mxu1 %v2118_v55  ;;  %v2080_v1 = vmax.f32 %v2034_v58, 0.0  ;;  %v5482_v55 = vrot.slane %v2156_v54, %v4818_v48 }
 0x349   : > { %v2040_v52 = vadd.f32 %v2039_v51, %v1346_v25  ;;  %v2081_v7 = vmax.f32 %v2036_v60, 0.0  ;;  %3898 = vmatpush3.bf16.msra.mxu1 %v4366_v39 }
 0x34a   : > { %v2086_v6 = vmax.f32 %v2038_v61, 0.0  ;;  %3899 = vmatprep.subr.bf16.mxu1 %v4367_v47 }
 0x34b   : > { %v2087_v9 = vmax.f32 %v2040_v52, 0.0 }
 0x34c   : > { %v2120_v11 = vpack.c.bf16 %v2086_v6, %v2080_v1 }
 0x34d   : > { %v2121_v12 = vpack.c.bf16 %v2087_v9, %v2081_v7  ;;  %v2043_v13 = vpop.f32.mrb[44].mxu1  ;;  %3900 = vmatpush3.bf16.msra.mxu1 %v4368_v40 }
 0x34e   : > { %v2044_v14 = vadd.f32 %v2043_v13, %v1342_v20  ;;  %v2045_v15 = vpop.f32.mrb[45].mxu1  ;;  %3901 = vmatprep.subr.bf16.mxu1 %v4369_v41  ;;  %v4352_v41 = vld [vmem:[%s5706_s11 + $0x98] sm:$0xff]  }
 0x34f   : > { %v2046_v16 = vadd.f32 %v2045_v15, %v1346_v25  ;;  %v2047_v17 = vpop.f32.mrb[46].mxu1  ;;  %2681 = vmatprep.mubr.bf16.mxu1 %v2121_v12 }
 0x350   : > { %v2048_v2 = vadd.f32 %v2047_v17, %v1342_v20  ;;  %v2049_v3 = vpop.f32.mrb[47].mxu1  ;;  %2682 = vmatmul.mubr.bf16.gmra.mrb[56].mxu1 %v2120_v11  ;;  %v2092_v5 = vmax.f32 %v2044_v14, 0.0  ;;  %v4342_v20 = vld [vmem:[%s5706_s11 + $0x30] sm:$0xff]   ;;  %v4346_v14 = vld [vmem:[%s5706_s11 + $0x80] sm:$0xff]   ;;  %v4347_v17 = vld [vmem:[%s5706_s11 + $0xc8] sm:$0xff]  }
 0x351   : > { %v2050_v4 = vadd.f32 %v2049_v3, %v1346_v25  ;;  %v2093_v37 = vmax.f32 %v2046_v16, 0.0  ;;  %3826 = vmatpush3.bf16.msra.mxu0 %v4342_v20  ;;  %v4343_v25 = vld [vmem:[%s5706_s11 + $0x78] sm:$0xff]   ;;  %3902 = vmatpush3.bf16.msra.mxu1 %v4370_v42 }
 0x352   : > { %v2098_v26 = vmax.f32 %v2048_v2, 0.0  ;;  %3827 = vmatprep.subr.bf16.mxu0 %v4343_v25  ;;  %3903 = vmatprep.subr.bf16.mxu1 %v4371_v62 }
 0x353   : > { %v2099_v63 = vmax.f32 %v2050_v4, 0.0 }
 0x354   : > { %v2122_v0 = vpack.c.bf16 %v2098_v26, %v2092_v5 }
 0x355   : > { %v2123_v21 = vpack.c.bf16 %v2099_v63, %v2093_v37  ;;  %3828 = vmatpush3.bf16.msra.mxu0 %v4344_v28  ;;  %3904 = vmatpush3.bf16.msra.mxu1 %v4372_v24  ;;  %v4353_v24 = vld [vmem:[%s5706_s11 + $0xe0] sm:$0xff]  }
 0x356   : > { %3853 = vmatprep.subr.bf16.mxu0 %v4345_v29  ;;  %3905 = vmatprep.subr.bf16.mxu1 %v4373_v44  ;;  %v4350_v29 = vld [vmem:[%s5706_s11 + $0x90] sm:$0xff]  }
 0x357   : > { %2691 = vmatprep.mubr.bf16.mxu1 %v2123_v21 }
 0x358   : > { %2692 = vmatmul.mubr.bf16.gmra.mrb[60].mxu1 %v2122_v0  ;;  %v4349_v0 = vld [vmem:[%s5706_s11 + $0xd0] sm:$0xff]  }
 0x359   : > { %3906 = vmatpush3.bf16.msra.mxu1 %v4374_v45 }
 0x35a   : > { %3907 = vmatprep.subr.bf16.mxu1 %v4375_v49 }
 0x35d   : > { %3908 = vmatpush3.bf16.msra.mxu1 %v4376_v53 }
 0x3d3   : > { %v2362_v57 = vpop.f32.mrb[32].mxu0 }
 0x3d4   : > { %v2363_v58 = vadd.f32 %v2362_v57, %v5482_v55  ;;  %v2364_v59 = vpop.f32.mrb[33].mxu0  ;;  %v4354_v57 = vld [vmem:[%s5706_s11 + $0xa0] sm:$0xff]  }
 0x3d5   : > { %v2365_v60 = vadd.f32 %v2364_v59, %v5485_v56  ;;  %v2366_v38 = vpop.f32.mrb[34].mxu0 }
 0x3d6   : > { %v2367_v61 = vadd.f32 %v2366_v38, %v5482_v55  ;;  %v2368_v51 = vpop.f32.mrb[35].mxu0  ;;  %v2401_v1 = vmax.f32 %v2363_v58, 0.0 }
 0x3d7   : > { %v2369_v52 = vadd.f32 %v2368_v51, %v5485_v56  ;;  %v2402_v7 = vmax.f32 %v2365_v60, 0.0  ;;  %v4355_v60 = vld [vmem:[%s5706_s11 + $0xe8] sm:$0xff]  }
 0x3d8   : > { %v2403_v6 = vmax.f32 %v2367_v61, 0.0 }
 0x3d9   : > { %v2404_v9 = vmax.f32 %v2369_v52, 0.0 }
 0x3da   : > { %v2417_v11 = vpack.c.bf16 %v2403_v6, %v2401_v1  ;;  %v4356_v6 = vld [vmem:[%s5706_s11 + $0xa8] sm:$0xff]  }
 0x3db   : > { %v2418_v12 = vpack.c.bf16 %v2404_v9, %v2402_v7  ;;  %v2372_v13 = vpop.f32.mrb[36].mxu0 }
 0x3dc   : > { %v2373_v15 = vadd.f32 %v2372_v13, %v5482_v55  ;;  %v2374_v16 = vpop.f32.mrb[37].mxu0 }
 0x3dd   : > { %v2375_v2 = vadd.f32 %v2374_v16, %v5485_v56  ;;  %v2376_v3 = vpop.f32.mrb[38].mxu0  ;;  %3149 = vmatprep.mubr.bf16.mxu0 %v2418_v12  ;;  %v4360_v16 = vld [vmem:[%s5706_s11 + $0xb8] sm:$0xff]  }
 0x3de   : > { %v2377_v4 = vadd.f32 %v2376_v3, %v5482_v55  ;;  %v2378_v5 = vpop.f32.mrb[39].mxu0  ;;  %3150 = vmatmul.mubr.bf16.vlgmr.msra.gmra.mrb[48].mxu0 %v2417_v11  ;;  %v2405_v37 = vmax.f32 %v2373_v15, 0.0  ;;  %v4357_v11 = vld [vmem:[%s5706_s11 + $0xf0] sm:$0xff]   ;;  %v4359_v15 = vld [vmem:[%s5706_s11 + $0xf8] sm:$0xff]  }
 0x3df   : > { %v2379_v26 = vadd.f32 %v2378_v5, %v5485_v56  ;;  %3854 = vmatpush3.bf16.msra.mxu0 %v4346_v14  ;;  %v2406_v21 = vmax.f32 %v2375_v2, 0.0 }
 0x3e0   : > { %v2407_v63 = vmax.f32 %v2377_v4, 0.0  ;;  %3855 = vmatprep.subr.bf16.mxu0 %v4347_v17  ;;  %v2457_v17 = vld [vmem:[%s5705_s10] sm:$0x3] }
 0x3e1   : > { %v2408_v22 = vmax.f32 %v2379_v26, 0.0  ;;  %v2466_v2 = vrot.slane %v2457_v17, %v4824_v50 }
 0x3e2   : > { %v2419_v20 = vpack.c.bf16 %v2407_v63, %v2405_v37 }
 0x3e3   : > { %v2420_v25 = vpack.c.bf16 %v2408_v22, %v2406_v21  ;;  %v2382_v28 = vpop.f32.mrb[40].mxu0  ;;  %3856 = vmatpush3.bf16.msra.mxu0 %v4348_v27 }
 0x3e4   : > { %v2383_v31 = vadd.f32 %v2382_v28, %v5482_v55  ;;  %v2384_v33 = vpop.f32.mrb[41].mxu0  ;;  %3857 = vmatprep.subr.bf16.mxu0 %v4349_v0 }
 0x3e5   : > { %v2385_v35 = vadd.f32 %v2384_v33, %v5485_v56  ;;  %v2386_v36 = vpop.f32.mrb[42].mxu0  ;;  %3157 = vmatprep.mubr.bf16.mxu0 %v2420_v25 }
 0x3e6   : > { %v2387_v39 = vadd.f32 %v2386_v36, %v5482_v55  ;;  %v2388_v47 = vpop.f32.mrb[43].mxu0  ;;  %3158 = vmatmul.mubr.bf16.gmra.mrb[52].mxu0 %v2419_v20  ;;  %v2409_v42 = vmax.f32 %v2383_v31, 0.0 }
 0x3e7   : > { %v2389_v40 = vadd.f32 %v2388_v47, %v5485_v56  ;;  %3858 = vmatpush3.bf16.msra.mxu0 %v4350_v29  ;;  %v2410_v44 = vmax.f32 %v2385_v35, 0.0 }
 0x3e8   : > { %v2411_v62 = vmax.f32 %v2387_v39, 0.0  ;;  %3859 = vmatprep.subr.bf16.mxu0 %v4351_v34 }
 0x3e9   : > { %v2412_v45 = vmax.f32 %v2389_v40, 0.0 }
 0x3ea   : > { %v2421_v49 = vpack.c.bf16 %v2411_v62, %v2409_v42 }
 0x3eb   : > { %v2422_v53 = vpack.c.bf16 %v2412_v45, %v2410_v44  ;;  %v2392_v54 = vpop.f32.mrb[44].mxu0  ;;  %3860 = vmatpush3.bf16.msra.mxu0 %v4352_v41 }
 0x3ec   : > { %v2393_v58 = vadd.f32 %v2392_v54, %v5482_v55  ;;  %v2394_v59 = vpop.f32.mrb[45].mxu0  ;;  %3861 = vmatprep.subr.bf16.mxu0 %v4353_v24 }
 0x3ed   : > { %v2395_v38 = vadd.f32 %v2394_v59, %v5485_v56  ;;  %v2396_v61 = vpop.f32.mrb[46].mxu0  ;;  %3165 = vmatprep.mubr.bf16.mxu0 %v2422_v53 }
 0x3ee   : > { %v2397_v51 = vadd.f32 %v2396_v61, %v5482_v55  ;;  %v2398_v52 = vpop.f32.mrb[47].mxu0  ;;  %3166 = vmatmul.mubr.bf16.gmra.mrb[56].mxu0 %v2421_v49  ;;  %v2413_v7 = vmax.f32 %v2393_v58, 0.0 }
 0x3ef   : > { %v2399_v1 = vadd.f32 %v2398_v52, %v5485_v56  ;;  %3862 = vmatpush3.bf16.msra.mxu0 %v4354_v57  ;;  %v2414_v12 = vmax.f32 %v2395_v38, 0.0  ;;  %v4358_v56 = vld [vmem:[%s5706_s11 + $0xb0] sm:$0xff]  }
 0x3f0   : > { %v2415_v9 = vmax.f32 %v2397_v51, 0.0  ;;  %3863 = vmatprep.subr.bf16.mxu0 %v4355_v60 }
 0x3f1   : > { %v2416_v13 = vmax.f32 %v2399_v1, 0.0 }
 0x3f2   : > { %v2423_v14 = vpack.c.bf16 %v2415_v9, %v2413_v7 }
 0x3f3   : > { %v2424_v55 = vpack.c.bf16 %v2416_v13, %v2414_v12  ;;  %3864 = vmatpush3.bf16.msra.mxu0 %v4356_v6 }
 0x3f4   : > { %3865 = vmatprep.subr.bf16.mxu0 %v4357_v11 }
 0x3f5   : > { %3173 = vmatprep.mubr.bf16.mxu0 %v2424_v55 }
 0x3f6   : > { %3174 = vmatmul.mubr.bf16.gmra.mrb[60].mxu0 %v2423_v14 }
 0x3f7   : > { %3866 = vmatpush3.bf16.msra.mxu0 %v4358_v56  ;;  %3214 = vmatprep.mubr.bf16.mxu0 %v5340_v32  ;;  %v2462_v32 = vrot.slane %v2457_v17, %v4818_v48 }
 0x3f8   : > { %3867 = vmatprep.subr.bf16.mxu0 %v4359_v15 }
 0x3fb   : > { %3868 = vmatpush3.bf16.msra.mxu0 %v4360_v16 }
 0x3fe   : > { %3215 = vmatmul.mubr.bf16.vlgmr.msra.gmra.mrb[64].mxu0 %v5338_v30 }
 0x3ff   : > { %3222 = vmatprep.mubr.bf16.mxu0 %v5364_v10 }
 0x406   : > { %3223 = vmatmul.mubr.bf16.gmra.mrb[68].mxu0 %v5362_v8 }
 0x407   : > { %3230 = vmatprep.mubr.bf16.mxu0 %v5388_v43 }
 0x40e   : > { %3231 = vmatmul.mubr.bf16.gmra.mrb[72].mxu0 %v5386_v23 }
 0x40f   : > { %3238 = vmatprep.mubr.bf16.mxu0 %v5406_v19 }
 0x413   : > { %v2663_v3 = vpop.f32.mrb[48].mxu1 }
 0x414   : > { %v2664_v30 = vadd.f32 %v2663_v3, %v2462_v32  ;;  %v2665_v4 = vpop.f32.mrb[49].mxu1 }
 0x415   : > { %v2666_v10 = vadd.f32 %v2665_v4, %v2466_v2  ;;  %v2667_v5 = vpop.f32.mrb[50].mxu1 }
 0x416   : > { %v2668_v8 = vadd.f32 %v2667_v5, %v2462_v32  ;;  %v2669_v26 = vpop.f32.mrb[51].mxu1  ;;  %3239 = vmatmul.mubr.bf16.gmra.mrb[76].mxu0 %v5404_v18  ;;  %v2702_v27 = vmax.f32 %v2664_v30, 0.0 }
 0x417   : > { %v2670_v43 = vadd.f32 %v2669_v26, %v2466_v2  ;;  %v2703_v63 = vmax.f32 %v2666_v10, 0.0 }
 0x418   : > { %v2704_v37 = vmax.f32 %v2668_v8, 0.0 }
 0x419   : > { %v2705_v23 = vmax.f32 %v2670_v43, 0.0 }
 0x41a   : > { %v2718_v0 = vpack.c.bf16 %v2704_v37, %v2702_v27 }
 0x41b   : > { %v2719_v19 = vpack.c.bf16 %v2705_v23, %v2703_v63  ;;  %v2673_v21 = vpop.f32.mrb[52].mxu1 }
 0x41c   : > { %v2674_v48 = vadd.f32 %v2673_v21, %v2462_v32  ;;  %v2675_v22 = vpop.f32.mrb[53].mxu1 }
 0x41d   : > { %v2676_v50 = vadd.f32 %v2675_v22, %v2466_v2  ;;  %v2677_v20 = vpop.f32.mrb[54].mxu1  ;;  %3279 = vmatprep.mubr.bf16.mxu1 %v2719_v19 }
 0x41e   : > { %v2678_v25 = vadd.f32 %v2677_v20, %v2462_v32  ;;  %v2679_v28 = vpop.f32.mrb[55].mxu1  ;;  %3280 = vmatmul.mubr.bf16.vlgmr.msra.gmra.mrb[64].mxu1 %v2718_v0  ;;  %v2706_v31 = vmax.f32 %v2674_v48, 0.0 }
 0x41f   : > { %v2680_v29 = vadd.f32 %v2679_v28, %v2466_v2  ;;  %v2707_v18 = vmax.f32 %v2676_v50, 0.0  ;;  %v3754_v50 = vld [vmem:[%s5707_s12] ss:$0 sm:$0xff] }
 0x420   : > { %v2708_v33 = vmax.f32 %v2678_v25, 0.0 }
 0x421   : > { %v2709_v34 = vmax.f32 %v2680_v29, 0.0 }
 0x422   : > { %v2720_v35 = vpack.c.bf16 %v2708_v33, %v2706_v31 }
 0x423   : > { %v2721_v36 = vpack.c.bf16 %v2709_v34, %v2707_v18  ;;  %v2683_v39 = vpop.f32.mrb[56].mxu1 }
 0x424   : > { %v2684_v47 = vadd.f32 %v2683_v39, %v2462_v32  ;;  %v2685_v40 = vpop.f32.mrb[57].mxu1 }
 0x425   : > { %v2686_v41 = vadd.f32 %v2685_v40, %v2466_v2  ;;  %v2687_v42 = vpop.f32.mrb[58].mxu1  ;;  %3287 = vmatprep.mubr.bf16.mxu1 %v2721_v36 }
 0x426   : > { %v2688_v62 = vadd.f32 %v2687_v42, %v2462_v32  ;;  %v2689_v24 = vpop.f32.mrb[59].mxu1  ;;  %3288 = vmatmul.mubr.bf16.gmra.mrb[68].mxu1 %v2720_v35  ;;  %v2710_v45 = vmax.f32 %v2684_v47, 0.0 }
 0x427   : > { %v2690_v44 = vadd.f32 %v2689_v24, %v2466_v2  ;;  %v2711_v53 = vmax.f32 %v2686_v41, 0.0 }
 0x428   : > { %v2712_v49 = vmax.f32 %v2688_v62, 0.0 }
 0x429   : > { %v2713_v54 = vmax.f32 %v2690_v44, 0.0 }
 0x42a   : > { %v2722_v57 = vpack.c.bf16 %v2712_v49, %v2710_v45 }
 0x42b   : > { %v2723_v58 = vpack.c.bf16 %v2713_v54, %v2711_v53  ;;  %v2693_v59 = vpop.f32.mrb[60].mxu1 }
 0x42c   : > { %v2694_v60 = vadd.f32 %v2693_v59, %v2462_v32  ;;  %v2695_v38 = vpop.f32.mrb[61].mxu1 }
 0x42d   : > { %v2696_v61 = vadd.f32 %v2695_v38, %v2466_v2  ;;  %v2697_v51 = vpop.f32.mrb[62].mxu1  ;;  %3295 = vmatprep.mubr.bf16.mxu1 %v2723_v58 }
 0x42e   : > { %v2698_v52 = vadd.f32 %v2697_v51, %v2462_v32  ;;  %v2699_v1 = vpop.f32.mrb[63].mxu1  ;;  %3296 = vmatmul.mubr.bf16.gmra.mrb[72].mxu1 %v2722_v57  ;;  %v2714_v7 = vmax.f32 %v2694_v60, 0.0 }
 0x42f   : > { %v2700_v6 = vadd.f32 %v2699_v1, %v2466_v2  ;;  %v2715_v11 = vmax.f32 %v2696_v61, 0.0 }
 0x430   : > { %v2716_v9 = vmax.f32 %v2698_v52, 0.0 }
 0x431   : > { %v2717_v12 = vmax.f32 %v2700_v6, 0.0 }
 0x432   : > { %v2724_v13 = vpack.c.bf16 %v2716_v9, %v2714_v7 }
 0x433   : > { %v2725_v14 = vpack.c.bf16 %v2717_v12, %v2715_v11 }
 0x435   : > { %3303 = vmatprep.mubr.bf16.mxu1 %v2725_v14 }
 0x436   : > { %3304 = vmatmul.mubr.bf16.gmra.mrb[76].mxu1 %v2724_v13 }
 0x4b1   : > { %v3829_v55 = vpop.f32.mrb[48].mxu0 }
 0x4b2   : > { %v3830_v56 = vpop.f32.mrb[49].mxu0 }
 0x4b3   : > { %v3831_v15 = vadd.f32 %v3830_v56, %v3829_v55  ;;  %v3832_v16 = vpop.f32.mrb[50].mxu0  ;;  %v5565_v56 = vand.u32 127, %v499_v46 }
 0x4b4   : > { %v3833_v17 = vpop.f32.mrb[51].mxu0 }
 0x4b5   : > { %v3834_v3 = vadd.f32 %v3833_v17, %v3832_v16  ;;  %v3152_v28 = vadd.f32 %v3831_v15, %v3754_v50  ;;  %vm3314_vm2 = vcmp.ge.s32.totalorder %v5565_v56, 4  ;;  %vm3315_vm3 = vcmp.lt.s32.totalorder %v5565_v56, 36 }
 0x4b6   : > { %vm5571_vm4 = vmand %vm3314_vm2, %vm3315_vm3  ;;  %vm3365_vm5 = vcmp.eq.s32.totalorder %v5565_v56, 3 }
 0x4b7   : > { %v3155_v18 = vadd.f32 %v3834_v3, %v3754_v50 }
 0x4b9   : > { %v3835_v30 = vpop.f32.mrb[52].mxu0 }
 0x4ba   : > { %v3836_v4 = vpop.f32.mrb[53].mxu0 }
 0x4bb   : > { %v3837_v32 = vadd.f32 %v3836_v4, %v3835_v30  ;;  %v3838_v10 = vpop.f32.mrb[54].mxu0 }
 0x4bc   : > { %v3839_v5 = vpop.f32.mrb[55].mxu0 }
 0x4bd   : > { %v3840_v2 = vadd.f32 %v3839_v5, %v3838_v10  ;;  %v3160_v40 = vadd.f32 %v3837_v32, %v3754_v50 }
 0x4bf   : > { %v3163_v24 = vadd.f32 %v3840_v2, %v3754_v50 }
 0x4c1   : > { %v3841_v8 = vpop.f32.mrb[56].mxu0 }
 0x4c2   : > { %v3842_v26 = vpop.f32.mrb[57].mxu0 }
 0x4c3   : > { %v3843_v43 = vadd.f32 %v3842_v26, %v3841_v8  ;;  %v3844_v27 = vpop.f32.mrb[58].mxu0 }
 0x4c4   : > { %v3845_v37 = vpop.f32.mrb[59].mxu0 }
 0x4c5   : > { %v3846_v63 = vadd.f32 %v3845_v37, %v3844_v27  ;;  %v3168_v57 = vadd.f32 %v3843_v43, %v3754_v50 }
 0x4c7   : > { %v3171_v38 = vadd.f32 %v3846_v63, %v3754_v50 }
 0x4c9   : > { %v3847_v23 = vpop.f32.mrb[60].mxu0 }
 0x4ca   : > { %v3848_v0 = vpop.f32.mrb[61].mxu0 }
 0x4cb   : > { %v3849_v19 = vadd.f32 %v3848_v0, %v3847_v23  ;;  %v3850_v21 = vpop.f32.mrb[62].mxu0 }
 0x4cc   : > { %v3851_v48 = vpop.f32.mrb[63].mxu0 }
 0x4cd   : > { %v3852_v22 = vadd.f32 %v3851_v48, %v3850_v21  ;;  %v3176_v7 = vadd.f32 %v3849_v19, %v3754_v50 }
 0x4cf   : > { %v3179_v13 = vadd.f32 %v3852_v22, %v3754_v50 }
 0x4d1   : > { %v3869_v20 = vpop.f32.mrb[64].mxu0 }
 0x4d2   : > { %v3870_v25 = vpop.f32.mrb[65].mxu0 }
 0x4d3   : > { %v3871_v29 = vadd.f32 %v3870_v25, %v3869_v20  ;;  %v3872_v31 = vpop.f32.mrb[66].mxu0 }
 0x4d4   : > { %v3873_v33 = vpop.f32.mrb[67].mxu0 }
 0x4d5   : > { %v3217_v34 = vadd.f32 %v3871_v29, %v3152_v28  ;;  %v3874_v35 = vadd.f32 %v3873_v33, %v3872_v31 }
 0x4d7   : > { %v3220_v36 = vadd.f32 %v3874_v35, %v3155_v18 }
 0x4d9   : > { %v3875_v39 = vpop.f32.mrb[68].mxu0 }
 0x4da   : > { %v3876_v47 = vpop.f32.mrb[69].mxu0 }
 0x4db   : > { %v3877_v41 = vadd.f32 %v3876_v47, %v3875_v39  ;;  %v3878_v42 = vpop.f32.mrb[70].mxu0 }
 0x4dc   : > { %v3879_v62 = vpop.f32.mrb[71].mxu0 }
 0x4dd   : > { %v3225_v44 = vadd.f32 %v3877_v41, %v3160_v40  ;;  %v3880_v45 = vadd.f32 %v3879_v62, %v3878_v42 }
 0x4df   : > { %v3228_v49 = vadd.f32 %v3880_v45, %v3163_v24 }
 0x4e1   : > { %v3881_v53 = vpop.f32.mrb[72].mxu0 }
 0x4e2   : > { %v3882_v54 = vpop.f32.mrb[73].mxu0 }
 0x4e3   : > { %v3883_v58 = vadd.f32 %v3882_v54, %v3881_v53  ;;  %v3884_v59 = vpop.f32.mrb[74].mxu0 }
 0x4e4   : > { %v3885_v60 = vpop.f32.mrb[75].mxu0 }
 0x4e5   : > { %v3233_v61 = vadd.f32 %v3883_v58, %v3168_v57  ;;  %v3886_v51 = vadd.f32 %v3885_v60, %v3884_v59 }
 0x4e7   : > { %v3236_v52 = vadd.f32 %v3886_v51, %v3171_v38 }
 0x4e9   : > { %v3887_v1 = vpop.f32.mrb[76].mxu0 }
 0x4ea   : > { %v3888_v6 = vpop.f32.mrb[77].mxu0 }
 0x4eb   : > { %v3889_v9 = vadd.f32 %v3888_v6, %v3887_v1  ;;  %v3890_v11 = vpop.f32.mrb[78].mxu0 }
 0x4ec   : > { %v3891_v12 = vpop.f32.mrb[79].mxu0 }
 0x4ed   : > { %v3241_v14 = vadd.f32 %v3889_v9, %v3176_v7  ;;  %v3892_v55 = vadd.f32 %v3891_v12, %v3890_v11 }
 0x4ef   : > { %v3244_v15 = vadd.f32 %v3892_v55, %v3179_v13 }
 0x4f1   : > { %v3909_v16 = vpop.f32.mrb[64].mxu1 }
 0x4f2   : > { %v3910_v17 = vpop.f32.mrb[65].mxu1 }
 0x4f3   : > { %v3911_v3 = vadd.f32 %v3910_v17, %v3909_v16  ;;  %v3912_v30 = vpop.f32.mrb[66].mxu1 }
 0x4f4   : > { %v3913_v4 = vpop.f32.mrb[67].mxu1 }
 0x4f5   : > { %v5569_v32 = vadd.f32 %v3911_v3, %v3217_v34  ;;  %v3914_v10 = vadd.f32 %v3913_v4, %v3912_v30 }
 0x4f7   : > { %v5575_v2 = vadd.f32 %v3914_v10, %v3220_v36  ;;  %v3317_v46 = vmul.f32 %v5569_v32, %v5569_v32  ;;  %v3803_v38 = vmul.f32 -1.442695, %v5569_v32 }
 0x4f9   : > { %v3915_v8 = vpop.f32.mrb[68].mxu1  ;;  %v3325_v26 = vsel %vm5571_vm4, %v3317_v46, 0.0  ;;  %v3318_v43 = vmul.f32 %v5575_v2, %v5575_v2  ;;  %4377 = vpow2.f32 %v3803_v38 }
 0x4fa   : > { %v3916_v27 = vpop.f32.mrb[69].mxu1  ;;  %3333 = vadd.xlane.f32.xlu0 %v3325_v26 }
 0x4fb   : > { %v3917_v37 = vadd.f32 %v3916_v27, %v3915_v8  ;;  %v3918_v63 = vpop.f32.mrb[70].mxu1  ;;  %v3326_v21 = vsel %vm5571_vm4, %v3318_v43, 0.0 }
 0x4fc   : > { %v3919_v23 = vpop.f32.mrb[71].mxu1 }
 0x4fd   : > { %v5583_v0 = vadd.f32 %v3917_v37, %v3225_v44  ;;  %v3920_v19 = vadd.f32 %v3919_v23, %v3918_v63 }
 0x4fe   : > { %3335 = vadd.xlane.f32.xlu0 %v3326_v21 }
 0x4ff   : > { %v5587_v48 = vadd.f32 %v3920_v19, %v3228_v49  ;;  %v3319_v22 = vmul.f32 %v5583_v0, %v5583_v0  ;;  %v3805_v51 = vmul.f32 -1.442695, %v5583_v0 }
 0x501   : > { %v3921_v50 = vpop.f32.mrb[72].mxu1  ;;  %v3327_v20 = vsel %vm5571_vm4, %v3319_v22, 0.0  ;;  %v3320_v25 = vmul.f32 %v5587_v48, %v5587_v48  ;;  %v3806_v1 = vmul.f32 -1.442695, %v5587_v48 }
 0x502   : > { %v3922_v28 = vpop.f32.mrb[73].mxu1  ;;  %3337 = vadd.xlane.f32.xlu1 %v3327_v20 }
 0x503   : > { %v3923_v29 = vadd.f32 %v3922_v28, %v3921_v50  ;;  %v3924_v31 = vpop.f32.mrb[74].mxu1  ;;  %v3328_v35 = vsel %vm5571_vm4, %v3320_v25, 0.0 }
 0x504   : > { %v3925_v33 = vpop.f32.mrb[75].mxu1 }
 0x505   : > { %v5595_v18 = vadd.f32 %v3923_v29, %v3233_v61  ;;  %v3926_v34 = vadd.f32 %v3925_v33, %v3924_v31  ;;  %v3804_v61 = vmul.f32 -1.442695, %v5575_v2 }
 0x506   : > { %3339 = vadd.xlane.f32.xlu1 %v3328_v35 }
 0x507   : > { %v5599_v36 = vadd.f32 %v3926_v34, %v3236_v52  ;;  %v3321_v39 = vmul.f32 %v5595_v18, %v5595_v18  ;;  %4379 = vpow2.f32 %v3804_v61  ;;  %v4378_v52 = vpop.eup %4377  ;;  %v3807_v9 = vmul.f32 -1.442695, %v5595_v18 }
 0x508   : > { %4381 = vpow2.f32 %v3805_v51  ;;  %v3390_v6 = vadd.f32 1.0, %v4378_v52 }
 0x509   : > { %v3927_v47 = vpop.f32.mrb[76].mxu1  ;;  %v3329_v40 = vsel %vm5571_vm4, %v3321_v39, 0.0  ;;  %v3322_v41 = vmul.f32 %v5599_v36, %v5599_v36  ;;  %4383 = vpow2.f32 %v3806_v1  ;;  %v3808_v12 = vmul.f32 -1.442695, %v5599_v36 }
 0x50a   : > { %v3928_v42 = vpop.f32.mrb[77].mxu1  ;;  %3341 = vadd.xlane.f32.xlu0 %v3329_v40 }
 0x50b   : > { %v3929_v62 = vadd.f32 %v3928_v42, %v3927_v47  ;;  %v3930_v24 = vpop.f32.mrb[78].mxu1  ;;  %v3330_v44 = vsel %vm5571_vm4, %v3322_v41, 0.0 }
 0x50c   : > { %v3931_v45 = vpop.f32.mrb[79].mxu1  ;;  %3343 = vadd.xlane.f32.xlu1 %v3330_v44 }
 0x50d   : > { %v5609_v49 = vadd.f32 %v3929_v62, %v3241_v14  ;;  %v3932_v53 = vadd.f32 %v3931_v45, %v3930_v24 }
 0x50f   : > { %v5611_v54 = vadd.f32 %v3932_v53, %v3244_v15  ;;  %v3323_v57 = vmul.f32 %v5609_v49, %v5609_v49  ;;  %v3809_v30 = vmul.f32 -1.442695, %v5609_v49 }
 0x511   : > { %v3331_v58 = vsel %vm5571_vm4, %v3323_v57, 0.0  ;;  %v3324_v59 = vmul.f32 %v5611_v54, %v5611_v54  ;;  %v4380_v13 = vpop.eup %4379  ;;  %v3810_v10 = vmul.f32 -1.442695, %v5611_v54 }
 0x512   : > { %3345 = vadd.xlane.f32.xlu0 %v3331_v58  ;;  %v4382_v55 = vpop.eup %4381  ;;  %v3391_v16 = vadd.f32 1.0, %v4380_v13 }
 0x513   : > { %v3332_v60 = vsel %vm5571_vm4, %v3324_v59, 0.0  ;;  %v3392_v17 = vadd.f32 1.0, %v4382_v55  ;;  %v4384_v46 = vpop.eup %4383 }
 0x514   : > { %3347 = vadd.xlane.f32.xlu1 %v3332_v60  ;;  %v3393_v37 = vadd.f32 1.0, %v4384_v46 }
 0x587   : > { %v3334_v7 = vpop.xlane.xlu0 %3333 }
 0x588   : > { %v3349_v11 = vmax.f32 %v3334_v7, 1e-24 }
 0x58a   : > { %4385 = vrsqrt.f32 %v3349_v11 }
 0x58b   : > { %4387 = vrcp.f32 %v3390_v6  ;;  %v3336_v14 = vpop.xlane.xlu0 %3335 }
 0x58c   : > { %4389 = vpow2.f32 %v3807_v9  ;;  %v3350_v15 = vmax.f32 %v3336_v14, 1e-24 }
 0x58d   : > { %4391 = vpow2.f32 %v3808_v12 }
 0x58e   : > { %4393 = vrsqrt.f32 %v3350_v15 }
 0x58f   : > { %v3338_v3 = vpop.xlane.xlu1 %3337  ;;  %4395 = vrcp.f32 %v3391_v16 }
 0x590   : > { %v3351_v4 = vmax.f32 %v3338_v3, 1e-24 }
 0x592   : > { %4397 = vrsqrt.f32 %v3351_v4 }
 0x593   : > { %4399 = vrcp.f32 %v3392_v17  ;;  %v3340_v8 = vpop.xlane.xlu1 %3339 }
 0x594   : > { %v4386_v26 = vpop.eup %4385  ;;  %4401 = vpow2.f32 %v3809_v30  ;;  %v3352_v43 = vmax.f32 %v3340_v8, 1e-24 }
 0x595   : > { %v4388_v27 = vpop.eup %4387  ;;  %4403 = vpow2.f32 %v3810_v10  ;;  %v3414_v63 = vmul.f32 %v4386_v26, %v5569_v32 }
 0x596   : > { %v4390_v23 = vpop.eup %4389  ;;  %4405 = vrsqrt.f32 %v3352_v43 }
 0x597   : > { %v4392_v19 = vpop.eup %4391  ;;  %v3422_v21 = vsel %vm5571_vm4, %v3414_v63, %v5569_v32  ;;  %v3342_v22 = vpop.xlane.xlu0 %3341  ;;  %4407 = vrcp.f32 %v3393_v37  ;;  %v3394_v28 = vadd.f32 1.0, %v4390_v23 }
 0x598   : > { %v4394_v50 = vpop.eup %4393  ;;  %v3430_v20 = vsel %vm3365_vm5, %v4388_v27, %v3422_v21  ;;  %v3353_v25 = vmax.f32 %v3342_v22, 1e-24  ;;  %v3395_v35 = vadd.f32 1.0, %v4392_v19 }
 0x599   : > { %3438 = vst [vmem:[%s5635_s29] sm:$0xff] %v3430_v20  ;;  %v3415_v29 = vmul.f32 %v4394_v50, %v5575_v2  ;;  %v3344_v31 = vpop.xlane.xlu1 %3343  ;;  %v4396_v34 = vpop.eup %4395 }
 0x59a   : > { %4409 = vrsqrt.f32 %v3353_v25  ;;  %v3354_v33 = vmax.f32 %v3344_v31, 1e-24 }
 0x59b   : > { %v3423_v32 = vsel %vm5571_vm4, %v3415_v29, %v5575_v2 }
 0x59c   : > { %v4398_v39 = vpop.eup %4397  ;;  %v3431_v47 = vsel %vm3365_vm5, %v4396_v34, %v3423_v32  ;;  %4411 = vrsqrt.f32 %v3354_v33 }
 0x59d   : > { %v4400_v40 = vpop.eup %4399  ;;  %4413 = vrcp.f32 %v3394_v28  ;;  %3439 = vst [vmem:[%s5635_s29 + $0x8] sm:$0xff] %v3431_v47  ;;  %v3416_v41 = vmul.f32 %v4398_v39, %v5583_v0 }
 0x59e   : > { %v4402_v42 = vpop.eup %4401  ;;  %4415 = vrcp.f32 %v3395_v35 }
 0x59f   : > { %v4404_v62 = vpop.eup %4403  ;;  %v3424_v24 = vsel %vm5571_vm4, %v3416_v41, %v5583_v0  ;;  %v3346_v44 = vpop.xlane.xlu0 %3345  ;;  %v3396_v57 = vadd.f32 1.0, %v4402_v42 }
 0x5a0   : > { %v4406_v2 = vpop.eup %4405  ;;  %v3432_v45 = vsel %vm3365_vm5, %v4400_v40, %v3424_v24  ;;  %v3355_v53 = vmax.f32 %v3346_v44, 1e-24  ;;  %v3397_v61 = vadd.f32 1.0, %v4404_v62 }
 0x5a1   : > { %3440 = vst [vmem:[%s5635_s29 + $0x10] sm:$0xff] %v3432_v45  ;;  %v3417_v58 = vmul.f32 %v4406_v2, %v5587_v48  ;;  %v3348_v59 = vpop.xlane.xlu1 %3347  ;;  %v4408_v38 = vpop.eup %4407 }
 0x5a2   : > { %4417 = vrsqrt.f32 %v3355_v53  ;;  %v3356_v60 = vmax.f32 %v3348_v59, 1e-24 }
 0x5a3   : > { %v3425_v0 = vsel %vm5571_vm4, %v3417_v58, %v5587_v48 }
 0x5a4   : > { %v4410_v51 = vpop.eup %4409  ;;  %v3433_v52 = vsel %vm3365_vm5, %v4408_v38, %v3425_v0  ;;  %4419 = vrsqrt.f32 %v3356_v60 }
 0x5a5   : > { %4421 = vrcp.f32 %v3396_v57  ;;  %3441 = vst [vmem:[%s5635_s29 + $0x18] sm:$0xff] %v3433_v52  ;;  %v3418_v1 = vmul.f32 %v4410_v51, %v5595_v18 }
 0x5a6   : > { %v4412_v6 = vpop.eup %4411  ;;  %4423 = vrcp.f32 %v3397_v61 }
 0x5a7   : > { %v4414_v7 = vpop.eup %4413  ;;  %v3426_v9 = vsel %vm5571_vm4, %v3418_v1, %v5595_v18  ;;  %v3419_v48 = vmul.f32 %v4412_v6, %v5599_v36 }
 0x5a8   : > { %v3434_v11 = vsel %vm3365_vm5, %v4414_v7, %v3426_v9  ;;  %v4416_v12 = vpop.eup %4415 }
 0x5a9   : > { %3442 = vst [vmem:[%s5635_s29 + $0x20] sm:$0xff] %v3434_v11  ;;  %v3427_v13 = vsel %vm5571_vm4, %v3419_v48, %v5599_v36 }
 0x5aa   : > { %v3435_v14 = vsel %vm3365_vm5, %v4416_v12, %v3427_v13 }
 0x5ab   : > { %3443 = vst [vmem:[%s5635_s29 + $0x28] sm:$0xff] %v3435_v14 }
 0x5ac   : > { %v4418_v55 = vpop.eup %4417 }
 0x5ad   : > { %v3420_v18 = vmul.f32 %v4418_v55, %v5609_v49 }
 0x5ae   : > { %v4420_v15 = vpop.eup %4419 }
 0x5af   : > { %v4422_v16 = vpop.eup %4421  ;;  %v3428_v17 = vsel %vm5571_vm4, %v3420_v18, %v5609_v49  ;;  %v3421_v3 = vmul.f32 %v4420_v15, %v5611_v54 }
 0x5b0   : > { %v3436_v30 = vsel %vm3365_vm5, %v4422_v16, %v3428_v17  ;;  %v4424_v4 = vpop.eup %4423 }
 0x5b1   : > { %3444 = vst [vmem:[%s5635_s29 + $0x30] sm:$0xff] %v3436_v30  ;;  %v3429_v36 = vsel %vm5571_vm4, %v3421_v3, %v5611_v54 }
 0x5b2   : > { %v3437_v10 = vsel %vm3365_vm5, %v4424_v4, %v3429_v36 }
 0x5b3   : > { %3445 = vst [vmem:[%s5635_s29 + $0x38] sm:$0xff] %v3437_v10 }
 0x5b4 PF: > { %s23_s25 = sadd.s32 1, %s4431_s25  }
 0x5b5   : > { %p20_p4 = scmp.ge.s32.totalorder %s23_s25, 4  }
 0x5b7   :  { %22 = sbr.rel (!%p20_p4) target bundleno = 1 (0x1), region = 102 }

</bundles_post_ra>
